<compile_context>
chip_gen: v7x
topology: tpu7x:2x2x1
jax: 0.10.0
libtpu: 0.0.40
codegen_flags: <defaults>
</compile_context>

<pallas_src>
import jax
import jax.numpy as jnp
from jax.experimental import pallas as pl
from jax.experimental.pallas import tpu as pltpu

D_IN = 28 * 28   # 784
HIDDEN = 512
N_OUT = 10
N_PAD = 128      # lane-dense padded logits width


def mlp_kernel(x_ref, w1_ref, b1_ref, w2_ref, b2_ref, w3_ref, b3_ref, o_ref):
    # x_ref: (TB, 784) f32 -> cast to bf16 in-kernel (MXU operand).
    # w1: (784, 512) bf16   b1: (1, 512) f32
    # w2: (512, 512) bf16   b2: (1, 512) f32
    # w3: (512, 128) bf16 (zero-padded from 10 cols)   b3: (1, 128) f32
    x = x_ref[...].astype(jnp.bfloat16)

    h1 = jnp.dot(x, w1_ref[...], preferred_element_type=jnp.float32) + b1_ref[...]
    h1 = jnp.maximum(h1, 0.0).astype(jnp.bfloat16)   # f32 ReLU, bf16 into next MXU pass

    h2 = jnp.dot(h1, w2_ref[...], preferred_element_type=jnp.float32) + b2_ref[...]
    h2 = jnp.maximum(h2, 0.0).astype(jnp.bfloat16)

    o_ref[...] = (
        jnp.dot(h2, w3_ref[...], preferred_element_type=jnp.float32) + b3_ref[...]
    )


def prepare_params(params):
    """One-time weight prep: transpose to (in,out), cast to bf16, lane-pad fc3.

    Call once and reuse the result; everything here is invariant across
    forward calls.
    """
    w1, b1, w2, b2, w3, b3 = params
    w1t = w1.T.astype(jnp.bfloat16)                                   # (784, 512)
    w2t = w2.T.astype(jnp.bfloat16)                                   # (512, 512)
    w3t = jnp.zeros((HIDDEN, N_PAD), jnp.bfloat16).at[:, :N_OUT].set(
        w3.T.astype(jnp.bfloat16))                                    # (512, 128)
    b1r = b1.reshape(1, HIDDEN).astype(jnp.float32)
    b2r = b2.reshape(1, HIDDEN).astype(jnp.float32)
    b3r = jnp.zeros((1, N_PAD), jnp.float32).at[:, :N_OUT].set(
        b3.astype(jnp.float32))
    return (w1t, b1r, w2t, b2r, w3t, b3r)


def _pick_tb(B, tb_max=1024):
    """Largest-reasonable batch tile: multiple of 256, <= 1024, and sized so
    that mid/large batches split into >= 2 tiles (v7x megacore)."""
    half = -(-B // 2)                 # cdiv(B, 2)
    tb = -(-half // 256) * 256        # round up to a multiple of 256
    return max(256, min(tb_max, tb))


def mlp_forward(x, prepared_params, *, tb=None):
    """x: (B, 1, 28, 28) or (B, 784) float32. Returns logits (B, 10) float32.

    `prepared_params` must come from prepare_params().
    """
    w1t, b1r, w2t, b2r, w3t, b3r = prepared_params
    B = x.shape[0]
    if tb is None:
        tb = _pick_tb(B)

    x2 = x.reshape(B, D_IN)           # == torch x.view(-1, 784), stays f32

    n_tiles = pl.cdiv(B, tb)          # ragged last tile handled by Pallas

    full = lambda i: (0, 0)           # whole-array blocks for weights/biases

    flops = 2 * B * (D_IN * HIDDEN + HIDDEN * HIDDEN + HIDDEN * N_PAD)
    bytes_accessed = (
        4 * B * D_IN                                  # x (f32 read)
        + 4 * B * N_PAD                               # padded logits (f32 write)
        + 2 * (D_IN * HIDDEN + HIDDEN * HIDDEN + HIDDEN * N_PAD)   # bf16 weights
        + 4 * (2 * HIDDEN + N_PAD)                    # f32 biases
    )

    out_full = pl.pallas_call(
        mlp_kernel,
        out_shape=jax.ShapeDtypeStruct((B, N_PAD), jnp.float32),
        grid_spec=pltpu.PrefetchScalarGridSpec(
            num_scalar_prefetch=0,
            grid=(n_tiles,),
            in_specs=[
                pl.BlockSpec((tb, D_IN), lambda i: (i, 0)),   # x tile (f32)
                pl.BlockSpec((D_IN, HIDDEN), full),           # W1^T
                pl.BlockSpec((1, HIDDEN), full),              # b1
                pl.BlockSpec((HIDDEN, HIDDEN), full),         # W2^T
                pl.BlockSpec((1, HIDDEN), full),              # b2
                pl.BlockSpec((HIDDEN, N_PAD), full),          # W3^T (padded)
                pl.BlockSpec((1, N_PAD), full),               # b3 (padded)
            ],
            out_specs=pl.BlockSpec((tb, N_PAD), lambda i: (i, 0)),
        ),
        compiler_params=pltpu.CompilerParams(
            dimension_semantics=("parallel",),
            vmem_limit_bytes=32 * 1024 * 1024,   # v5e default (16 MiB) is too tight at tb=1024
        ),
        cost_estimate=pl.CostEstimate(
            flops=flops, transcendentals=0, bytes_accessed=bytes_accessed),
    )(x2, w1t, b1r, w2t, b2r, w3t, b3r)

    return out_full[:, :N_OUT]


def init_params(key):
    """Deterministic init matching nn.Linear shapes: W (out, in), b (out,)."""
    ks = jax.random.split(key, 6)

    def linear(kw, kb, fan_in, fan_out):
        bound = 1.0 / jnp.sqrt(fan_in)
        w = jax.random.uniform(kw, (fan_out, fan_in), jnp.float32, -bound, bound)
        b = jax.random.uniform(kb, (fan_out,), jnp.float32, -bound, bound)
        return w, b

    w1, b1 = linear(ks[0], ks[1], D_IN, HIDDEN)
    w2, b2 = linear(ks[2], ks[3], HIDDEN, HIDDEN)
    w3, b3 = linear(ks[4], ks[5], HIDDEN, N_OUT)
    return (w1, b1, w2, b2, w3, b3)


def reference_forward(x, params):
    w1, b1, w2, b2, w3, b3 = params
    h = x.reshape(x.shape[0], D_IN)
    h = jax.nn.relu(h @ w1.T + b1)
    h = jax.nn.relu(h @ w2.T + b2)
    return h @ w3.T + b3


if __name__ == "__main__":
    key = jax.random.PRNGKey(0)
    kp, kx1, kx2 = jax.random.split(key, 3)
    params = init_params(kp)
    prepared = prepare_params(params)      # one-time weight prep, reused below

    # Test 1: small MNIST-like batch (B=8, single ragged tile), NCHW input.
    x_small = jax.random.normal(kx1, (8, 1, 28, 28), jnp.float32)
    out_small = jax.block_until_ready(mlp_forward(x_small, prepared))
    ref_small = reference_forward(x_small, params)
    assert out_small.shape == (8, N_OUT)
    assert jnp.allclose(out_small, ref_small, atol=5e-2, rtol=5e-2), \
        "mismatch vs JAX reference (small batch)"

    # Test 2: multi-tile + ragged tail path (B=40 with tb=16 -> 3 tiles,
    # last tile ragged) to cover the no-pad edge-block handling.
    x_rag = jax.random.normal(kx2, (40, 1, 28, 28), jnp.float32)
    out_rag = jax.block_until_ready(mlp_forward(x_rag, prepared, tb=16))
    ref_rag = reference_forward(x_rag, params)
    assert out_rag.shape == (40, N_OUT)
    assert jnp.allclose(out_rag, ref_rag, atol=5e-2, rtol=5e-2), \
        "mismatch vs JAX reference (ragged multi-tile)"

    print("KERNEL_OK")
</pallas_src>

<mosaic_0001>
module attributes {stable_mosaic.version = 11 : i64} {
  func.func @mlp_kernel(%arg0: i32, %arg1: memref<256x784xf32, #tpu.memory_space<vmem>>, %arg2: memref<784x512xbf16, #tpu.memory_space<vmem>>, %arg3: memref<1x512xf32, #tpu.memory_space<vmem>>, %arg4: memref<512x512xbf16, #tpu.memory_space<vmem>>, %arg5: memref<1x512xf32, #tpu.memory_space<vmem>>, %arg6: memref<512x128xbf16, #tpu.memory_space<vmem>>, %arg7: memref<1x128xf32, #tpu.memory_space<vmem>>, %arg8: memref<256x128xf32, #tpu.memory_space<vmem>>) attributes {dimension_semantics = [#tpu.dimension_semantics<parallel>], iteration_bounds = array<i64: 1>, scalar_prefetch = 0 : i64, scratch_operands = 0 : i64, tpu.core_type = #tpu.core_type<tc>, window_params = [{transform_indices = @transform_0, window_bounds = array<i64: 256, 784>}, {pipeline_mode = #tpu.pipeline_mode<synchronous>, transform_indices = @transform_1, window_bounds = array<i64: 784, 512>}, {pipeline_mode = #tpu.pipeline_mode<synchronous>, transform_indices = @transform_2, window_bounds = array<i64: 1, 512>}, {pipeline_mode = #tpu.pipeline_mode<synchronous>, transform_indices = @transform_3, window_bounds = array<i64: 512, 512>}, {pipeline_mode = #tpu.pipeline_mode<synchronous>, transform_indices = @transform_4, window_bounds = array<i64: 1, 512>}, {pipeline_mode = #tpu.pipeline_mode<synchronous>, transform_indices = @transform_5, window_bounds = array<i64: 512, 128>}, {pipeline_mode = #tpu.pipeline_mode<synchronous>, transform_indices = @transform_6, window_bounds = array<i64: 1, 128>}, {transform_indices = @transform_7, window_bounds = array<i64: 256, 128>}]} {
    %c0 = arith.constant 0 : index
    %c0_0 = arith.constant 0 : index
    %0 = vector.load %arg1[%c0, %c0_0] : memref<256x784xf32, #tpu.memory_space<vmem>>, vector<256x784xf32>
    %1 = arith.truncf %0 : vector<256x784xf32> to vector<256x784xbf16>
    %c0_1 = arith.constant 0 : index
    %c0_2 = arith.constant 0 : index
    %2 = vector.load %arg2[%c0_1, %c0_2] : memref<784x512xbf16, #tpu.memory_space<vmem>>, vector<784x512xbf16>
    %cst = arith.constant dense<0.000000e+00> : vector<256x512xf32>
    %3 = tpu.matmul %1, %2, %cst {dimension_numbers = #tpu.dot_dimension_numbers<[1], [0], [0], [1], [0, 0, 1, 1], [], []>} : vector<256x784xbf16>, vector<784x512xbf16>, vector<256x512xf32> -> vector<256x512xf32>
    %c0_3 = arith.constant 0 : index
    %c0_4 = arith.constant 0 : index
    %4 = vector.load %arg3[%c0_3, %c0_4] : memref<1x512xf32, #tpu.memory_space<vmem>>, vector<1x512xf32>
    %5 = vector.broadcast %4 : vector<1x512xf32> to vector<256x512xf32>
    %6 = arith.addf %3, %5 : vector<256x512xf32>
    %cst_5 = arith.constant 0.000000e+00 : f32
    %7 = vector.broadcast %cst_5 : f32 to vector<256x512xf32>
    %8 = arith.maximumf %6, %7 : vector<256x512xf32>
    %9 = arith.truncf %8 : vector<256x512xf32> to vector<256x512xbf16>
    %c0_6 = arith.constant 0 : index
    %c0_7 = arith.constant 0 : index
    %10 = vector.load %arg4[%c0_6, %c0_7] : memref<512x512xbf16, #tpu.memory_space<vmem>>, vector<512x512xbf16>
    %cst_8 = arith.constant dense<0.000000e+00> : vector<256x512xf32>
    %11 = tpu.matmul %9, %10, %cst_8 {dimension_numbers = #tpu.dot_dimension_numbers<[1], [0], [0], [1], [0, 0, 1, 1], [], []>} : vector<256x512xbf16>, vector<512x512xbf16>, vector<256x512xf32> -> vector<256x512xf32>
    %c0_9 = arith.constant 0 : index
    %c0_10 = arith.constant 0 : index
    %12 = vector.load %arg5[%c0_9, %c0_10] : memref<1x512xf32, #tpu.memory_space<vmem>>, vector<1x512xf32>
    %13 = vector.broadcast %12 : vector<1x512xf32> to vector<256x512xf32>
    %14 = arith.addf %11, %13 : vector<256x512xf32>
    %cst_11 = arith.constant 0.000000e+00 : f32
    %15 = vector.broadcast %cst_11 : f32 to vector<256x512xf32>
    %16 = arith.maximumf %14, %15 : vector<256x512xf32>
    %17 = arith.truncf %16 : vector<256x512xf32> to vector<256x512xbf16>
    %c0_12 = arith.constant 0 : index
    %c0_13 = arith.constant 0 : index
    %18 = vector.load %arg6[%c0_12, %c0_13] : memref<512x128xbf16, #tpu.memory_space<vmem>>, vector<512x128xbf16>
    %cst_14 = arith.constant dense<0.000000e+00> : vector<256x128xf32>
    %19 = tpu.matmul %17, %18, %cst_14 {dimension_numbers = #tpu.dot_dimension_numbers<[1], [0], [0], [1], [0, 0, 1, 1], [], []>} : vector<256x512xbf16>, vector<512x128xbf16>, vector<256x128xf32> -> vector<256x128xf32>
    %c0_15 = arith.constant 0 : index
    %c0_16 = arith.constant 0 : index
    %20 = vector.load %arg7[%c0_15, %c0_16] : memref<1x128xf32, #tpu.memory_space<vmem>>, vector<1x128xf32>
    %21 = vector.broadcast %20 : vector<1x128xf32> to vector<256x128xf32>
    %22 = arith.addf %19, %21 : vector<256x128xf32>
    %c0_17 = arith.constant 0 : index
    %c0_18 = arith.constant 0 : index
    %23 = vector.load %arg8[%c0_17, %c0_18] : memref<256x128xf32, #tpu.memory_space<vmem>>, vector<256x128xf32>
    tpu.vector_store %arg8[%c0_17, %c0_18], %22 {strides = array<i32>} : memref<256x128xf32, #tpu.memory_space<vmem>>, vector<256x128xf32>,
    return
  }
  func.func @transform_0(%arg0: i32) -> (i32, i32) {
    %c0_i32 = arith.constant 0 : i32
    %c0_i32_0 = arith.constant 0 : i32
    return %arg0, %c0_i32 : i32, i32
  }
  func.func @transform_1(%arg0: i32) -> (i32, i32) {
    %c0_i32 = arith.constant 0 : i32
    %c0_i32_0 = arith.constant 0 : i32
    %c0_i32_1 = arith.constant 0 : i32
    return %c0_i32, %c0_i32_0 : i32, i32
  }
  func.func @transform_2(%arg0: i32) -> (i32, i32) {
    %c0_i32 = arith.constant 0 : i32
    %c0_i32_0 = arith.constant 0 : i32
    %c0_i32_1 = arith.constant 0 : i32
    return %c0_i32, %c0_i32_0 : i32, i32
  }
  func.func @transform_3(%arg0: i32) -> (i32, i32) {
    %c0_i32 = arith.constant 0 : i32
    %c0_i32_0 = arith.constant 0 : i32
    %c0_i32_1 = arith.constant 0 : i32
    return %c0_i32, %c0_i32_0 : i32, i32
  }
  func.func @transform_4(%arg0: i32) -> (i32, i32) {
    %c0_i32 = arith.constant 0 : i32
    %c0_i32_0 = arith.constant 0 : i32
    %c0_i32_1 = arith.constant 0 : i32
    return %c0_i32, %c0_i32_0 : i32, i32
  }
  func.func @transform_5(%arg0: i32) -> (i32, i32) {
    %c0_i32 = arith.constant 0 : i32
    %c0_i32_0 = arith.constant 0 : i32
    %c0_i32_1 = arith.constant 0 : i32
    return %c0_i32, %c0_i32_0 : i32, i32
  }
  func.func @transform_6(%arg0: i32) -> (i32, i32) {
    %c0_i32 = arith.constant 0 : i32
    %c0_i32_0 = arith.constant 0 : i32
    %c0_i32_1 = arith.constant 0 : i32
    return %c0_i32, %c0_i32_0 : i32, i32
  }
  func.func @transform_7(%arg0: i32) -> (i32, i32) {
    %c0_i32 = arith.constant 0 : i32
    %c0_i32_0 = arith.constant 0 : i32
    return %arg0, %c0_i32 : i32, i32
  }
}

</mosaic_0001>

<bundles_post_ra>
// kernel: tpu_custom_call.1
= control target key start
LH: loop header
LB: loop body
LE: loop exit
PB: predicated region body
PF: predicated region fallthrough
CT: control target
= control target key end

     0   :  { %12 = vsyncpa [#allocation3], 0  ;;  %s8479_s0 = inlined_call_operand.hbm [shape: f32[8,784], index: 0, kind: input, shape index: {}]   ;;  %s8480_s1 = inlined_call_operand.hbm [shape: bf16[784,512], index: 1, kind: input, shape index: {}]   ;;  %s8481_s2 = inlined_call_operand.vmem [shape: f32[1,512], index: 2, kind: input, shape index: {}]   ;;  %s8482_s3 = inlined_call_operand.hbm [shape: bf16[512,512], index: 3, kind: input, shape index: {}]   ;;  %s8483_s4 = inlined_call_operand.vmem [shape: f32[1,512], index: 4, kind: input, shape index: {}]   ;;  %s8484_s5 = inlined_call_operand.hbm [shape: bf16[512,128], index: 5, kind: input, shape index: {}]   ;;  %s8485_s6 = inlined_call_operand.vmem [shape: f32[1,128], index: 6, kind: input, shape index: {}]   ;;  %s8486_s7 = inlined_call_operand.hbm [shape: f32[8,128], index: 7, kind: output, shape index: {}]  }
   0x1   :  { %13 = vsyncpa [#allocation6], 0 }
   0x2   :  { %14 = vsyncpa [#allocation9], 0 }
   0x3   :  { %15 = vsyncpa [#allocation4], 0 }
   0x4   :  { %20 = vsyncadd [#allocation3], 27776  ;;  %s7823_s24 = smov [#allocation5]   ;;  %s7705_s28 = scalar_lea.hbm %s8480_s1, 25088 }
   0x5   :  { %s33_s25 = sshll.u32 %s7823_s24, 4  ;;  %p7706_p0 = scmp.ne.s32.totalorder %s8480_s1, %s7705_s28  ;;  %s34_s25 = int_to_ptr.vmem [resolvable:$true] %s33_s25 }
   0x6   :  { %p7709_p1 = scmp.lt.u32.totalorder %s7705_s28, %s8480_s1 }
   0x8   :  { %p7711_p2 = pnand %p7709_p1, %p7706_p0 }
   0xa   :  { %7714 = shalt.err (!%p7711_p2)
}
   0xb   :  { %s7715_s10 = scalar_lea.vmem %s34_s25, 25088  ;;  %p7720_p4 = scmp.lt.s32.totalorder %s34_s25, %s34_s25 }
   0xc   :  { %p7716_p3 = scmp.ne.s32.totalorder %s34_s25, %s7715_s10  ;;  %p7721_p5 = scmp.lt.s32.totalorder %s7715_s10, %s7715_s10 }
   0xe   :  { %p7722_p6 = por %p7721_p5, %p7720_p4 }
  0x10   :  { %p7723_p7 = pnand %p7722_p6, %p7716_p3 }
  0x12   :  { %7726 = shalt.err (!%p7723_p7)
}
  0x13   :  { %s7824_s11 = smov 256   ;;  %s7825_s12 = smov 16  }
  0x14   :  { %39 = dma.hbm_to_vmem [thread:$0]  %s8480_s1, 25088, %s34_s25, [#allocation6], %s7824_s11, %s7824_s11, %s7825_s12  }
  0x15   :  { %s7826_s15 = smov [#allocation2]   ;;  %s7727_s19 = scalar_lea.hbm %s8479_s0, 896 }
  0x16   :  { %s21_s16 = sshll.u32 %s7826_s15, 4  ;;  %p7728_p8 = scmp.ne.s32.totalorder %s8479_s0, %s7727_s19  ;;  %s22_s16 = int_to_ptr.vmem [resolvable:$true] %s21_s16 }
  0x17   :  { %p7731_p9 = scmp.lt.u32.totalorder %s7727_s19, %s8479_s0 }
  0x19   :  { %p7733_p10 = pnand %p7731_p9, %p7728_p8 }
  0x1b   :  { %7736 = shalt.err (!%p7733_p10)
}
  0x1c   :  { %s7737_s24 = scalar_lea.vmem %s22_s16, 896  ;;  %s7741_s1 = scalar_lea.vmem %s22_s16, 28672 }
  0x1d   :  { %p7738_p11 = scmp.ne.s32.totalorder %s22_s16, %s7737_s24  ;;  %p7742_p12 = scmp.lt.s32.totalorder %s22_s16, %s22_s16 }
  0x1e   :  { %p7743_p13 = scmp.lt.s32.totalorder %s7741_s1, %s7737_s24 }
  0x20   :  { %p7744_p0 = por %p7743_p13, %p7742_p12 }
  0x22   :  { %p7745_p1 = pnand %p7744_p0, %p7738_p11 }
  0x24   :  { %7748 = shalt.err (!%p7745_p1)
}
  0x25   :  { %s7827_s25 = smov 896   ;;  %s7828_s26 = smov 56  }
  0x26   :  { %27 = dma.hbm_to_vmem [thread:$0]  %s8479_s0, 896, %s22_s16, [#allocation3], %s7827_s25, %s7827_s25, %s7828_s26  }
  0x27   :  { %s7829_s29 = smov [#allocation7]   ;;  %s7830_s8 = smov [#allocation8]  }
  0x28   :  { %s47_s30 = sshll.u32 %s7829_s29, 4  ;;  %s61_s9 = sshll.u32 %s7830_s8, 4  ;;  %s48_s30 = int_to_ptr.vmem [resolvable:$true] %s47_s30  ;;  %s7904_s9 = int_to_ptr.vmem [resolvable:$true] %s61_s9 }
  0x29   :  { %s7749_s14 = scalar_lea.hbm %s8482_s3, 16384 }
  0x2a   :  { %p7750_p2 = scmp.ne.s32.totalorder %s8482_s3, %s7749_s14  ;;  %p7753_p3 = scmp.lt.u32.totalorder %s7749_s14, %s8482_s3 }
  0x2c   :  { %p7755_p4 = pnand %p7753_p3, %p7750_p2 }
  0x2e   :  { %7758 = shalt.err (!%p7755_p4)
}
  0x2f   :  { %s7759_s0 = scalar_lea.vmem %s48_s30, 16384  ;;  %p7764_p6 = scmp.lt.s32.totalorder %s48_s30, %s48_s30 }
  0x30   :  { %p7760_p5 = scmp.ne.s32.totalorder %s48_s30, %s7759_s0  ;;  %p7765_p7 = scmp.lt.s32.totalorder %s7759_s0, %s7759_s0 }
  0x32   :  { %p7766_p8 = por %p7765_p7, %p7764_p6 }
  0x34   :  { %p7767_p9 = pnand %p7766_p8, %p7760_p5 }
  0x36   :  { %7770 = shalt.err (!%p7767_p9)
}
  0x37   :  { %53 = dma.hbm_to_vmem [thread:$0]  %s8482_s3, 16384, %s48_s30, [#allocation6], %s7824_s11, %s7824_s11, %s7825_s12  }
  0x38   :  { %s7771_s23 = scalar_lea.hbm %s8484_s5, 4096 }
  0x39   :  { %p7772_p10 = scmp.ne.s32.totalorder %s8484_s5, %s7771_s23  ;;  %p7775_p11 = scmp.lt.u32.totalorder %s7771_s23, %s8484_s5 }
  0x3b   :  { %p7777_p12 = pnand %p7775_p11, %p7772_p10 }
  0x3d   :  { %7780 = shalt.err (!%p7777_p12)
}
  0x3e   :  { %s7781_s27 = scalar_lea.vmem %s7904_s9, 4096  ;;  %p7786_p0 = scmp.lt.s32.totalorder %s7904_s9, %s7904_s9 }
  0x3f   :  { %p7782_p13 = scmp.ne.s32.totalorder %s7904_s9, %s7781_s27  ;;  %p7787_p1 = scmp.lt.s32.totalorder %s7781_s27, %s7781_s27 }
  0x41   :  { %p7788_p2 = por %p7787_p1, %p7786_p0 }
  0x43   :  { %p7789_p3 = pnand %p7788_p2, %p7782_p13 }
  0x45   :  { %7792 = shalt.err (!%p7789_p3)
}
  0x46   :  { %s7831_s3 = smov 64   ;;  %s7832_s11 = smov 4  }
  0x47   :  { %67 = dma.hbm_to_vmem [thread:$0]  %s8484_s5, 4096, %s7904_s9, [#allocation9], %s7831_s3, %s7831_s3, %s7832_s11  }
  0x48   :  { %7815 = dma.done.wait [#allocation3], 28672  }
  0x49   :  { %7816 = vsyncadd [#allocation3], 4294938624 }
  0x4a   :  { %7817 = dma.done.wait [#allocation6], 41472  }
  0x4b   :  { %7818 = vsyncadd [#allocation6], 4294925824 }
  0x4c   :  { %7819 = dma.done.wait [#allocation9], 4096  }
  0x4d   :  { %7820 = vsyncadd [#allocation9], 4294963200  ;;  %v7187_v0 = vld [vmem:[#allocation5 + $0x4] ss:$16 sps:$4 sm:$0xff]   ;;  %v7189_v1 = vld [vmem:[#allocation5 + $0xc] ss:$16 sps:$4 sm:$0xff]  }
  0x4e   :  { %1666 = vmatprep.subr.bf16.mxu0 %v7187_v0  ;;  %v7191_v2 = vld [vmem:[#allocation5] ss:$16 sps:$4 sm:$0xff]   ;;  %v7192_v3 = vld [vmem:[#allocation5 + $0x8] ss:$16 sps:$4 sm:$0xff]   ;;  %2438 = vmatprep.subr.bf16.mxu1 %v7189_v1  ;;  %v7193_v4 = vld [vmem:[#allocation5 + $0x24] ss:$16 sps:$4 sm:$0xff]  }
  0x4f   :  { %1667 = vmatpush1.bf16.msra.mxu0 %v7191_v2  ;;  %2439 = vmatpush1.bf16.msra.mxu1 %v7192_v3  ;;  %v7195_v5 = vld [vmem:[#allocation5 + $0x2c] ss:$16 sps:$4 sm:$0xff]   ;;  %v7197_v6 = vld [vmem:[#allocation5 + $0x20] ss:$16 sps:$4 sm:$0xff]   ;;  %v7198_v7 = vld [vmem:[#allocation5 + $0x28] ss:$16 sps:$4 sm:$0xff]  }
  0x50   :  { %1668 = vmatprep.subr.bf16.mxu0 %v7193_v4  ;;  %2440 = vmatprep.subr.bf16.mxu1 %v7195_v5  ;;  %v7199_v8 = vld [vmem:[#allocation5 + $0x44] ss:$16 sps:$4 sm:$0xff]   ;;  %v7201_v9 = vld [vmem:[#allocation5 + $0x4c] ss:$16 sps:$4 sm:$0xff]   ;;  %v7203_v10 = vld [vmem:[#allocation5 + $0x40] ss:$16 sps:$4 sm:$0xff]  }
  0x51   :  { %v7204_v11 = vld [vmem:[#allocation5 + $0x48] ss:$16 sps:$4 sm:$0xff]   ;;  %v7205_v12 = vld [vmem:[#allocation5 + $0x64] ss:$16 sps:$4 sm:$0xff]   ;;  %v7207_v13 = vld [vmem:[#allocation5 + $0x6c] ss:$16 sps:$4 sm:$0xff]  }
  0x52   :  { %v7209_v14 = vld [vmem:[#allocation5 + $0x60] ss:$16 sps:$4 sm:$0xff]   ;;  %v7210_v15 = vld [vmem:[#allocation5 + $0x68] ss:$16 sps:$4 sm:$0xff]   ;;  %v7211_v16 = vld [vmem:[#allocation5 + $0x84] ss:$16 sps:$4 sm:$0xff]  }
  0x53   :  { %1669 = vmatpush1.bf16.msra.mxu0 %v7197_v6  ;;  %2441 = vmatpush1.bf16.msra.mxu1 %v7198_v7  ;;  %v7213_v17 = vld [vmem:[#allocation5 + $0x8c] ss:$16 sps:$4 sm:$0xff]   ;;  %v7215_v18 = vld [vmem:[#allocation5 + $0x80] ss:$16 sps:$4 sm:$0xff]   ;;  %v7216_v19 = vld [vmem:[#allocation5 + $0x88] ss:$16 sps:$4 sm:$0xff]  }
  0x54   :  { %1670 = vmatprep.subr.bf16.mxu0 %v7199_v8  ;;  %2442 = vmatprep.subr.bf16.mxu1 %v7201_v9  ;;  %v7217_v20 = vld [vmem:[#allocation5 + $0xa4] ss:$16 sps:$4 sm:$0xff]   ;;  %v7219_v21 = vld [vmem:[#allocation5 + $0xac] ss:$16 sps:$4 sm:$0xff]   ;;  %v7221_v22 = vld [vmem:[#allocation5 + $0xa0] ss:$16 sps:$4 sm:$0xff]  }
  0x55   :  { %v7222_v23 = vld [vmem:[#allocation5 + $0xa8] ss:$16 sps:$4 sm:$0xff]   ;;  %v7223_v24 = vld [vmem:[#allocation5 + $0xc4] ss:$16 sps:$4 sm:$0xff]   ;;  %v7225_v25 = vld [vmem:[#allocation5 + $0xcc] ss:$16 sps:$4 sm:$0xff]  }
  0x56   :  { %v7227_v26 = vld [vmem:[#allocation5 + $0xc0] ss:$16 sps:$4 sm:$0xff]   ;;  %v7228_v27 = vld [vmem:[#allocation5 + $0xc8] ss:$16 sps:$4 sm:$0xff]   ;;  %v7229_v28 = vld [vmem:[#allocation5 + $0xe4] ss:$16 sps:$4 sm:$0xff]  }
  0x57   :  { %1671 = vmatpush1.bf16.msra.mxu0 %v7203_v10  ;;  %2443 = vmatpush1.bf16.msra.mxu1 %v7204_v11  ;;  %v7231_v29 = vld [vmem:[#allocation5 + $0xec] ss:$16 sps:$4 sm:$0xff]   ;;  %v7233_v30 = vld [vmem:[#allocation5 + $0xe0] ss:$16 sps:$4 sm:$0xff]   ;;  %v7234_v31 = vld [vmem:[#allocation5 + $0xe8] ss:$16 sps:$4 sm:$0xff]  }
  0x58   :  { %1672 = vmatprep.subr.bf16.mxu0 %v7205_v12  ;;  %2444 = vmatprep.subr.bf16.mxu1 %v7207_v13  ;;  %v7235_v32 = vld [vmem:[#allocation5 + $0x104] ss:$16 sps:$4 sm:$0xff]   ;;  %v7237_v33 = vld [vmem:[#allocation5 + $0x10c] ss:$16 sps:$4 sm:$0xff]   ;;  %v7239_v34 = vld [vmem:[#allocation5 + $0x100] ss:$16 sps:$4 sm:$0xff]  }
  0x59   :  { %v7240_v35 = vld [vmem:[#allocation5 + $0x108] ss:$16 sps:$4 sm:$0xff]   ;;  %v7241_v36 = vld [vmem:[#allocation5 + $0x124] ss:$16 sps:$4 sm:$0xff]   ;;  %v7243_v37 = vld [vmem:[#allocation5 + $0x12c] ss:$16 sps:$4 sm:$0xff]  }
  0x5a   :  { %v7245_v38 = vld [vmem:[#allocation5 + $0x120] ss:$16 sps:$4 sm:$0xff]   ;;  %v7246_v39 = vld [vmem:[#allocation5 + $0x128] ss:$16 sps:$4 sm:$0xff]   ;;  %v7247_v40 = vld [vmem:[#allocation5 + $0x144] ss:$16 sps:$4 sm:$0xff]  }
  0x5b   :  { %1673 = vmatpush1.bf16.msra.mxu0 %v7209_v14  ;;  %2445 = vmatpush1.bf16.msra.mxu1 %v7210_v15  ;;  %v7249_v41 = vld [vmem:[#allocation5 + $0x14c] ss:$16 sps:$4 sm:$0xff]   ;;  %v7251_v42 = vld [vmem:[#allocation5 + $0x140] ss:$16 sps:$4 sm:$0xff]   ;;  %v7252_v43 = vld [vmem:[#allocation5 + $0x148] ss:$16 sps:$4 sm:$0xff]  }
  0x5c   :  { %1674 = vmatprep.subr.bf16.mxu0 %v7211_v16  ;;  %2446 = vmatprep.subr.bf16.mxu1 %v7213_v17  ;;  %v7253_v44 = vld [vmem:[#allocation5 + $0x164] ss:$16 sps:$4 sm:$0xff]   ;;  %v7255_v45 = vld [vmem:[#allocation5 + $0x16c] ss:$16 sps:$4 sm:$0xff]   ;;  %v7257_v47 = vld [vmem:[#allocation5 + $0x160] ss:$16 sps:$4 sm:$0xff]  }
  0x5d   :  { %v84_v46 = vld [vmem:[#allocation2 + $0x8] sm:$0xff]  ;;  %v91_v48 = vld [vmem:[#allocation2 + $0x40] sm:$0xff]  ;;  %v90_v4 = vld [vmem:[#allocation2 + $0x38] sm:$0xff]  ;;  %vm1617_vm0 = vcmask 130048  }
  0x5e   :  { %v7258_v49 = vld [vmem:[#allocation5 + $0x168] ss:$16 sps:$4 sm:$0xff]   ;;  %v308_v50 = vpack.c.bf16 %v91_v48, %v84_v46  ;;  %v7259_v51 = vld [vmem:[#allocation5 + $0x184] ss:$16 sps:$4 sm:$0xff]   ;;  %v7261_v52 = vld [vmem:[#allocation5 + $0x18c] ss:$16 sps:$4 sm:$0xff]  }
  0x5f   :  { %1675 = vmatpush1.bf16.msra.mxu0 %v7215_v18  ;;  %2447 = vmatpush1.bf16.msra.mxu1 %v7216_v19  ;;  %v7263_v53 = vld [vmem:[#allocation5 + $0x180] ss:$16 sps:$4 sm:$0xff]   ;;  %v7264_v54 = vld [vmem:[#allocation5 + $0x188] ss:$16 sps:$4 sm:$0xff]   ;;  %v7265_v55 = vld [vmem:[#allocation5 + $0x1a4] ss:$16 sps:$4 sm:$0xff]  }
  0x60   :  { %1676 = vmatprep.subr.bf16.mxu0 %v7217_v20  ;;  %2448 = vmatprep.subr.bf16.mxu1 %v7219_v21  ;;  %v7267_v56 = vld [vmem:[#allocation5 + $0x1ac] ss:$16 sps:$4 sm:$0xff]   ;;  %v7269_v57 = vld [vmem:[#allocation5 + $0x1a0] ss:$16 sps:$4 sm:$0xff]   ;;  %v7270_v58 = vld [vmem:[#allocation5 + $0x1a8] ss:$16 sps:$4 sm:$0xff]  }
  0x61   :  { %1698 = vmatprep.mubr.bf16.mxu0 %v308_v50  ;;  %2470 = vmatprep.mubr.bf16.mxu1 %v308_v50  ;;  %v7271_v59 = vld [vmem:[#allocation5 + $0x1c4] ss:$16 sps:$4 sm:$0xff]   ;;  %v7273_v60 = vld [vmem:[#allocation5 + $0x1cc] ss:$16 sps:$4 sm:$0xff]   ;;  %v7275_v61 = vld [vmem:[#allocation5 + $0x1c0] ss:$16 sps:$4 sm:$0xff]  }
  0x62   :  { %v7276_v62 = vld [vmem:[#allocation5 + $0x1c8] ss:$16 sps:$4 sm:$0xff]   ;;  %v7277_v63 = vld [vmem:[#allocation5 + $0x1e4] ss:$16 sps:$4 sm:$0xff]   ;;  %v7279_v0 = vld [vmem:[#allocation5 + $0x1ec] ss:$16 sps:$4 sm:$0xff]  }
  0x63   :  { %1677 = vmatpush1.bf16.msra.mxu0 %v7221_v22  ;;  %2449 = vmatpush1.bf16.msra.mxu1 %v7222_v23  ;;  %v7281_v1 = vld [vmem:[#allocation5 + $0x1e0] ss:$16 sps:$4 sm:$0xff]   ;;  %v7282_v2 = vld [vmem:[#allocation5 + $0x1e8] ss:$16 sps:$4 sm:$0xff]   ;;  %v7285_v5 = vld [vmem:[#allocation5 + $0x204] ss:$16 sps:$4 sm:$0xff]  }
  0x64   :  { %1678 = vmatprep.subr.bf16.mxu0 %v7223_v24  ;;  %2450 = vmatprep.subr.bf16.mxu1 %v7225_v25  ;;  %v83_v3 = vld [vmem:[#allocation2] sm:$0xff]  ;;  %v98_v6 = vld [vmem:[#allocation2 + $0x78] sm:$0xff]  ;;  %v105_v7 = vld [vmem:[#allocation2 + $0xb0] sm:$0xff] }
  0x65   :  { %v307_v8 = vpack.c.bf16 %v90_v4, %v83_v3  ;;  %v7283_v9 = vld [vmem:[#allocation5 + $0x200] ss:$16 sps:$4 sm:$0xff]   ;;  %v315_v10 = vpack.c.bf16 %v105_v7, %v98_v6  ;;  %v7288_v11 = vld [vmem:[#allocation5 + $0x224] ss:$16 sps:$4 sm:$0xff]   ;;  %v104_v13 = vld [vmem:[#allocation2 + $0xa8] sm:$0xff] }
  0x66   :  { %v97_v12 = vld [vmem:[#allocation2 + $0x70] sm:$0xff]  ;;  %v7310_v15 = vld [vmem:[#allocation5 + $0x208] ss:$16 sps:$4 sm:$0xff]   ;;  %v7312_v16 = vld [vmem:[#allocation5 + $0x20c] ss:$16 sps:$4 sm:$0xff]  }
  0x67   :  { %1679 = vmatpush1.bf16.msra.mxu0 %v7227_v26  ;;  %2451 = vmatpush1.bf16.msra.mxu1 %v7228_v27  ;;  %v7286_v14 = vld [vmem:[#allocation5 + $0x220] ss:$16 sps:$4 sm:$0xff]   ;;  %v112_v17 = vld [vmem:[#allocation2 + $0xe8] sm:$0xff]  ;;  %v7291_v19 = vld [vmem:[#allocation5 + $0x244] ss:$16 sps:$4 sm:$0xff]   ;;  %v314_v21 = vpack.c.bf16 %v104_v13, %v97_v12 }
  0x68   :  { %1680 = vmatprep.subr.bf16.mxu0 %v7229_v28  ;;  %2452 = vmatprep.subr.bf16.mxu1 %v7231_v29  ;;  %v119_v18 = vld [vmem:[#allocation2 + $0x120] sm:$0xff]  ;;  %v7315_v20 = vld [vmem:[#allocation5 + $0x22c] ss:$16 sps:$4 sm:$0xff]   ;;  %v7313_v24 = vld [vmem:[#allocation5 + $0x228] ss:$16 sps:$4 sm:$0xff]  }
  0x69   :  { %v322_v22 = vpack.c.bf16 %v119_v18, %v112_v17  ;;  %v7289_v23 = vld [vmem:[#allocation5 + $0x240] ss:$16 sps:$4 sm:$0xff]   ;;  %v7294_v26 = vld [vmem:[#allocation5 + $0x264] ss:$16 sps:$4 sm:$0xff]   ;;  %v7321_v27 = vld [vmem:[#allocation5 + $0x24c] ss:$16 sps:$4 sm:$0xff]  }
  0x6a   :  { %v111_v25 = vld [vmem:[#allocation2 + $0xe0] sm:$0xff]  ;;  %v118_v28 = vld [vmem:[#allocation2 + $0x118] sm:$0xff]  ;;  %v160_v6 = vld [vmem:[#allocation2 + $0x268] sm:$0xff] }
  0x6b   :  { %1681 = vmatpush1.bf16.msra.mxu0 %v7233_v30  ;;  %2453 = vmatpush1.bf16.msra.mxu1 %v7234_v31  ;;  %v126_v29 = vld [vmem:[#allocation2 + $0x158] sm:$0xff]  ;;  %v133_v30 = vld [vmem:[#allocation2 + $0x190] sm:$0xff]  ;;  %v168_v7 = vld [vmem:[#allocation2 + $0x2a8] sm:$0xff] }
  0x6c   :  { %1682 = vmatprep.subr.bf16.mxu0 %v7235_v32  ;;  %2454 = vmatprep.subr.bf16.mxu1 %v7237_v33  ;;  %v7292_v31 = vld [vmem:[#allocation5 + $0x260] ss:$16 sps:$4 sm:$0xff]   ;;  %v7319_v32 = vld [vmem:[#allocation5 + $0x248] ss:$16 sps:$4 sm:$0xff]   ;;  %v7297_v33 = vld [vmem:[#allocation5 + $0x284] ss:$16 sps:$4 sm:$0xff]  }
  0x6d   :  { %v7328_v46 = vld [vmem:[#allocation5 + $0x288] ss:$16 sps:$4 sm:$0xff]   ;;  %v7333_v48 = vld [vmem:[#allocation5 + $0x2ac] ss:$16 sps:$4 sm:$0xff]   ;;  %v7318_v3 = vld [vmem:[#allocation5 + $0x324] ss:$16 sps:$4 sm:$0xff]  }
  0x6e   :  { %v7348_v4 = vld [vmem:[#allocation5 + $0x30c] ss:$16 sps:$4 sm:$0xff]   ;;  %v7336_v17 = vld [vmem:[#allocation5 + $0x364] ss:$16 sps:$4 sm:$0xff]  }
  0x6f   :  { %1683 = vmatpush1.bf16.msra.mxu0 %v7239_v34  ;;  %2455 = vmatpush1.bf16.msra.mxu1 %v7240_v35  ;;  %v7324_v34 = vld [vmem:[#allocation5 + $0x26c] ss:$16 sps:$4 sm:$0xff]   ;;  %v321_v35 = vpack.c.bf16 %v118_v28, %v111_v25  ;;  %v7345_v25 = vld [vmem:[#allocation5 + $0x384] ss:$16 sps:$4 sm:$0xff]  }
  0x70   :  { %1684 = vmatprep.subr.bf16.mxu0 %v7241_v36  ;;  %2456 = vmatprep.subr.bf16.mxu1 %v7243_v37  ;;  %v329_v36 = vpack.c.bf16 %v133_v30, %v126_v29  ;;  %v7295_v37 = vld [vmem:[#allocation5 + $0x280] ss:$16 sps:$4 sm:$0xff]   ;;  %v7351_v12 = vld [vmem:[#allocation5 + $0x32c] ss:$16 sps:$4 sm:$0xff]   ;;  %v7358_v30 = vld [vmem:[#allocation5 + $0x368] ss:$16 sps:$4 sm:$0xff]  }
  0x71   :  { %v7357_v18 = vld [vmem:[#allocation5 + $0x34c] ss:$16 sps:$4 sm:$0xff]   ;;  %v7343_v29 = vld [vmem:[#allocation5 + $0x380] ss:$16 sps:$4 sm:$0xff]  }
  0x73   :  { %1685 = vmatpush1.bf16.msra.mxu0 %v7245_v38  ;;  %2457 = vmatpush1.bf16.msra.mxu1 %v7246_v39  ;;  %v7322_v38 = vld [vmem:[#allocation5 + $0x268] ss:$16 sps:$4 sm:$0xff]   ;;  %v7300_v39 = vld [vmem:[#allocation5 + $0x2a4] ss:$16 sps:$4 sm:$0xff]  }
  0x74   :  { %1686 = vmatprep.subr.bf16.mxu0 %v7247_v40  ;;  %2458 = vmatprep.subr.bf16.mxu1 %v7249_v41  ;;  %v7330_v40 = vld [vmem:[#allocation5 + $0x28c] ss:$16 sps:$4 sm:$0xff]   ;;  %v125_v41 = vld [vmem:[#allocation2 + $0x150] sm:$0xff] }
  0x77   :  { %1687 = vmatpush1.bf16.msra.mxu0 %v7251_v42  ;;  %2459 = vmatpush1.bf16.msra.mxu1 %v7252_v43  ;;  %v132_v42 = vld [vmem:[#allocation2 + $0x188] sm:$0xff] }
  0x78   :  { %1688 = vmatprep.subr.bf16.mxu0 %v7253_v44  ;;  %2460 = vmatprep.subr.bf16.mxu1 %v7255_v45  ;;  %v140_v43 = vld [vmem:[#allocation2 + $0x1c8] sm:$0xff]  ;;  %v147_v44 = vld [vmem:[#allocation2 + $0x200] sm:$0xff] }
  0x79   :  { %v7298_v45 = vld [vmem:[#allocation5 + $0x2a0] ss:$16 sps:$4 sm:$0xff]   ;;  %v336_v50 = vpack.c.bf16 %v147_v44, %v140_v43  ;;  %v7367_v44 = vld [vmem:[#allocation5 + $0x3a8] ss:$16 sps:$4 sm:$0xff]  }
  0x7a   :  { %v7361_v43 = vld [vmem:[#allocation5 + $0x3c0] ss:$16 sps:$4 sm:$0xff]  }
  0x7b   :  { %1689 = vmatpush1.bf16.msra.mxu0 %v7257_v47  ;;  %2461 = vmatpush1.bf16.msra.mxu1 %v7258_v49  ;;  %v7303_v47 = vld [vmem:[#allocation5 + $0x2c4] ss:$16 sps:$4 sm:$0xff]   ;;  %v328_v49 = vpack.c.bf16 %v132_v42, %v125_v41 }
  0x7c   :  { %1690 = vmatprep.subr.bf16.mxu0 %v7259_v51  ;;  %2462 = vmatprep.subr.bf16.mxu1 %v7261_v52  ;;  %v7301_v51 = vld [vmem:[#allocation5 + $0x2c0] ss:$16 sps:$4 sm:$0xff]   ;;  %v7331_v52 = vld [vmem:[#allocation5 + $0x2a8] ss:$16 sps:$4 sm:$0xff]  }
  0x7f   :  { %1691 = vmatpush1.bf16.msra.mxu0 %v7263_v53  ;;  %2463 = vmatpush1.bf16.msra.mxu1 %v7264_v54  ;;  %v139_v53 = vld [vmem:[#allocation2 + $0x1c0] sm:$0xff] }
  0x80   :  { %1692 = vmatprep.subr.bf16.mxu0 %v7265_v55  ;;  %2464 = vmatprep.subr.bf16.mxu1 %v7267_v56  ;;  %v7306_v54 = vld [vmem:[#allocation5 + $0x2e4] ss:$16 sps:$4 sm:$0xff]   ;;  %v7339_v55 = vld [vmem:[#allocation5 + $0x2cc] ss:$16 sps:$4 sm:$0xff]  }
  0x81   :  { %v146_v56 = vld [vmem:[#allocation2 + $0x1f8] sm:$0xff] }
  0x83   :  { %1693 = vmatpush1.bf16.msra.mxu0 %v7269_v57  ;;  %2465 = vmatpush1.bf16.msra.mxu1 %v7270_v58  ;;  %v154_v57 = vld [vmem:[#allocation2 + $0x238] sm:$0xff]  ;;  %v161_v58 = vld [vmem:[#allocation2 + $0x270] sm:$0xff] }
  0x84   :  { %1694 = vmatprep.subr.bf16.mxu0 %v7271_v59  ;;  %2466 = vmatprep.subr.bf16.mxu1 %v7273_v60  ;;  %v7304_v59 = vld [vmem:[#allocation5 + $0x2e0] ss:$16 sps:$4 sm:$0xff]   ;;  %v7337_v60 = vld [vmem:[#allocation5 + $0x2c8] ss:$16 sps:$4 sm:$0xff]  }
  0x87   :  { %1695 = vmatpush1.bf16.msra.mxu0 %v7275_v61  ;;  %2467 = vmatpush1.bf16.msra.mxu1 %v7276_v62  ;;  %v7309_v61 = vld [vmem:[#allocation5 + $0x304] ss:$16 sps:$4 sm:$0xff]   ;;  %v7342_v62 = vld [vmem:[#allocation5 + $0x2ec] ss:$16 sps:$4 sm:$0xff]  }
  0x88   :  { %1696 = vmatprep.subr.bf16.mxu0 %v7277_v63  ;;  %2468 = vmatprep.subr.bf16.mxu1 %v7279_v0  ;;  %v335_v63 = vpack.c.bf16 %v146_v56, %v139_v53  ;;  %v343_v0 = vpack.c.bf16 %v161_v58, %v154_v57  ;;  %v7378_v53 = vld [vmem:[#allocation5 + $0x3ec] ss:$16 sps:$4 sm:$0xff]   ;;  %v7376_v57 = vld [vmem:[#allocation5 + $0x3e8] ss:$16 sps:$4 sm:$0xff]   ;;  %v209_v58 = vld [vmem:[#allocation2 + $0x3f0] sm:$0xff] }
  0x8b   :  { %1697 = vmatpush1.bf16.msra.mxu0 %v7281_v1  ;;  %2469 = vmatpush1.bf16.msra.mxu1 %v7282_v2  ;;  %v7307_v1 = vld [vmem:[#allocation5 + $0x300] ss:$16 sps:$4 sm:$0xff]   ;;  %v7340_v2 = vld [vmem:[#allocation5 + $0x2e8] ss:$16 sps:$4 sm:$0xff]  }
  0x8c   :  { %1859 = vmatprep.subr.bf16.mxu0 %v7285_v5  ;;  %2631 = vmatprep.subr.bf16.mxu1 %v7312_v16  ;;  %v153_v5 = vld [vmem:[#allocation2 + $0x230] sm:$0xff]  ;;  %v7349_v16 = vld [vmem:[#allocation5 + $0x328] ss:$16 sps:$4 sm:$0xff]  }
  0x8d   :  { %v342_v13 = vpack.c.bf16 %v160_v6, %v153_v5 }
  0x8e   :  { %1699 = vmatmul.mubr.bf16.vlgmr.msra.gmra.mrb[0].mxu0 %v307_v8  ;;  %2471 = vmatmul.mubr.bf16.vlgmr.msra.gmra.mrb[0].mxu1 %v307_v8  ;;  %v175_v8 = vld [vmem:[#allocation2 + $0x2e0] sm:$0xff] }
  0x8f   :  { %1860 = vmatpush1.bf16.msra.mxu0 %v7283_v9  ;;  %1708 = vmatprep.mubr.bf16.mxu0 %v315_v10  ;;  %v7316_v9 = vld [vmem:[#allocation5 + $0x320] ss:$16 sps:$4 sm:$0xff]  }
  0x90   :  { %2480 = vmatprep.mubr.bf16.mxu1 %v315_v10  ;;  %1861 = vmatprep.subr.bf16.mxu0 %v7288_v11  ;;  %v7346_v10 = vld [vmem:[#allocation5 + $0x308] ss:$16 sps:$4 sm:$0xff]   ;;  %v7327_v11 = vld [vmem:[#allocation5 + $0x344] ss:$16 sps:$4 sm:$0xff]  }
  0x91   :  { %2632 = vmatpush1.bf16.msra.mxu1 %v7310_v15  ;;  %v7325_v15 = vld [vmem:[#allocation5 + $0x340] ss:$16 sps:$4 sm:$0xff]  }
  0x92   :  { %2633 = vmatprep.subr.bf16.mxu1 %v7315_v20  ;;  %v174_v20 = vld [vmem:[#allocation2 + $0x2d8] sm:$0xff] }
  0x93   :  { %1862 = vmatpush1.bf16.msra.mxu0 %v7286_v14  ;;  %v350_v14 = vpack.c.bf16 %v175_v8, %v168_v7  ;;  %v237_v7 = vld [vmem:[#allocation2 + $0x4d0] sm:$0xff]  ;;  %v244_v8 = vld [vmem:[#allocation2 + $0x508] sm:$0xff] }
  0x94   :  { %1863 = vmatprep.subr.bf16.mxu0 %v7291_v19  ;;  %v167_v19 = vld [vmem:[#allocation2 + $0x2a0] sm:$0xff] }
  0x95   :  { %2634 = vmatpush1.bf16.msra.mxu1 %v7313_v24  ;;  %v7355_v24 = vld [vmem:[#allocation5 + $0x348] ss:$16 sps:$4 sm:$0xff]  }
  0x96   :  { %1709 = vmatmul.mubr.bf16.gmra.mrb[4].mxu0 %v314_v21  ;;  %2481 = vmatmul.mubr.bf16.gmra.mrb[4].mxu1 %v314_v21  ;;  %v182_v21 = vld [vmem:[#allocation2 + $0x318] sm:$0xff] }
  0x97   :  { %1718 = vmatprep.mubr.bf16.mxu0 %v322_v22  ;;  %2490 = vmatprep.mubr.bf16.mxu1 %v322_v22  ;;  %v189_v22 = vld [vmem:[#allocation2 + $0x350] sm:$0xff] }
  0x98   :  { %1864 = vmatpush1.bf16.msra.mxu0 %v7289_v23  ;;  %2635 = vmatprep.subr.bf16.mxu1 %v7321_v27  ;;  %v7334_v23 = vld [vmem:[#allocation5 + $0x360] ss:$16 sps:$4 sm:$0xff]   ;;  %v349_v27 = vpack.c.bf16 %v174_v20, %v167_v19  ;;  %v357_v28 = vpack.c.bf16 %v189_v22, %v182_v21  ;;  %v272_v20 = vld [vmem:[#allocation2 + $0x5e8] sm:$0xff] }
  0x99   :  { %1865 = vmatprep.subr.bf16.mxu0 %v7294_v26  ;;  %2636 = vmatpush1.bf16.msra.mxu1 %v7319_v32  ;;  %v7360_v26 = vld [vmem:[#allocation5 + $0x36c] ss:$16 sps:$4 sm:$0xff]   ;;  %v265_v19 = vld [vmem:[#allocation2 + $0x5b0] sm:$0xff]  ;;  %v287_v22 = vld [vmem:[#allocation2 + $0x660] sm:$0xff] }
  0x9a   :  { %2637 = vmatprep.subr.bf16.mxu1 %v7324_v34  ;;  %v7366_v32 = vld [vmem:[#allocation5 + $0x38c] ss:$16 sps:$4 sm:$0xff]  }
  0x9b   :  { %v188_v34 = vld [vmem:[#allocation2 + $0x348] sm:$0xff] }
  0x9c   :  { %1866 = vmatpush1.bf16.msra.mxu0 %v7292_v31  ;;  %v7354_v31 = vld [vmem:[#allocation5 + $0x3a4] ss:$16 sps:$4 sm:$0xff]   ;;  %v280_v21 = vld [vmem:[#allocation2 + $0x628] sm:$0xff] }
  0x9d   :  { %1867 = vmatprep.subr.bf16.mxu0 %v7297_v33  ;;  %2638 = vmatpush1.bf16.msra.mxu1 %v7322_v38  ;;  %v181_v33 = vld [vmem:[#allocation2 + $0x310] sm:$0xff]  ;;  %v7364_v38 = vld [vmem:[#allocation5 + $0x388] ss:$16 sps:$4 sm:$0xff]  }
  0x9e   :  { %1719 = vmatmul.mubr.bf16.gmra.mrb[8].mxu0 %v321_v35  ;;  %2491 = vmatmul.mubr.bf16.gmra.mrb[8].mxu1 %v321_v35  ;;  %v196_v35 = vld [vmem:[#allocation2 + $0x388] sm:$0xff]  ;;  %v356_v41 = vpack.c.bf16 %v188_v34, %v181_v33  ;;  %v86_v33 = vld [vmem:[#allocation2 + $0x18] sm:$0xff]  ;;  %v93_v34 = vld [vmem:[#allocation2 + $0x50] sm:$0xff] }
  0x9f   :  { %1728 = vmatprep.mubr.bf16.mxu0 %v329_v36  ;;  %2500 = vmatprep.mubr.bf16.mxu1 %v329_v36  ;;  %v203_v36 = vld [vmem:[#allocation2 + $0x3c0] sm:$0xff] }
  0xa0   :  { %1868 = vmatpush1.bf16.msra.mxu0 %v7295_v37  ;;  %2639 = vmatprep.subr.bf16.mxu1 %v7330_v40  ;;  %v7352_v37 = vld [vmem:[#allocation5 + $0x3a0] ss:$16 sps:$4 sm:$0xff]   ;;  %v7369_v40 = vld [vmem:[#allocation5 + $0x3ac] ss:$16 sps:$4 sm:$0xff]   ;;  %v364_v42 = vpack.c.bf16 %v203_v36, %v196_v35  ;;  %v310_v36 = vpack.c.bf16 %v93_v34, %v86_v33 }
  0xa1   :  { %1869 = vmatprep.subr.bf16.mxu0 %v7300_v39  ;;  %2640 = vmatpush1.bf16.msra.mxu1 %v7328_v46  ;;  %v7363_v39 = vld [vmem:[#allocation5 + $0x3c4] ss:$16 sps:$4 sm:$0xff]   ;;  %v7375_v46 = vld [vmem:[#allocation5 + $0x3cc] ss:$16 sps:$4 sm:$0xff]   ;;  %v7403_v33 = vld [vmem:[#allocation5 + $0x500] ss:$16 sps:$4 sm:$0xff]  }
  0xa2   :  { %2641 = vmatprep.subr.bf16.mxu1 %v7333_v48  ;;  %v202_v48 = vld [vmem:[#allocation2 + $0x3b8] sm:$0xff] }
  0xa3   :  { %v7444_v34 = vld [vmem:[#allocation5 + $0x50c] ss:$16 sps:$4 sm:$0xff]  }
  0xa4   :  { %1870 = vmatpush1.bf16.msra.mxu0 %v7298_v45  ;;  %v7372_v45 = vld [vmem:[#allocation5 + $0x3e4] ss:$16 sps:$4 sm:$0xff]  }
  0xa5   :  { %1871 = vmatprep.subr.bf16.mxu0 %v7303_v47  ;;  %2642 = vmatpush1.bf16.msra.mxu1 %v7331_v52  ;;  %v195_v47 = vld [vmem:[#allocation2 + $0x380] sm:$0xff]  ;;  %v7373_v52 = vld [vmem:[#allocation5 + $0x3c8] ss:$16 sps:$4 sm:$0xff]  }
  0xa6   :  { %1729 = vmatmul.mubr.bf16.gmra.mrb[12].mxu0 %v328_v49  ;;  %2501 = vmatmul.mubr.bf16.gmra.mrb[12].mxu1 %v328_v49  ;;  %v210_v49 = vld [vmem:[#allocation2 + $0x3f8] sm:$0xff] }
  0xa7   :  { %1738 = vmatprep.mubr.bf16.mxu0 %v336_v50  ;;  %2510 = vmatprep.mubr.bf16.mxu1 %v336_v50  ;;  %v217_v50 = vld [vmem:[#allocation2 + $0x430] sm:$0xff] }
  0xa8   :  { %1872 = vmatpush1.bf16.msra.mxu0 %v7301_v51  ;;  %2643 = vmatprep.subr.bf16.mxu1 %v7339_v55  ;;  %v7370_v51 = vld [vmem:[#allocation5 + $0x3e0] ss:$16 sps:$4 sm:$0xff]   ;;  %v363_v55 = vpack.c.bf16 %v202_v48, %v195_v47  ;;  %v371_v56 = vpack.c.bf16 %v217_v50, %v210_v49  ;;  %v106_v47 = vld [vmem:[#allocation2 + $0xb8] sm:$0xff] }
  0xa9   :  { %1873 = vmatprep.subr.bf16.mxu0 %v7306_v54  ;;  %2644 = vmatpush1.bf16.msra.mxu1 %v7337_v60  ;;  %v7381_v54 = vld [vmem:[#allocation5 + $0x404] ss:$16 sps:$4 sm:$0xff]   ;;  %v216_v60 = vld [vmem:[#allocation2 + $0x428] sm:$0xff]  ;;  %v7382_v48 = vld [vmem:[#allocation5 + $0x420] ss:$16 sps:$4 sm:$0xff]  }
  0xaa   :  { %2645 = vmatprep.subr.bf16.mxu1 %v7342_v62  ;;  %v231_v62 = vld [vmem:[#allocation2 + $0x4a0] sm:$0xff]  ;;  %v7411_v49 = vld [vmem:[#allocation5 + $0x42c] ss:$16 sps:$4 sm:$0xff]  }
  0xab   :  { %v114_v50 = vld [vmem:[#allocation2 + $0xf8] sm:$0xff] }
  0xac   :  { %1874 = vmatpush1.bf16.msra.mxu0 %v7304_v59  ;;  %v7408_v59 = vld [vmem:[#allocation5 + $0x40c] ss:$16 sps:$4 sm:$0xff]  }
  0xad   :  { %1875 = vmatprep.subr.bf16.mxu0 %v7309_v61  ;;  %2646 = vmatpush1.bf16.msra.mxu1 %v7340_v2  ;;  %v224_v61 = vld [vmem:[#allocation2 + $0x468] sm:$0xff]  ;;  %v230_v2 = vld [vmem:[#allocation2 + $0x498] sm:$0xff] }
  0xae   :  { %1739 = vmatmul.mubr.bf16.gmra.mrb[16].mxu0 %v335_v63  ;;  %2511 = vmatmul.mubr.bf16.gmra.mrb[16].mxu1 %v335_v63  ;;  %v370_v63 = vpack.c.bf16 %v216_v60, %v209_v58  ;;  %v7390_v58 = vld [vmem:[#allocation5 + $0x464] ss:$16 sps:$4 sm:$0xff]  }
  0xaf   :  { %1748 = vmatprep.mubr.bf16.mxu0 %v343_v0  ;;  %2520 = vmatprep.mubr.bf16.mxu1 %v343_v0  ;;  %v378_v0 = vpack.c.bf16 %v231_v62, %v224_v61  ;;  %v113_v60 = vld [vmem:[#allocation2 + $0xf0] sm:$0xff]  ;;  %v120_v61 = vld [vmem:[#allocation2 + $0x128] sm:$0xff] }
  0xb0   :  { %1876 = vmatpush1.bf16.msra.mxu0 %v7307_v1  ;;  %2647 = vmatprep.subr.bf16.mxu1 %v7348_v4  ;;  %v223_v1 = vld [vmem:[#allocation2 + $0x460] sm:$0xff]  ;;  %v245_v4 = vld [vmem:[#allocation2 + $0x510] sm:$0xff]  ;;  %v128_v62 = vld [vmem:[#allocation2 + $0x168] sm:$0xff] }
  0xb1   :  { %1877 = vmatprep.subr.bf16.mxu0 %v7318_v3  ;;  %2648 = vmatpush1.bf16.msra.mxu1 %v7346_v10  ;;  %v238_v3 = vld [vmem:[#allocation2 + $0x4d8] sm:$0xff]  ;;  %v377_v5 = vpack.c.bf16 %v230_v2, %v223_v1  ;;  %v259_v10 = vld [vmem:[#allocation2 + $0x580] sm:$0xff] }
  0xb2   :  { %2649 = vmatprep.subr.bf16.mxu1 %v7351_v12  ;;  %v385_v6 = vpack.c.bf16 %v245_v4, %v238_v3  ;;  %v7420_v1 = vld [vmem:[#allocation5 + $0x46c] ss:$16 sps:$4 sm:$0xff]   ;;  %v7393_v2 = vld [vmem:[#allocation5 + $0x484] ss:$16 sps:$4 sm:$0xff]   ;;  %v7418_v3 = vld [vmem:[#allocation5 + $0x468] ss:$16 sps:$4 sm:$0xff]   ;;  %v323_v4 = vpack.c.bf16 %v120_v61, %v113_v60 }
  0xb3   :  { %v7439_v61 = vld [vmem:[#allocation5 + $0x580] ss:$16 sps:$4 sm:$0xff]  }
  0xb4   :  { %1878 = vmatpush1.bf16.msra.mxu0 %v7316_v9  ;;  %v252_v9 = vld [vmem:[#allocation2 + $0x548] sm:$0xff] }
  0xb5   :  { %1879 = vmatprep.subr.bf16.mxu0 %v7327_v11  ;;  %2650 = vmatpush1.bf16.msra.mxu1 %v7349_v16  ;;  %v384_v11 = vpack.c.bf16 %v244_v8, %v237_v7  ;;  %v392_v12 = vpack.c.bf16 %v259_v10, %v252_v9  ;;  %v273_v16 = vld [vmem:[#allocation2 + $0x5f0] sm:$0xff]  ;;  %v7424_v9 = vld [vmem:[#allocation5 + $0x488] ss:$16 sps:$4 sm:$0xff]   ;;  %v127_v10 = vld [vmem:[#allocation2 + $0x160] sm:$0xff] }
  0xb6   :  { %1749 = vmatmul.mubr.bf16.gmra.mrb[20].mxu0 %v342_v13  ;;  %2521 = vmatmul.mubr.bf16.gmra.mrb[20].mxu1 %v342_v13  ;;  %v251_v13 = vld [vmem:[#allocation2 + $0x540] sm:$0xff] }
  0xb7   :  { %1758 = vmatprep.mubr.bf16.mxu0 %v350_v14  ;;  %2530 = vmatprep.mubr.bf16.mxu1 %v350_v14  ;;  %v258_v14 = vld [vmem:[#allocation2 + $0x578] sm:$0xff]  ;;  %v7396_v8 = vld [vmem:[#allocation5 + $0x4a4] ss:$16 sps:$4 sm:$0xff]  }
  0xb8   :  { %1880 = vmatpush1.bf16.msra.mxu0 %v7325_v15  ;;  %2651 = vmatprep.subr.bf16.mxu1 %v7357_v18  ;;  %v266_v15 = vld [vmem:[#allocation2 + $0x5b8] sm:$0xff] }
  0xb9   :  { %1881 = vmatprep.subr.bf16.mxu0 %v7336_v17  ;;  %2652 = vmatpush1.bf16.msra.mxu1 %v7355_v24  ;;  %v391_v17 = vpack.c.bf16 %v258_v14, %v251_v13  ;;  %v399_v18 = vpack.c.bf16 %v273_v16, %v266_v15  ;;  %v406_v24 = vpack.c.bf16 %v287_v22, %v280_v21  ;;  %v149_v13 = vld [vmem:[#allocation2 + $0x210] sm:$0xff]  ;;  %v7429_v15 = vld [vmem:[#allocation5 + $0x4ac] ss:$16 sps:$4 sm:$0xff]  }
  0xba   :  { %2653 = vmatprep.subr.bf16.mxu1 %v7360_v26  ;;  %v286_v26 = vld [vmem:[#allocation2 + $0x658] sm:$0xff]  ;;  %v7394_v14 = vld [vmem:[#allocation5 + $0x4a0] ss:$16 sps:$4 sm:$0xff]   ;;  %v7399_v16 = vld [vmem:[#allocation5 + $0x4c4] ss:$16 sps:$4 sm:$0xff]  }
  0xbb   :  { %v7402_v22 = vld [vmem:[#allocation5 + $0x4e4] ss:$16 sps:$4 sm:$0xff]  }
  0xbc   :  { %1882 = vmatpush1.bf16.msra.mxu0 %v7334_v23  ;;  %v398_v23 = vpack.c.bf16 %v272_v20, %v265_v19  ;;  %v7397_v19 = vld [vmem:[#allocation5 + $0x4c0] ss:$16 sps:$4 sm:$0xff]   ;;  %v7435_v20 = vld [vmem:[#allocation5 + $0x4cc] ss:$16 sps:$4 sm:$0xff]  }
  0xbd   :  { %1883 = vmatprep.subr.bf16.mxu0 %v7345_v25  ;;  %2654 = vmatpush1.bf16.msra.mxu1 %v7358_v30  ;;  %v279_v25 = vld [vmem:[#allocation2 + $0x620] sm:$0xff] }
  0xbe   :  { %1759 = vmatmul.mubr.bf16.gmra.mrb[24].mxu0 %v349_v27  ;;  %2531 = vmatmul.mubr.bf16.gmra.mrb[24].mxu1 %v349_v27  ;;  %v294_v27 = vld [vmem:[#allocation2 + $0x698] sm:$0xff] }
  0xbf   :  { %1768 = vmatprep.mubr.bf16.mxu0 %v357_v28  ;;  %2540 = vmatprep.mubr.bf16.mxu1 %v357_v28  ;;  %v301_v28 = vld [vmem:[#allocation2 + $0x6d0] sm:$0xff] }
  0xc0   :  { %1884 = vmatpush1.bf16.msra.mxu0 %v7343_v29  ;;  %2655 = vmatprep.subr.bf16.mxu1 %v7366_v32  ;;  %v405_v29 = vpack.c.bf16 %v286_v26, %v279_v25  ;;  %v413_v30 = vpack.c.bf16 %v301_v28, %v294_v27  ;;  %v300_v32 = vld [vmem:[#allocation2 + $0x6c8] sm:$0xff]  ;;  %v163_v27 = vld [vmem:[#allocation2 + $0x280] sm:$0xff] }
  0xc1   :  { %1885 = vmatprep.subr.bf16.mxu0 %v7354_v31  ;;  %2656 = vmatpush1.bf16.msra.mxu1 %v7364_v38  ;;  %v293_v31 = vld [vmem:[#allocation2 + $0x690] sm:$0xff]  ;;  %v92_v38 = vld [vmem:[#allocation2 + $0x48] sm:$0xff] }
  0xc2   :  { %2657 = vmatprep.subr.bf16.mxu1 %v7369_v40  ;;  %v412_v35 = vpack.c.bf16 %v300_v32, %v293_v31  ;;  %v107_v40 = vld [vmem:[#allocation2 + $0xc0] sm:$0xff]  ;;  %v148_v25 = vld [vmem:[#allocation2 + $0x208] sm:$0xff] }
  0xc3   :  { %v156_v26 = vld [vmem:[#allocation2 + $0x248] sm:$0xff]  ;;  %v7400_v28 = vld [vmem:[#allocation5 + $0x4e0] ss:$16 sps:$4 sm:$0xff]  }
  0xc4   :  { %1886 = vmatpush1.bf16.msra.mxu0 %v7352_v37  ;;  %v85_v37 = vld [vmem:[#allocation2 + $0x10] sm:$0xff]  ;;  %v7436_v31 = vld [vmem:[#allocation5 + $0x4e8] ss:$16 sps:$4 sm:$0xff]  }
  0xc5   :  { %1887 = vmatprep.subr.bf16.mxu0 %v7363_v39  ;;  %2658 = vmatpush1.bf16.msra.mxu1 %v7367_v44  ;;  %v100_v39 = vld [vmem:[#allocation2 + $0x88] sm:$0xff] }
  0xc6   :  { %1769 = vmatmul.mubr.bf16.gmra.mrb[28].mxu0 %v356_v41  ;;  %2541 = vmatmul.mubr.bf16.gmra.mrb[28].mxu1 %v356_v41  ;;  %v7379_v41 = vld [vmem:[#allocation5 + $0x400] ss:$16 sps:$4 sm:$0xff]   ;;  %v317_v44 = vpack.c.bf16 %v107_v40, %v100_v39  ;;  %v162_v39 = vld [vmem:[#allocation2 + $0x278] sm:$0xff] }
  0xc7   :  { %1778 = vmatprep.mubr.bf16.mxu0 %v364_v42  ;;  %2550 = vmatprep.mubr.bf16.mxu1 %v364_v42  ;;  %v309_v42 = vpack.c.bf16 %v92_v38, %v85_v37  ;;  %v7442_v37 = vld [vmem:[#allocation5 + $0x508] ss:$16 sps:$4 sm:$0xff]   ;;  %v155_v38 = vld [vmem:[#allocation2 + $0x240] sm:$0xff] }
  0xc8   :  { %1888 = vmatpush1.bf16.msra.mxu0 %v7361_v43  ;;  %2659 = vmatprep.subr.bf16.mxu1 %v7375_v46  ;;  %v7384_v43 = vld [vmem:[#allocation5 + $0x424] ss:$16 sps:$4 sm:$0xff]   ;;  %v170_v40 = vld [vmem:[#allocation2 + $0x2b8] sm:$0xff] }
  0xc9   :  { %1889 = vmatprep.subr.bf16.mxu0 %v7372_v45  ;;  %2660 = vmatpush1.bf16.msra.mxu1 %v7373_v52  ;;  %v7406_v45 = vld [vmem:[#allocation5 + $0x408] ss:$16 sps:$4 sm:$0xff]   ;;  %v99_v46 = vld [vmem:[#allocation2 + $0x80] sm:$0xff] }
  0xca   :  { %2661 = vmatprep.subr.bf16.mxu1 %v7378_v53  ;;  %v7387_v52 = vld [vmem:[#allocation5 + $0x444] ss:$16 sps:$4 sm:$0xff]   ;;  %v7409_v53 = vld [vmem:[#allocation5 + $0x428] ss:$16 sps:$4 sm:$0xff]  }
  0xcc   :  { %1890 = vmatpush1.bf16.msra.mxu0 %v7370_v51  ;;  %v121_v51 = vld [vmem:[#allocation2 + $0x130] sm:$0xff] }
  0xcd   :  { %2052 = vmatprep.subr.bf16.mxu0 %v7381_v54  ;;  %2662 = vmatpush1.bf16.msra.mxu1 %v7376_v57  ;;  %v316_v54 = vpack.c.bf16 %v106_v47, %v99_v46  ;;  %v324_v57 = vpack.c.bf16 %v121_v51, %v114_v50  ;;  %v344_v46 = vpack.c.bf16 %v162_v39, %v155_v38  ;;  %v7421_v47 = vld [vmem:[#allocation5 + $0x540] ss:$16 sps:$4 sm:$0xff]   ;;  %v7432_v50 = vld [vmem:[#allocation5 + $0x564] ss:$16 sps:$4 sm:$0xff]   ;;  %v7451_v51 = vld [vmem:[#allocation5 + $0x548] ss:$16 sps:$4 sm:$0xff]  }
  0xce   :  { %1779 = vmatmul.mubr.bf16.gmra.mrb[32].mxu0 %v363_v55  ;;  %2551 = vmatmul.mubr.bf16.gmra.mrb[32].mxu1 %v363_v55  ;;  %v7385_v55 = vld [vmem:[#allocation5 + $0x440] ss:$16 sps:$4 sm:$0xff]   ;;  %v246_v39 = vld [vmem:[#allocation2 + $0x518] sm:$0xff] }
  0xcf   :  { %1788 = vmatprep.mubr.bf16.mxu0 %v371_v56  ;;  %2560 = vmatprep.mubr.bf16.mxu1 %v371_v56  ;;  %v7417_v56 = vld [vmem:[#allocation5 + $0x44c] ss:$16 sps:$4 sm:$0xff]   ;;  %v239_v38 = vld [vmem:[#allocation2 + $0x4e0] sm:$0xff] }
  0xd0   :  { %2824 = vmatprep.subr.bf16.mxu1 %v7408_v59  ;;  %v7415_v59 = vld [vmem:[#allocation5 + $0x448] ss:$16 sps:$4 sm:$0xff]  }
  0xd6   :  { %1789 = vmatmul.mubr.bf16.gmra.mrb[36].mxu0 %v370_v63  ;;  %2561 = vmatmul.mubr.bf16.gmra.mrb[36].mxu1 %v370_v63  ;;  %v135_v63 = vld [vmem:[#allocation2 + $0x1a0] sm:$0xff] }
  0xd7   :  { %1798 = vmatprep.mubr.bf16.mxu0 %v378_v0  ;;  %2570 = vmatprep.mubr.bf16.mxu1 %v378_v0  ;;  %v7388_v0 = vld [vmem:[#allocation5 + $0x460] ss:$16 sps:$4 sm:$0xff]   ;;  %v331_v7 = vpack.c.bf16 %v135_v63, %v128_v62  ;;  %v7462_v62 = vld [vmem:[#allocation5 + $0x58c] ss:$16 sps:$4 sm:$0xff]  }
  0xde   :  { %1799 = vmatmul.mubr.bf16.gmra.mrb[40].mxu0 %v377_v5  ;;  %2571 = vmatmul.mubr.bf16.gmra.mrb[40].mxu1 %v377_v5  ;;  %v7391_v5 = vld [vmem:[#allocation5 + $0x480] ss:$16 sps:$4 sm:$0xff]  }
  0xdf   :  { %1808 = vmatprep.mubr.bf16.mxu0 %v385_v6  ;;  %2580 = vmatprep.mubr.bf16.mxu1 %v385_v6  ;;  %v7426_v6 = vld [vmem:[#allocation5 + $0x48c] ss:$16 sps:$4 sm:$0xff]  }
  0xe6   :  { %1809 = vmatmul.mubr.bf16.gmra.mrb[44].mxu0 %v384_v11  ;;  %2581 = vmatmul.mubr.bf16.gmra.mrb[44].mxu1 %v384_v11  ;;  %v134_v11 = vld [vmem:[#allocation2 + $0x198] sm:$0xff] }
  0xe7   :  { %1818 = vmatprep.mubr.bf16.mxu0 %v392_v12  ;;  %2590 = vmatprep.mubr.bf16.mxu1 %v392_v12  ;;  %v142_v12 = vld [vmem:[#allocation2 + $0x1d8] sm:$0xff] }
  0xe8   :  { %v338_v21 = vpack.c.bf16 %v149_v13, %v142_v12  ;;  %v7457_v12 = vld [vmem:[#allocation5 + $0x5c0] ss:$16 sps:$4 sm:$0xff]   ;;  %v7471_v13 = vld [vmem:[#allocation5 + $0x5cc] ss:$16 sps:$4 sm:$0xff]  }
  0xee   :  { %1819 = vmatmul.mubr.bf16.gmra.mrb[48].mxu0 %v391_v17  ;;  %2591 = vmatmul.mubr.bf16.gmra.mrb[48].mxu1 %v391_v17  ;;  %v7427_v17 = vld [vmem:[#allocation5 + $0x4a8] ss:$16 sps:$4 sm:$0xff]  }
  0xef   :  { %1828 = vmatprep.mubr.bf16.mxu0 %v399_v18  ;;  %2600 = vmatprep.mubr.bf16.mxu1 %v399_v18  ;;  %v330_v18 = vpack.c.bf16 %v134_v11, %v127_v10 }
  0xf6   :  { %1829 = vmatmul.mubr.bf16.gmra.mrb[52].mxu0 %v398_v23  ;;  %2601 = vmatmul.mubr.bf16.gmra.mrb[52].mxu1 %v398_v23  ;;  %v7433_v23 = vld [vmem:[#allocation5 + $0x4c8] ss:$16 sps:$4 sm:$0xff]  }
  0xf7   :  { %1838 = vmatprep.mubr.bf16.mxu0 %v406_v24  ;;  %2610 = vmatprep.mubr.bf16.mxu1 %v406_v24  ;;  %v141_v24 = vld [vmem:[#allocation2 + $0x1d0] sm:$0xff] }
  0xf8   :  { %v337_v32 = vpack.c.bf16 %v148_v25, %v141_v24 }
  0xfe   :  { %1839 = vmatmul.mubr.bf16.gmra.mrb[56].mxu0 %v405_v29  ;;  %2611 = vmatmul.mubr.bf16.gmra.mrb[56].mxu1 %v405_v29  ;;  %v7438_v29 = vld [vmem:[#allocation5 + $0x4ec] ss:$16 sps:$4 sm:$0xff]  }
  0xff   :  { %1848 = vmatprep.mubr.bf16.mxu0 %v413_v30  ;;  %2620 = vmatprep.mubr.bf16.mxu1 %v413_v30  ;;  %v7405_v30 = vld [vmem:[#allocation5 + $0x504] ss:$16 sps:$4 sm:$0xff]  }
 0x106   :  { %1849 = vmatmul.mubr.bf16.gmra.mrb[60].mxu0 %v412_v35  ;;  %2621 = vmatmul.mubr.bf16.gmra.mrb[60].mxu1 %v412_v35  ;;  %v345_v35 = vpack.c.bf16 %v163_v27, %v156_v26  ;;  %v211_v26 = vld [vmem:[#allocation2 + $0x400] sm:$0xff]  ;;  %v218_v27 = vld [vmem:[#allocation2 + $0x438] sm:$0xff] }
 0x107   :  { %1891 = vmatprep.mubr.bf16.mxu0 %v310_v36  ;;  %2663 = vmatprep.mubr.bf16.mxu1 %v310_v36  ;;  %v7414_v36 = vld [vmem:[#allocation5 + $0x524] ss:$16 sps:$4 sm:$0xff]  }
 0x10e   :  { %1892 = vmatmul.mubr.bf16.vlgmr.msra.gmra.mrb[0].mxu0 %v309_v42  ;;  %2664 = vmatmul.mubr.bf16.vlgmr.msra.gmra.mrb[0].mxu1 %v309_v42  ;;  %v7412_v42 = vld [vmem:[#allocation5 + $0x520] ss:$16 sps:$4 sm:$0xff]  }
 0x10f   :  { %2053 = vmatpush1.bf16.msra.mxu0 %v7379_v41  ;;  %1901 = vmatprep.mubr.bf16.mxu0 %v317_v44  ;;  %v177_v41 = vld [vmem:[#allocation2 + $0x2f0] sm:$0xff] }
 0x110   :  { %2673 = vmatprep.mubr.bf16.mxu1 %v317_v44  ;;  %2054 = vmatprep.subr.bf16.mxu0 %v7384_v43  ;;  %v7447_v43 = vld [vmem:[#allocation5 + $0x52c] ss:$16 sps:$4 sm:$0xff]   ;;  %v7423_v44 = vld [vmem:[#allocation5 + $0x544] ss:$16 sps:$4 sm:$0xff]  }
 0x111   :  { %2825 = vmatpush1.bf16.msra.mxu1 %v7406_v45  ;;  %v7445_v45 = vld [vmem:[#allocation5 + $0x528] ss:$16 sps:$4 sm:$0xff]  }
 0x112   :  { %2826 = vmatprep.subr.bf16.mxu1 %v7411_v49  ;;  %v352_v49 = vpack.c.bf16 %v177_v41, %v170_v40  ;;  %v254_v40 = vld [vmem:[#allocation2 + $0x558] sm:$0xff]  ;;  %v261_v41 = vld [vmem:[#allocation2 + $0x590] sm:$0xff] }
 0x113   :  { %2055 = vmatpush1.bf16.msra.mxu0 %v7382_v48  ;;  %v7453_v48 = vld [vmem:[#allocation5 + $0x54c] ss:$16 sps:$4 sm:$0xff]  }
 0x114   :  { %2056 = vmatprep.subr.bf16.mxu0 %v7387_v52  ;;  %v169_v52 = vld [vmem:[#allocation2 + $0x2b0] sm:$0xff] }
 0x115   :  { %2827 = vmatpush1.bf16.msra.mxu1 %v7409_v53  ;;  %v176_v53 = vld [vmem:[#allocation2 + $0x2e8] sm:$0xff] }
 0x116   :  { %1902 = vmatmul.mubr.bf16.gmra.mrb[4].mxu0 %v316_v54  ;;  %2674 = vmatmul.mubr.bf16.gmra.mrb[4].mxu1 %v316_v54  ;;  %v184_v54 = vld [vmem:[#allocation2 + $0x328] sm:$0xff]  ;;  %v351_v60 = vpack.c.bf16 %v176_v53, %v169_v52  ;;  %v274_v52 = vld [vmem:[#allocation2 + $0x5f8] sm:$0xff] }
 0x117   :  { %1911 = vmatprep.mubr.bf16.mxu0 %v324_v57  ;;  %2683 = vmatprep.mubr.bf16.mxu1 %v324_v57  ;;  %v7456_v57 = vld [vmem:[#allocation5 + $0x56c] ss:$16 sps:$4 sm:$0xff]  }
 0x118   :  { %2057 = vmatpush1.bf16.msra.mxu0 %v7385_v55  ;;  %2828 = vmatprep.subr.bf16.mxu1 %v7417_v56  ;;  %v191_v55 = vld [vmem:[#allocation2 + $0x360] sm:$0xff]  ;;  %v282_v53 = vld [vmem:[#allocation2 + $0x638] sm:$0xff] }
 0x119   :  { %2058 = vmatprep.subr.bf16.mxu0 %v7390_v58  ;;  %2829 = vmatpush1.bf16.msra.mxu1 %v7415_v59  ;;  %v7430_v56 = vld [vmem:[#allocation5 + $0x560] ss:$16 sps:$4 sm:$0xff]   ;;  %v7441_v58 = vld [vmem:[#allocation5 + $0x584] ss:$16 sps:$4 sm:$0xff]   ;;  %v7454_v59 = vld [vmem:[#allocation5 + $0x568] ss:$16 sps:$4 sm:$0xff]   ;;  %v359_v63 = vpack.c.bf16 %v191_v55, %v184_v54 }
 0x11a   :  { %2830 = vmatprep.subr.bf16.mxu1 %v7420_v1  ;;  %v7460_v1 = vld [vmem:[#allocation5 + $0x588] ss:$16 sps:$4 sm:$0xff]   ;;  %v289_v54 = vld [vmem:[#allocation2 + $0x670] sm:$0xff] }
 0x11c   :  { %2059 = vmatpush1.bf16.msra.mxu0 %v7388_v0  ;;  %v7450_v0 = vld [vmem:[#allocation5 + $0x5a4] ss:$16 sps:$4 sm:$0xff]  }
 0x11d   :  { %2060 = vmatprep.subr.bf16.mxu0 %v7393_v2  ;;  %2831 = vmatpush1.bf16.msra.mxu1 %v7418_v3  ;;  %v183_v2 = vld [vmem:[#allocation2 + $0x320] sm:$0xff]  ;;  %v190_v3 = vld [vmem:[#allocation2 + $0x358] sm:$0xff] }
 0x11e   :  { %1912 = vmatmul.mubr.bf16.gmra.mrb[8].mxu0 %v323_v4  ;;  %2684 = vmatmul.mubr.bf16.gmra.mrb[8].mxu1 %v323_v4  ;;  %v198_v4 = vld [vmem:[#allocation2 + $0x398] sm:$0xff]  ;;  %v358_v10 = vpack.c.bf16 %v190_v3, %v183_v2  ;;  %v95_v2 = vld [vmem:[#allocation2 + $0x60] sm:$0xff] }
 0x11f   :  { %1921 = vmatprep.mubr.bf16.mxu0 %v331_v7  ;;  %2693 = vmatprep.mubr.bf16.mxu1 %v331_v7  ;;  %v7465_v7 = vld [vmem:[#allocation5 + $0x5ac] ss:$16 sps:$4 sm:$0xff]  }
 0x120   :  { %2061 = vmatpush1.bf16.msra.mxu0 %v7391_v5  ;;  %2832 = vmatprep.subr.bf16.mxu1 %v7426_v6  ;;  %v205_v5 = vld [vmem:[#allocation2 + $0x3d0] sm:$0xff] }
 0x121   :  { %2062 = vmatprep.subr.bf16.mxu0 %v7396_v8  ;;  %2833 = vmatpush1.bf16.msra.mxu1 %v7424_v9  ;;  %v7448_v6 = vld [vmem:[#allocation5 + $0x5a0] ss:$16 sps:$4 sm:$0xff]   ;;  %v7459_v8 = vld [vmem:[#allocation5 + $0x5c4] ss:$16 sps:$4 sm:$0xff]   ;;  %v7463_v9 = vld [vmem:[#allocation5 + $0x5a8] ss:$16 sps:$4 sm:$0xff]   ;;  %v366_v11 = vpack.c.bf16 %v205_v5, %v198_v4 }
 0x122   :  { %2834 = vmatprep.subr.bf16.mxu1 %v7429_v15  ;;  %v7469_v15 = vld [vmem:[#allocation5 + $0x5c8] ss:$16 sps:$4 sm:$0xff]   ;;  %v87_v5 = vld [vmem:[#allocation2 + $0x20] sm:$0xff] }
 0x124   :  { %2063 = vmatpush1.bf16.msra.mxu0 %v7394_v14  ;;  %v7468_v14 = vld [vmem:[#allocation5 + $0x5e4] ss:$16 sps:$4 sm:$0xff]  }
 0x125   :  { %2064 = vmatprep.subr.bf16.mxu0 %v7399_v16  ;;  %2835 = vmatpush1.bf16.msra.mxu1 %v7427_v17  ;;  %v7474_v16 = vld [vmem:[#allocation5 + $0x5ec] ss:$16 sps:$4 sm:$0xff]   ;;  %v197_v17 = vld [vmem:[#allocation2 + $0x390] sm:$0xff] }
 0x126   :  { %1922 = vmatmul.mubr.bf16.gmra.mrb[12].mxu0 %v330_v18  ;;  %2694 = vmatmul.mubr.bf16.gmra.mrb[12].mxu1 %v330_v18  ;;  %v204_v18 = vld [vmem:[#allocation2 + $0x3c8] sm:$0xff] }
 0x127   :  { %1931 = vmatprep.mubr.bf16.mxu0 %v338_v21  ;;  %2703 = vmatprep.mubr.bf16.mxu1 %v338_v21  ;;  %v7466_v21 = vld [vmem:[#allocation5 + $0x5e0] ss:$16 sps:$4 sm:$0xff]   ;;  %v365_v24 = vpack.c.bf16 %v204_v18, %v197_v17 }
 0x128   :  { %2065 = vmatpush1.bf16.msra.mxu0 %v7397_v19  ;;  %2836 = vmatprep.subr.bf16.mxu1 %v7435_v20  ;;  %v212_v19 = vld [vmem:[#allocation2 + $0x408] sm:$0xff]  ;;  %v219_v20 = vld [vmem:[#allocation2 + $0x440] sm:$0xff] }
 0x129   :  { %2066 = vmatprep.subr.bf16.mxu0 %v7402_v22  ;;  %2837 = vmatpush1.bf16.msra.mxu1 %v7433_v23  ;;  %v7472_v22 = vld [vmem:[#allocation5 + $0x5e8] ss:$16 sps:$4 sm:$0xff]   ;;  %v7477_v23 = vld [vmem:[#allocation5 + $0x604] ss:$16 sps:$4 sm:$0xff]   ;;  %v373_v25 = vpack.c.bf16 %v219_v20, %v212_v19 }
 0x12a   :  { %2838 = vmatprep.subr.bf16.mxu1 %v7438_v29  ;;  %v233_v29 = vld [vmem:[#allocation2 + $0x4b0] sm:$0xff]  ;;  %v115_v19 = vld [vmem:[#allocation2 + $0x100] sm:$0xff]  ;;  %v122_v20 = vld [vmem:[#allocation2 + $0x138] sm:$0xff] }
 0x12c   :  { %2067 = vmatpush1.bf16.msra.mxu0 %v7400_v28  ;;  %v226_v28 = vld [vmem:[#allocation2 + $0x478] sm:$0xff] }
 0x12d   :  { %2068 = vmatprep.subr.bf16.mxu0 %v7405_v30  ;;  %2839 = vmatpush1.bf16.msra.mxu1 %v7436_v31  ;;  %v372_v30 = vpack.c.bf16 %v218_v27, %v211_v26  ;;  %v380_v31 = vpack.c.bf16 %v233_v29, %v226_v28  ;;  %v136_v26 = vld [vmem:[#allocation2 + $0x1a8] sm:$0xff]  ;;  %v151_v28 = vld [vmem:[#allocation2 + $0x220] sm:$0xff] }
 0x12e   :  { %1932 = vmatmul.mubr.bf16.gmra.mrb[16].mxu0 %v337_v32  ;;  %2704 = vmatmul.mubr.bf16.gmra.mrb[16].mxu1 %v337_v32  ;;  %v225_v32 = vld [vmem:[#allocation2 + $0x470] sm:$0xff]  ;;  %v144_v27 = vld [vmem:[#allocation2 + $0x1e8] sm:$0xff] }
 0x12f   :  { %1941 = vmatprep.mubr.bf16.mxu0 %v345_v35  ;;  %2713 = vmatprep.mubr.bf16.mxu1 %v345_v35  ;;  %v247_v35 = vld [vmem:[#allocation2 + $0x520] sm:$0xff] }
 0x130   :  { %2069 = vmatpush1.bf16.msra.mxu0 %v7403_v33  ;;  %2840 = vmatprep.subr.bf16.mxu1 %v7444_v34  ;;  %v232_v33 = vld [vmem:[#allocation2 + $0x4a8] sm:$0xff] }
 0x131   :  { %2070 = vmatprep.subr.bf16.mxu0 %v7414_v36  ;;  %2841 = vmatpush1.bf16.msra.mxu1 %v7442_v37  ;;  %v240_v34 = vld [vmem:[#allocation2 + $0x4e8] sm:$0xff]  ;;  %v379_v36 = vpack.c.bf16 %v232_v33, %v225_v32  ;;  %v150_v32 = vld [vmem:[#allocation2 + $0x218] sm:$0xff] }
 0x132   :  { %2842 = vmatprep.subr.bf16.mxu1 %v7447_v43  ;;  %v387_v37 = vpack.c.bf16 %v247_v35, %v240_v34  ;;  %v394_v43 = vpack.c.bf16 %v261_v41, %v254_v40  ;;  %v158_v33 = vld [vmem:[#allocation2 + $0x258] sm:$0xff]  ;;  %v165_v34 = vld [vmem:[#allocation2 + $0x290] sm:$0xff]  ;;  %v179_v40 = vld [vmem:[#allocation2 + $0x300] sm:$0xff] }
 0x134   :  { %2071 = vmatpush1.bf16.msra.mxu0 %v7412_v42  ;;  %v386_v42 = vpack.c.bf16 %v246_v39, %v239_v38  ;;  %v164_v38 = vld [vmem:[#allocation2 + $0x288] sm:$0xff] }
 0x135   :  { %2072 = vmatprep.subr.bf16.mxu0 %v7423_v44  ;;  %2843 = vmatpush1.bf16.msra.mxu1 %v7445_v45  ;;  %v253_v44 = vld [vmem:[#allocation2 + $0x550] sm:$0xff]  ;;  %v260_v45 = vld [vmem:[#allocation2 + $0x588] sm:$0xff] }
 0x136   :  { %1942 = vmatmul.mubr.bf16.gmra.mrb[20].mxu0 %v344_v46  ;;  %2714 = vmatmul.mubr.bf16.gmra.mrb[20].mxu1 %v344_v46  ;;  %v268_v46 = vld [vmem:[#allocation2 + $0x5c8] sm:$0xff] }
 0x137   :  { %1951 = vmatprep.mubr.bf16.mxu0 %v352_v49  ;;  %2723 = vmatprep.mubr.bf16.mxu1 %v352_v49  ;;  %v172_v39 = vld [vmem:[#allocation2 + $0x2c8] sm:$0xff] }
 0x138   :  { %2073 = vmatpush1.bf16.msra.mxu0 %v7421_v47  ;;  %2844 = vmatprep.subr.bf16.mxu1 %v7453_v48  ;;  %v275_v47 = vld [vmem:[#allocation2 + $0x600] sm:$0xff]  ;;  %v393_v48 = vpack.c.bf16 %v260_v45, %v253_v44  ;;  %v178_v44 = vld [vmem:[#allocation2 + $0x2f8] sm:$0xff] }
 0x139   :  { %2074 = vmatprep.subr.bf16.mxu0 %v7432_v50  ;;  %2845 = vmatpush1.bf16.msra.mxu1 %v7451_v51  ;;  %v401_v49 = vpack.c.bf16 %v275_v47, %v268_v46  ;;  %v7480_v50 = vld [vmem:[#allocation5 + $0x60c] ss:$16 sps:$4 sm:$0xff]   ;;  %v267_v51 = vld [vmem:[#allocation2 + $0x5c0] sm:$0xff]  ;;  %v193_v46 = vld [vmem:[#allocation2 + $0x370] sm:$0xff] }
 0x13a   :  { %2846 = vmatprep.subr.bf16.mxu1 %v7456_v57  ;;  %v400_v55 = vpack.c.bf16 %v274_v52, %v267_v51  ;;  %v281_v57 = vld [vmem:[#allocation2 + $0x630] sm:$0xff]  ;;  %v186_v45 = vld [vmem:[#allocation2 + $0x338] sm:$0xff]  ;;  %v200_v51 = vld [vmem:[#allocation2 + $0x3a8] sm:$0xff] }
 0x13b   :  { %v207_v52 = vld [vmem:[#allocation2 + $0x3e0] sm:$0xff] }
 0x13c   :  { %2075 = vmatpush1.bf16.msra.mxu0 %v7430_v56  ;;  %v408_v56 = vpack.c.bf16 %v289_v54, %v282_v53  ;;  %v368_v54 = vpack.c.bf16 %v207_v52, %v200_v51  ;;  %v7498_v51 = vld [vmem:[#allocation7 + $0x4c] ss:$16 sps:$4 sm:$0xff]  }
 0x13d   :  { %2076 = vmatprep.subr.bf16.mxu0 %v7441_v58  ;;  %2847 = vmatpush1.bf16.msra.mxu1 %v7454_v59  ;;  %v288_v58 = vld [vmem:[#allocation2 + $0x668] sm:$0xff] }
 0x13e   :  { %1952 = vmatmul.mubr.bf16.gmra.mrb[24].mxu0 %v351_v60  ;;  %2724 = vmatmul.mubr.bf16.gmra.mrb[24].mxu1 %v351_v60  ;;  %v296_v59 = vld [vmem:[#allocation2 + $0x6a8] sm:$0xff]  ;;  %v303_v60 = vld [vmem:[#allocation2 + $0x6e0] sm:$0xff] }
 0x13f   :  { %1961 = vmatprep.mubr.bf16.mxu0 %v359_v63  ;;  %2733 = vmatprep.mubr.bf16.mxu1 %v359_v63  ;;  %v295_v63 = vld [vmem:[#allocation2 + $0x6a0] sm:$0xff] }
 0x140   :  { %2077 = vmatpush1.bf16.msra.mxu0 %v7439_v61  ;;  %2848 = vmatprep.subr.bf16.mxu1 %v7462_v62  ;;  %v407_v61 = vpack.c.bf16 %v288_v58, %v281_v57  ;;  %v415_v62 = vpack.c.bf16 %v303_v60, %v296_v59  ;;  %v214_v57 = vld [vmem:[#allocation2 + $0x418] sm:$0xff]  ;;  %v221_v58 = vld [vmem:[#allocation2 + $0x450] sm:$0xff] }
 0x141   :  { %2078 = vmatprep.subr.bf16.mxu0 %v7450_v0  ;;  %2849 = vmatpush1.bf16.msra.mxu1 %v7460_v1  ;;  %v302_v0 = vld [vmem:[#allocation2 + $0x6d8] sm:$0xff]  ;;  %v88_v1 = vld [vmem:[#allocation2 + $0x28] sm:$0xff]  ;;  %v375_v60 = vpack.c.bf16 %v221_v58, %v214_v57  ;;  %v117_v57 = vld [vmem:[#allocation2 + $0x110] sm:$0xff] }
 0x142   :  { %2850 = vmatprep.subr.bf16.mxu1 %v7465_v7  ;;  %v414_v3 = vpack.c.bf16 %v302_v0, %v295_v63  ;;  %v312_v4 = vpack.c.bf16 %v95_v2, %v88_v1  ;;  %v102_v7 = vld [vmem:[#allocation2 + $0x98] sm:$0xff]  ;;  %v228_v63 = vld [vmem:[#allocation2 + $0x488] sm:$0xff]  ;;  %v235_v0 = vld [vmem:[#allocation2 + $0x4c0] sm:$0xff] }
 0x143   :  { %v382_v2 = vpack.c.bf16 %v235_v0, %v228_v63  ;;  %v124_v58 = vld [vmem:[#allocation2 + $0x148] sm:$0xff]  ;;  %v7505_v0 = vld [vmem:[#allocation7 + $0x80] ss:$16 sps:$4 sm:$0xff]  }
 0x144   :  { %2079 = vmatpush1.bf16.msra.mxu0 %v7448_v6  ;;  %v94_v6 = vld [vmem:[#allocation2 + $0x58] sm:$0xff]  ;;  %v327_v63 = vpack.c.bf16 %v124_v58, %v117_v57  ;;  %v201_v58 = vld [vmem:[#allocation2 + $0x3b0] sm:$0xff] }
 0x145   :  { %2080 = vmatprep.subr.bf16.mxu0 %v7459_v8  ;;  %2851 = vmatpush1.bf16.msra.mxu1 %v7463_v9  ;;  %v109_v8 = vld [vmem:[#allocation2 + $0xd0] sm:$0xff]  ;;  %v311_v9 = vpack.c.bf16 %v94_v6, %v87_v5  ;;  %v242_v5 = vld [vmem:[#allocation2 + $0x4f8] sm:$0xff] }
 0x146   :  { %1962 = vmatmul.mubr.bf16.gmra.mrb[28].mxu0 %v358_v10  ;;  %2734 = vmatmul.mubr.bf16.gmra.mrb[28].mxu1 %v358_v10  ;;  %v7475_v10 = vld [vmem:[#allocation5 + $0x600] ss:$16 sps:$4 sm:$0xff]   ;;  %v7568_v57 = vld [vmem:[#allocation7 + $0x1c8] ss:$16 sps:$4 sm:$0xff]  }
 0x147   :  { %1971 = vmatprep.mubr.bf16.mxu0 %v366_v11  ;;  %2743 = vmatprep.mubr.bf16.mxu1 %v366_v11  ;;  %v319_v11 = vpack.c.bf16 %v109_v8, %v102_v7  ;;  %v249_v6 = vld [vmem:[#allocation2 + $0x530] sm:$0xff] }
 0x148   :  { %2081 = vmatpush1.bf16.msra.mxu0 %v7457_v12  ;;  %2852 = vmatprep.subr.bf16.mxu1 %v7471_v13  ;;  %v7478_v12 = vld [vmem:[#allocation5 + $0x608] ss:$16 sps:$4 sm:$0xff]   ;;  %v101_v13 = vld [vmem:[#allocation2 + $0x90] sm:$0xff]  ;;  %v389_v8 = vpack.c.bf16 %v249_v6, %v242_v5 }
 0x149   :  { %2082 = vmatprep.subr.bf16.mxu0 %v7468_v14  ;;  %2853 = vmatpush1.bf16.msra.mxu1 %v7469_v15  ;;  %v108_v14 = vld [vmem:[#allocation2 + $0xc8] sm:$0xff]  ;;  %v138_v5 = vld [vmem:[#allocation2 + $0x1b8] sm:$0xff]  ;;  %v7511_v6 = vld [vmem:[#allocation7 + $0xa0] ss:$16 sps:$4 sm:$0xff]  }
 0x14a   :  { %2854 = vmatprep.subr.bf16.mxu1 %v7474_v16  ;;  %v116_v15 = vld [vmem:[#allocation2 + $0x108] sm:$0xff]  ;;  %v123_v16 = vld [vmem:[#allocation2 + $0x140] sm:$0xff]  ;;  %v318_v17 = vpack.c.bf16 %v108_v14, %v101_v13 }
 0x14b   :  { %v326_v18 = vpack.c.bf16 %v123_v16, %v116_v15  ;;  %v7483_v15 = vld [vmem:[#allocation7 + $0x4] ss:$16 sps:$4 sm:$0xff]  }
 0x14c   :  { %2083 = vmatpush1.bf16.msra.mxu0 %v7466_v21  ;;  %v130_v21 = vld [vmem:[#allocation2 + $0x178] sm:$0xff]  ;;  %v255_v16 = vld [vmem:[#allocation2 + $0x560] sm:$0xff] }
 0x14d   :  { %2855 = vmatpush1.bf16.msra.mxu1 %v7472_v22  ;;  %2245 = vmatprep.subr.bf16.mxu0 %v7477_v23  ;;  %v137_v22 = vld [vmem:[#allocation2 + $0x1b0] sm:$0xff]  ;;  %v325_v23 = vpack.c.bf16 %v122_v20, %v115_v19 }
 0x14e   :  { %1972 = vmatmul.mubr.bf16.gmra.mrb[32].mxu0 %v365_v24  ;;  %2744 = vmatmul.mubr.bf16.gmra.mrb[32].mxu1 %v365_v24  ;;  %v333_v24 = vpack.c.bf16 %v137_v22, %v130_v21  ;;  %v277_v19 = vld [vmem:[#allocation2 + $0x610] sm:$0xff]  ;;  %v7486_v22 = vld [vmem:[#allocation7 + $0xc] ss:$16 sps:$4 sm:$0xff]  }
 0x14f   :  { %1981 = vmatprep.mubr.bf16.mxu0 %v373_v25  ;;  %2753 = vmatprep.mubr.bf16.mxu1 %v373_v25  ;;  %v129_v25 = vld [vmem:[#allocation2 + $0x170] sm:$0xff] }
 0x150   :  { %3017 = vmatprep.subr.bf16.mxu1 %v7480_v50  ;;  %v332_v29 = vpack.c.bf16 %v136_v26, %v129_v25  ;;  %v192_v50 = vld [vmem:[#allocation2 + $0x368] sm:$0xff]  ;;  %v291_v26 = vld [vmem:[#allocation2 + $0x680] sm:$0xff] }
 0x151   :  { %v284_v25 = vld [vmem:[#allocation2 + $0x648] sm:$0xff] }
 0x156   :  { %1982 = vmatmul.mubr.bf16.gmra.mrb[36].mxu0 %v372_v30  ;;  %2754 = vmatmul.mubr.bf16.gmra.mrb[36].mxu1 %v372_v30  ;;  %v340_v30 = vpack.c.bf16 %v151_v28, %v144_v27  ;;  %v410_v28 = vpack.c.bf16 %v291_v26, %v284_v25  ;;  %v7540_v25 = vld [vmem:[#allocation7 + $0x12c] ss:$16 sps:$4 sm:$0xff]   ;;  %v159_v26 = vld [vmem:[#allocation2 + $0x260] sm:$0xff] }
 0x157   :  { %1991 = vmatprep.mubr.bf16.mxu0 %v380_v31  ;;  %2763 = vmatprep.mubr.bf16.mxu1 %v380_v31  ;;  %v143_v31 = vld [vmem:[#allocation2 + $0x1e0] sm:$0xff] }
 0x158   :  { %v339_v35 = vpack.c.bf16 %v150_v32, %v143_v31  ;;  %v298_v31 = vld [vmem:[#allocation2 + $0x6b8] sm:$0xff]  ;;  %v305_v32 = vld [vmem:[#allocation2 + $0x6f0] sm:$0xff] }
 0x15e   :  { %1992 = vmatmul.mubr.bf16.gmra.mrb[40].mxu0 %v379_v36  ;;  %2764 = vmatmul.mubr.bf16.gmra.mrb[40].mxu1 %v379_v36  ;;  %v347_v36 = vpack.c.bf16 %v165_v34, %v158_v33  ;;  %v417_v34 = vpack.c.bf16 %v305_v32, %v298_v31  ;;  %v7546_v31 = vld [vmem:[#allocation7 + $0x14c] ss:$16 sps:$4 sm:$0xff]  }
 0x15f   :  { %2001 = vmatprep.mubr.bf16.mxu0 %v387_v37  ;;  %2773 = vmatprep.mubr.bf16.mxu1 %v387_v37  ;;  %v157_v37 = vld [vmem:[#allocation2 + $0x250] sm:$0xff] }
 0x160   :  { %v346_v41 = vpack.c.bf16 %v164_v38, %v157_v37  ;;  %v7833_v38 = vmov 0  }
 0x166   :  { %2002 = vmatmul.mubr.bf16.gmra.mrb[44].mxu0 %v386_v42  ;;  %2774 = vmatmul.mubr.bf16.gmra.mrb[44].mxu1 %v386_v42  ;;  %v354_v42 = vpack.c.bf16 %v179_v40, %v172_v39  ;;  %v89_v39 = vld [vmem:[#allocation2 + $0x30] sm:$0xff]  ;;  %v96_v40 = vld [vmem:[#allocation2 + $0x68] sm:$0xff] }
 0x167   :  { %2011 = vmatprep.mubr.bf16.mxu0 %v394_v43  ;;  %2783 = vmatprep.mubr.bf16.mxu1 %v394_v43  ;;  %v171_v43 = vld [vmem:[#allocation2 + $0x2c0] sm:$0xff] }
 0x168   :  { %v353_v47 = vpack.c.bf16 %v178_v44, %v171_v43  ;;  %v7484_v43 = vld [vmem:[#allocation7 + $0x8] ss:$16 sps:$4 sm:$0xff]   ;;  %v7489_v44 = vld [vmem:[#allocation7 + $0x24] ss:$16 sps:$4 sm:$0xff]  }
 0x16e   :  { %2012 = vmatmul.mubr.bf16.gmra.mrb[48].mxu0 %v393_v48  ;;  %2784 = vmatmul.mubr.bf16.gmra.mrb[48].mxu1 %v393_v48  ;;  %v361_v48 = vpack.c.bf16 %v193_v46, %v186_v45  ;;  %v7492_v45 = vld [vmem:[#allocation7 + $0x2c] ss:$16 sps:$4 sm:$0xff]   ;;  %v103_v46 = vld [vmem:[#allocation2 + $0xa0] sm:$0xff] }
 0x16f   :  { %2021 = vmatprep.mubr.bf16.mxu0 %v401_v49  ;;  %2793 = vmatprep.mubr.bf16.mxu1 %v401_v49  ;;  %v185_v49 = vld [vmem:[#allocation2 + $0x330] sm:$0xff] }
 0x170   :  { %v360_v53 = vpack.c.bf16 %v192_v50, %v185_v49  ;;  %v7490_v49 = vld [vmem:[#allocation7 + $0x28] ss:$16 sps:$4 sm:$0xff]   ;;  %v7495_v50 = vld [vmem:[#allocation7 + $0x44] ss:$16 sps:$4 sm:$0xff]  }
 0x176   :  { %2022 = vmatmul.mubr.bf16.gmra.mrb[52].mxu0 %v400_v55  ;;  %2794 = vmatmul.mubr.bf16.gmra.mrb[52].mxu1 %v400_v55  ;;  %v199_v55 = vld [vmem:[#allocation2 + $0x3a0] sm:$0xff] }
 0x177   :  { %2031 = vmatprep.mubr.bf16.mxu0 %v408_v56  ;;  %2803 = vmatprep.mubr.bf16.mxu1 %v408_v56  ;;  %v206_v56 = vld [vmem:[#allocation2 + $0x3d8] sm:$0xff] }
 0x178   :  { %v367_v59 = vpack.c.bf16 %v206_v56, %v199_v55  ;;  %v7501_v55 = vld [vmem:[#allocation7 + $0x64] ss:$16 sps:$4 sm:$0xff]   ;;  %v7504_v56 = vld [vmem:[#allocation7 + $0x6c] ss:$16 sps:$4 sm:$0xff]  }
 0x17e   :  { %2032 = vmatmul.mubr.bf16.gmra.mrb[56].mxu0 %v407_v61  ;;  %2804 = vmatmul.mubr.bf16.gmra.mrb[56].mxu1 %v407_v61  ;;  %v213_v61 = vld [vmem:[#allocation2 + $0x410] sm:$0xff] }
 0x17f   :  { %2041 = vmatprep.mubr.bf16.mxu0 %v415_v62  ;;  %2813 = vmatprep.mubr.bf16.mxu1 %v415_v62  ;;  %v220_v62 = vld [vmem:[#allocation2 + $0x448] sm:$0xff] }
 0x180   :  { %v374_v1 = vpack.c.bf16 %v220_v62, %v213_v61  ;;  %v7507_v61 = vld [vmem:[#allocation7 + $0x84] ss:$16 sps:$4 sm:$0xff]   ;;  %v7510_v62 = vld [vmem:[#allocation7 + $0x8c] ss:$16 sps:$4 sm:$0xff]  }
 0x186   :  { %2042 = vmatmul.mubr.bf16.gmra.mrb[60].mxu0 %v414_v3  ;;  %2814 = vmatmul.mubr.bf16.gmra.mrb[60].mxu1 %v414_v3  ;;  %v227_v3 = vld [vmem:[#allocation2 + $0x480] sm:$0xff] }
 0x187   :  { %2084 = vmatprep.mubr.bf16.mxu0 %v312_v4  ;;  %2856 = vmatprep.mubr.bf16.mxu1 %v312_v4  ;;  %v234_v4 = vld [vmem:[#allocation2 + $0x4b8] sm:$0xff] }
 0x188   :  { %v381_v7 = vpack.c.bf16 %v234_v4, %v227_v3  ;;  %v7516_v3 = vld [vmem:[#allocation7 + $0xac] ss:$16 sps:$4 sm:$0xff]   ;;  %v131_v4 = vld [vmem:[#allocation2 + $0x180] sm:$0xff] }
 0x18e   :  { %2085 = vmatmul.mubr.bf16.vlgmr.msra.gmra.mrb[0].mxu0 %v311_v9  ;;  %2857 = vmatmul.mubr.bf16.vlgmr.msra.gmra.mrb[0].mxu1 %v311_v9  ;;  %v241_v9 = vld [vmem:[#allocation2 + $0x4f0] sm:$0xff] }
 0x18f   :  { %2246 = vmatpush1.bf16.msra.mxu0 %v7475_v10  ;;  %2094 = vmatprep.mubr.bf16.mxu0 %v319_v11  ;;  %v248_v10 = vld [vmem:[#allocation2 + $0x528] sm:$0xff] }
 0x190   :  { %2866 = vmatprep.mubr.bf16.mxu1 %v319_v11  ;;  %3018 = vmatpush1.bf16.msra.mxu1 %v7478_v12  ;;  %v256_v11 = vld [vmem:[#allocation2 + $0x568] sm:$0xff]  ;;  %v263_v12 = vld [vmem:[#allocation2 + $0x5a0] sm:$0xff]  ;;  %v388_v13 = vpack.c.bf16 %v248_v10, %v241_v9  ;;  %v334_v10 = vpack.c.bf16 %v138_v5, %v131_v4  ;;  %v250_v4 = vld [vmem:[#allocation2 + $0x538] sm:$0xff] }
 0x191   :  { %v396_v14 = vpack.c.bf16 %v263_v12, %v256_v11  ;;  %4192 = vmatprep.subr.bf16.mxu0 %v7483_v15  ;;  %4578 = vmatprep.subr.bf16.mxu1 %v7486_v22  ;;  %v7522_v9 = vld [vmem:[#allocation7 + $0xcc] ss:$16 sps:$4 sm:$0xff]   ;;  %v7517_v11 = vld [vmem:[#allocation7 + $0xc0] ss:$16 sps:$4 sm:$0xff]   ;;  %v7520_v12 = vld [vmem:[#allocation7 + $0xc8] ss:$16 sps:$4 sm:$0xff]  }
 0x192   :  { %v145_v15 = vld [vmem:[#allocation2 + $0x1f0] sm:$0xff] }
 0x193   :  { %v7529_v22 = vld [vmem:[#allocation7 + $0x100] ss:$16 sps:$4 sm:$0xff]  }
 0x196   :  { %2095 = vmatmul.mubr.bf16.gmra.mrb[4].mxu0 %v318_v17  ;;  %2867 = vmatmul.mubr.bf16.gmra.mrb[4].mxu1 %v318_v17  ;;  %v262_v17 = vld [vmem:[#allocation2 + $0x598] sm:$0xff] }
 0x197   :  { %2104 = vmatprep.mubr.bf16.mxu0 %v326_v18  ;;  %2876 = vmatprep.mubr.bf16.mxu1 %v326_v18  ;;  %v270_v18 = vld [vmem:[#allocation2 + $0x5d8] sm:$0xff]  ;;  %v395_v20 = vpack.c.bf16 %v262_v17, %v255_v16  ;;  %v152_v16 = vld [vmem:[#allocation2 + $0x228] sm:$0xff]  ;;  %v7523_v17 = vld [vmem:[#allocation7 + $0xe0] ss:$16 sps:$4 sm:$0xff]  }
 0x198   :  { %v403_v21 = vpack.c.bf16 %v277_v19, %v270_v18  ;;  %v7526_v18 = vld [vmem:[#allocation7 + $0xe8] ss:$16 sps:$4 sm:$0xff]   ;;  %v7531_v19 = vld [vmem:[#allocation7 + $0x104] ss:$16 sps:$4 sm:$0xff]  }
 0x19e   :  { %2105 = vmatmul.mubr.bf16.gmra.mrb[8].mxu0 %v325_v23  ;;  %2877 = vmatmul.mubr.bf16.gmra.mrb[8].mxu1 %v325_v23  ;;  %v269_v23 = vld [vmem:[#allocation2 + $0x5d0] sm:$0xff] }
 0x19f   :  { %2114 = vmatprep.mubr.bf16.mxu0 %v333_v24  ;;  %2886 = vmatprep.mubr.bf16.mxu1 %v333_v24  ;;  %v276_v24 = vld [vmem:[#allocation2 + $0x608] sm:$0xff] }
 0x1a0   :  { %v402_v27 = vpack.c.bf16 %v276_v24, %v269_v23  ;;  %v7532_v23 = vld [vmem:[#allocation7 + $0x108] ss:$16 sps:$4 sm:$0xff]   ;;  %v7537_v24 = vld [vmem:[#allocation7 + $0x124] ss:$16 sps:$4 sm:$0xff]  }
 0x1a6   :  { %2115 = vmatmul.mubr.bf16.gmra.mrb[12].mxu0 %v332_v29  ;;  %2887 = vmatmul.mubr.bf16.gmra.mrb[12].mxu1 %v332_v29  ;;  %v283_v29 = vld [vmem:[#allocation2 + $0x640] sm:$0xff] }
 0x1a7   :  { %2124 = vmatprep.mubr.bf16.mxu0 %v340_v30  ;;  %2896 = vmatprep.mubr.bf16.mxu1 %v340_v30  ;;  %v290_v30 = vld [vmem:[#allocation2 + $0x678] sm:$0xff] }
 0x1a8   :  { %v409_v33 = vpack.c.bf16 %v290_v30, %v283_v29  ;;  %v7538_v29 = vld [vmem:[#allocation7 + $0x128] ss:$16 sps:$4 sm:$0xff]   ;;  %v7543_v30 = vld [vmem:[#allocation7 + $0x144] ss:$16 sps:$4 sm:$0xff]  }
 0x1ae   :  { %2125 = vmatmul.mubr.bf16.gmra.mrb[16].mxu0 %v339_v35  ;;  %2897 = vmatmul.mubr.bf16.gmra.mrb[16].mxu1 %v339_v35  ;;  %v297_v35 = vld [vmem:[#allocation2 + $0x6b0] sm:$0xff] }
 0x1af   :  { %2134 = vmatprep.mubr.bf16.mxu0 %v347_v36  ;;  %2906 = vmatprep.mubr.bf16.mxu1 %v347_v36  ;;  %v304_v36 = vld [vmem:[#allocation2 + $0x6e8] sm:$0xff] }
 0x1b0   :  { %v416_v37 = vpack.c.bf16 %v304_v36, %v297_v35  ;;  %v7549_v35 = vld [vmem:[#allocation7 + $0x164] ss:$16 sps:$4 sm:$0xff]   ;;  %v7552_v36 = vld [vmem:[#allocation7 + $0x16c] ss:$16 sps:$4 sm:$0xff]  }
 0x1b6   :  { %2135 = vmatmul.mubr.bf16.gmra.mrb[20].mxu0 %v346_v41  ;;  %2907 = vmatmul.mubr.bf16.gmra.mrb[20].mxu1 %v346_v41  ;;  %v313_v41 = vpack.c.bf16 %v96_v40, %v89_v39  ;;  %v180_v39 = vld [vmem:[#allocation2 + $0x308] sm:$0xff]  ;;  %v7547_v40 = vld [vmem:[#allocation7 + $0x160] ss:$16 sps:$4 sm:$0xff]  }
 0x1b7   :  { %2144 = vmatprep.mubr.bf16.mxu0 %v354_v42  ;;  %2916 = vmatprep.mubr.bf16.mxu1 %v354_v42  ;;  %v7481_v42 = vld [vmem:[#allocation7] ss:$16 sps:$4 sm:$0xff]  }
 0x1be   :  { %2145 = vmatmul.mubr.bf16.gmra.mrb[24].mxu0 %v353_v47  ;;  %2917 = vmatmul.mubr.bf16.gmra.mrb[24].mxu1 %v353_v47  ;;  %v110_v47 = vld [vmem:[#allocation2 + $0xd8] sm:$0xff] }
 0x1bf   :  { %2154 = vmatprep.mubr.bf16.mxu0 %v361_v48  ;;  %2926 = vmatprep.mubr.bf16.mxu1 %v361_v48  ;;  %v7487_v48 = vld [vmem:[#allocation7 + $0x20] ss:$16 sps:$4 sm:$0xff]   ;;  %v320_v52 = vpack.c.bf16 %v110_v47, %v103_v46  ;;  %v7556_v46 = vld [vmem:[#allocation7 + $0x188] ss:$16 sps:$4 sm:$0xff]   ;;  %v7561_v47 = vld [vmem:[#allocation7 + $0x1a4] ss:$16 sps:$4 sm:$0xff]  }
 0x1c6   :  { %2155 = vmatmul.mubr.bf16.gmra.mrb[28].mxu0 %v360_v53  ;;  %2927 = vmatmul.mubr.bf16.gmra.mrb[28].mxu1 %v360_v53  ;;  %v7493_v53 = vld [vmem:[#allocation7 + $0x40] ss:$16 sps:$4 sm:$0xff]  }
 0x1c7   :  { %2164 = vmatprep.mubr.bf16.mxu0 %v368_v54  ;;  %2936 = vmatprep.mubr.bf16.mxu1 %v368_v54  ;;  %v7496_v54 = vld [vmem:[#allocation7 + $0x48] ss:$16 sps:$4 sm:$0xff]  }
 0x1ce   :  { %2165 = vmatmul.mubr.bf16.gmra.mrb[32].mxu0 %v367_v59  ;;  %2937 = vmatmul.mubr.bf16.gmra.mrb[32].mxu1 %v367_v59  ;;  %v7499_v59 = vld [vmem:[#allocation7 + $0x60] ss:$16 sps:$4 sm:$0xff]  }
 0x1cf   :  { %2174 = vmatprep.mubr.bf16.mxu0 %v375_v60  ;;  %2946 = vmatprep.mubr.bf16.mxu1 %v375_v60  ;;  %v7502_v60 = vld [vmem:[#allocation7 + $0x68] ss:$16 sps:$4 sm:$0xff]  }
 0x1d6   :  { %2175 = vmatmul.mubr.bf16.gmra.mrb[36].mxu0 %v374_v1  ;;  %2947 = vmatmul.mubr.bf16.gmra.mrb[36].mxu1 %v374_v1  ;;  %v7508_v1 = vld [vmem:[#allocation7 + $0x88] ss:$16 sps:$4 sm:$0xff]  }
 0x1d7   :  { %2184 = vmatprep.mubr.bf16.mxu0 %v382_v2  ;;  %2956 = vmatprep.mubr.bf16.mxu1 %v382_v2  ;;  %v7513_v2 = vld [vmem:[#allocation7 + $0xa4] ss:$16 sps:$4 sm:$0xff]  }
 0x1de   :  { %2185 = vmatmul.mubr.bf16.gmra.mrb[40].mxu0 %v381_v7  ;;  %2957 = vmatmul.mubr.bf16.gmra.mrb[40].mxu1 %v381_v7  ;;  %v7514_v7 = vld [vmem:[#allocation7 + $0xa8] ss:$16 sps:$4 sm:$0xff]  }
 0x1df   :  { %2194 = vmatprep.mubr.bf16.mxu0 %v389_v8  ;;  %2966 = vmatprep.mubr.bf16.mxu1 %v389_v8  ;;  %v7519_v8 = vld [vmem:[#allocation7 + $0xc4] ss:$16 sps:$4 sm:$0xff]  }
 0x1e6   :  { %2195 = vmatmul.mubr.bf16.gmra.mrb[44].mxu0 %v388_v13  ;;  %2967 = vmatmul.mubr.bf16.gmra.mrb[44].mxu1 %v388_v13  ;;  %v7525_v13 = vld [vmem:[#allocation7 + $0xe4] ss:$16 sps:$4 sm:$0xff]  }
 0x1e7   :  { %2204 = vmatprep.mubr.bf16.mxu0 %v396_v14  ;;  %2976 = vmatprep.mubr.bf16.mxu1 %v396_v14  ;;  %v7528_v14 = vld [vmem:[#allocation7 + $0xec] ss:$16 sps:$4 sm:$0xff]  }
 0x1ee   :  { %2205 = vmatmul.mubr.bf16.gmra.mrb[48].mxu0 %v395_v20  ;;  %2977 = vmatmul.mubr.bf16.gmra.mrb[48].mxu1 %v395_v20  ;;  %v7534_v20 = vld [vmem:[#allocation7 + $0x10c] ss:$16 sps:$4 sm:$0xff]  }
 0x1ef   :  { %2214 = vmatprep.mubr.bf16.mxu0 %v403_v21  ;;  %2986 = vmatprep.mubr.bf16.mxu1 %v403_v21  ;;  %v341_v21 = vpack.c.bf16 %v152_v16, %v145_v15  ;;  %v7579_v15 = vld [vmem:[#allocation7 + $0x204] ss:$16 sps:$4 sm:$0xff]  }
 0x1f6   :  { %2215 = vmatmul.mubr.bf16.gmra.mrb[52].mxu0 %v402_v27  ;;  %2987 = vmatmul.mubr.bf16.gmra.mrb[52].mxu1 %v402_v27  ;;  %v166_v27 = vld [vmem:[#allocation2 + $0x298] sm:$0xff] }
 0x1f7   :  { %2224 = vmatprep.mubr.bf16.mxu0 %v410_v28  ;;  %2996 = vmatprep.mubr.bf16.mxu1 %v410_v28  ;;  %v7535_v28 = vld [vmem:[#allocation7 + $0x120] ss:$16 sps:$4 sm:$0xff]   ;;  %v348_v32 = vpack.c.bf16 %v166_v27, %v159_v26 }
 0x1fe   :  { %2225 = vmatmul.mubr.bf16.gmra.mrb[56].mxu0 %v409_v33  ;;  %2997 = vmatmul.mubr.bf16.gmra.mrb[56].mxu1 %v409_v33  ;;  %v7541_v33 = vld [vmem:[#allocation7 + $0x140] ss:$16 sps:$4 sm:$0xff]  }
 0x1ff   :  { %2234 = vmatprep.mubr.bf16.mxu0 %v417_v34  ;;  %3006 = vmatprep.mubr.bf16.mxu1 %v417_v34  ;;  %v7544_v34 = vld [vmem:[#allocation7 + $0x148] ss:$16 sps:$4 sm:$0xff]  }
 0x206   :  { %2235 = vmatmul.mubr.bf16.gmra.mrb[60].mxu0 %v416_v37  ;;  %3007 = vmatmul.mubr.bf16.gmra.mrb[60].mxu1 %v416_v37  ;;  %v173_v37 = vld [vmem:[#allocation2 + $0x2d0] sm:$0xff] }
 0x207   :  { %2277 = vmatprep.mubr.bf16.mxu0 %v7833_v38  ;;  %3049 = vmatprep.mubr.bf16.mxu1 %v7833_v38 }
 0x20e   :  { %5988 = vmatmul.mubr.msk.bf16.vlgmr.msra.gmra.mrb[0].mxu0 %vm1617_vm0, %v313_v41  ;;  %6004 = vmatmul.mubr.msk.bf16.vlgmr.msra.gmra.mrb[0].mxu1 %vm1617_vm0, %v313_v41  ;;  %v7550_v41 = vld [vmem:[#allocation7 + $0x168] ss:$16 sps:$4 sm:$0xff]  }
 0x20f   :  { %2287 = vmatprep.mubr.bf16.mxu0 %v7833_v38  ;;  %3059 = vmatprep.mubr.bf16.mxu1 %v7833_v38 }
 0x210   :  { %4193 = vmatpush1.bf16.msra.mxu0 %v7481_v42  ;;  %4579 = vmatpush1.bf16.msra.mxu1 %v7484_v43  ;;  %v7555_v42 = vld [vmem:[#allocation7 + $0x184] ss:$16 sps:$4 sm:$0xff]   ;;  %v7558_v43 = vld [vmem:[#allocation7 + $0x18c] ss:$16 sps:$4 sm:$0xff]  }
 0x211   :  { %4194 = vmatprep.subr.bf16.mxu0 %v7489_v44  ;;  %4580 = vmatprep.subr.bf16.mxu1 %v7492_v45  ;;  %v355_v44 = vpack.c.bf16 %v180_v39, %v173_v37  ;;  %v7553_v45 = vld [vmem:[#allocation7 + $0x180] ss:$16 sps:$4 sm:$0xff]  }
 0x214   :  { %4195 = vmatpush1.bf16.msra.mxu0 %v7487_v48  ;;  %4581 = vmatpush1.bf16.msra.mxu1 %v7490_v49  ;;  %v7564_v48 = vld [vmem:[#allocation7 + $0x1ac] ss:$16 sps:$4 sm:$0xff]   ;;  %v187_v49 = vld [vmem:[#allocation2 + $0x340] sm:$0xff] }
 0x215   :  { %4196 = vmatprep.subr.bf16.mxu0 %v7495_v50  ;;  %4582 = vmatprep.subr.bf16.mxu1 %v7498_v51  ;;  %v194_v50 = vld [vmem:[#allocation2 + $0x378] sm:$0xff]  ;;  %v7559_v51 = vld [vmem:[#allocation7 + $0x1a0] ss:$16 sps:$4 sm:$0xff]  }
 0x216   :  { %5989 = vmatmul.mubr.msk.bf16.gmra.mrb[4].mxu0 %vm1617_vm0, %v320_v52  ;;  %6005 = vmatmul.mubr.msk.bf16.gmra.mrb[4].mxu1 %vm1617_vm0, %v320_v52  ;;  %v7562_v52 = vld [vmem:[#allocation7 + $0x1a8] ss:$16 sps:$4 sm:$0xff]  }
 0x217   :  { %2297 = vmatprep.mubr.bf16.mxu0 %v7833_v38  ;;  %3069 = vmatprep.mubr.bf16.mxu1 %v7833_v38 }
 0x218   :  { %4197 = vmatpush1.bf16.msra.mxu0 %v7493_v53  ;;  %4583 = vmatpush1.bf16.msra.mxu1 %v7496_v54  ;;  %v7567_v53 = vld [vmem:[#allocation7 + $0x1c4] ss:$16 sps:$4 sm:$0xff]   ;;  %v7570_v54 = vld [vmem:[#allocation7 + $0x1cc] ss:$16 sps:$4 sm:$0xff]  }
 0x219   :  { %4198 = vmatprep.subr.bf16.mxu0 %v7501_v55  ;;  %4584 = vmatprep.subr.bf16.mxu1 %v7504_v56  ;;  %v362_v55 = vpack.c.bf16 %v194_v50, %v187_v49  ;;  %v7565_v56 = vld [vmem:[#allocation7 + $0x1c0] ss:$16 sps:$4 sm:$0xff]  }
 0x21c   :  { %4199 = vmatpush1.bf16.msra.mxu0 %v7499_v59  ;;  %4585 = vmatpush1.bf16.msra.mxu1 %v7502_v60  ;;  %v208_v59 = vld [vmem:[#allocation2 + $0x3e8] sm:$0xff] }
 0x21d   :  { %4200 = vmatprep.subr.bf16.mxu0 %v7507_v61  ;;  %4586 = vmatprep.subr.bf16.mxu1 %v7510_v62  ;;  %v369_v60 = vpack.c.bf16 %v208_v59, %v201_v58  ;;  %v215_v61 = vld [vmem:[#allocation2 + $0x420] sm:$0xff]  ;;  %v222_v62 = vld [vmem:[#allocation2 + $0x458] sm:$0xff] }
 0x21e   :  { %5990 = vmatmul.mubr.msk.bf16.gmra.mrb[8].mxu0 %vm1617_vm0, %v327_v63  ;;  %6006 = vmatmul.mubr.msk.bf16.gmra.mrb[8].mxu1 %vm1617_vm0, %v327_v63  ;;  %v376_v63 = vpack.c.bf16 %v222_v62, %v215_v61 }
 0x21f   :  { %2307 = vmatprep.mubr.bf16.mxu0 %v7833_v38  ;;  %3079 = vmatprep.mubr.bf16.mxu1 %v7833_v38 }
 0x220   :  { %4201 = vmatpush1.bf16.msra.mxu0 %v7505_v0  ;;  %4587 = vmatpush1.bf16.msra.mxu1 %v7508_v1  ;;  %v229_v0 = vld [vmem:[#allocation2 + $0x490] sm:$0xff]  ;;  %v236_v1 = vld [vmem:[#allocation2 + $0x4c8] sm:$0xff] }
 0x221   :  { %4202 = vmatprep.subr.bf16.mxu0 %v7513_v2  ;;  %4588 = vmatprep.subr.bf16.mxu1 %v7516_v3  ;;  %v383_v2 = vpack.c.bf16 %v236_v1, %v229_v0  ;;  %v243_v3 = vld [vmem:[#allocation2 + $0x500] sm:$0xff] }
 0x222   :  { %v390_v5 = vpack.c.bf16 %v250_v4, %v243_v3  ;;  %v7577_v1 = vld [vmem:[#allocation7 + $0x200] ss:$16 sps:$4 sm:$0xff]  }
 0x224   :  { %4203 = vmatpush1.bf16.msra.mxu0 %v7511_v6  ;;  %4589 = vmatpush1.bf16.msra.mxu1 %v7514_v7  ;;  %v257_v6 = vld [vmem:[#allocation2 + $0x570] sm:$0xff] }
 0x225   :  { %4204 = vmatprep.subr.bf16.mxu0 %v7519_v8  ;;  %4590 = vmatprep.subr.bf16.mxu1 %v7522_v9  ;;  %v7573_v7 = vld [vmem:[#allocation7 + $0x1e4] ss:$16 sps:$4 sm:$0xff]   ;;  %v7576_v8 = vld [vmem:[#allocation7 + $0x1ec] ss:$16 sps:$4 sm:$0xff]  }
 0x226   :  { %5991 = vmatmul.mubr.msk.bf16.gmra.mrb[12].mxu0 %vm1617_vm0, %v334_v10  ;;  %6007 = vmatmul.mubr.msk.bf16.gmra.mrb[12].mxu1 %vm1617_vm0, %v334_v10  ;;  %v264_v9 = vld [vmem:[#allocation2 + $0x5a8] sm:$0xff]  ;;  %v7571_v10 = vld [vmem:[#allocation7 + $0x1e0] ss:$16 sps:$4 sm:$0xff]  }
 0x227   :  { %2317 = vmatprep.mubr.bf16.mxu0 %v7833_v38  ;;  %3089 = vmatprep.mubr.bf16.mxu1 %v7833_v38 }
 0x228   :  { %4205 = vmatpush1.bf16.msra.mxu0 %v7517_v11  ;;  %4591 = vmatpush1.bf16.msra.mxu1 %v7520_v12  ;;  %v7574_v11 = vld [vmem:[#allocation7 + $0x1e8] ss:$16 sps:$4 sm:$0xff]   ;;  %v397_v12 = vpack.c.bf16 %v264_v9, %v257_v6 }
 0x229   :  { %4206 = vmatprep.subr.bf16.mxu0 %v7525_v13  ;;  %4592 = vmatprep.subr.bf16.mxu1 %v7528_v14  ;;  %v271_v13 = vld [vmem:[#allocation2 + $0x5e0] sm:$0xff]  ;;  %v278_v14 = vld [vmem:[#allocation2 + $0x618] sm:$0xff] }
 0x22a   :  { %v404_v16 = vpack.c.bf16 %v278_v14, %v271_v13 }
 0x22c   :  { %4207 = vmatpush1.bf16.msra.mxu0 %v7523_v17  ;;  %4593 = vmatpush1.bf16.msra.mxu1 %v7526_v18  ;;  %v7582_v17 = vld [vmem:[#allocation7 + $0x20c] ss:$16 sps:$4 sm:$0xff]   ;;  %v285_v18 = vld [vmem:[#allocation2 + $0x650] sm:$0xff] }
 0x22d   :  { %4208 = vmatprep.subr.bf16.mxu0 %v7531_v19  ;;  %4594 = vmatprep.subr.bf16.mxu1 %v7534_v20  ;;  %v292_v19 = vld [vmem:[#allocation2 + $0x688] sm:$0xff] }
 0x22e   :  { %5992 = vmatmul.mubr.msk.bf16.gmra.mrb[16].mxu0 %vm1617_vm0, %v341_v21  ;;  %6008 = vmatmul.mubr.msk.bf16.gmra.mrb[16].mxu1 %vm1617_vm0, %v341_v21  ;;  %v411_v20 = vpack.c.bf16 %v292_v19, %v285_v18  ;;  %v299_v21 = vld [vmem:[#allocation2 + $0x6c0] sm:$0xff] }
 0x22f   :  { %2327 = vmatprep.mubr.bf16.mxu0 %v7833_v38  ;;  %3099 = vmatprep.mubr.bf16.mxu1 %v7833_v38  ;;  %v7583_v19 = vld [vmem:[#allocation7 + $0x220] ss:$16 sps:$4 sm:$0xff]  }
 0x230   :  { %4209 = vmatpush1.bf16.msra.mxu0 %v7529_v22  ;;  %4595 = vmatpush1.bf16.msra.mxu1 %v7532_v23  ;;  %v306_v22 = vld [vmem:[#allocation2 + $0x6f8] sm:$0xff] }
 0x231   :  { %4210 = vmatprep.subr.bf16.mxu0 %v7537_v24  ;;  %4596 = vmatprep.subr.bf16.mxu1 %v7540_v25  ;;  %v418_v23 = vpack.c.bf16 %v306_v22, %v299_v21  ;;  %v617_v24 = vlaneseq  ;;  %v7591_v21 = vld [vmem:[#allocation7 + $0x244] ss:$16 sps:$4 sm:$0xff]  }
 0x233   :  { %v8002_v25 = vshrl.u32 %v617_v24, 7 }
 0x234   :  { %4211 = vmatpush1.bf16.msra.mxu0 %v7535_v28  ;;  %4597 = vmatpush1.bf16.msra.mxu1 %v7538_v29  ;;  %v615_v28 = vld [vmem:[%s8481_s2] sm:$0xf] }
 0x235   :  { %4212 = vmatprep.subr.bf16.mxu0 %v7543_v30  ;;  %4598 = vmatprep.subr.bf16.mxu1 %v7546_v31  ;;  %v619_v26 = vsub.s32 0, %v8002_v25  ;;  %v627_v27 = vsub.s32 2, %v8002_v25  ;;  %v631_v29 = vsub.s32 3, %v8002_v25 }
 0x236   :  { %5993 = vmatmul.mubr.msk.bf16.gmra.mrb[20].mxu0 %vm1617_vm0, %v348_v32  ;;  %6009 = vmatmul.mubr.msk.bf16.gmra.mrb[20].mxu1 %vm1617_vm0, %v348_v32 }
 0x237   :  { %2337 = vmatprep.mubr.bf16.mxu0 %v7833_v38  ;;  %3109 = vmatprep.mubr.bf16.mxu1 %v7833_v38  ;;  %v8013_v30 = vrot.slane %v615_v28, %v619_v26  ;;  %v8017_v31 = vrot.slane %v615_v28, %v627_v27 }
 0x238   :  { %4213 = vmatpush1.bf16.msra.mxu0 %v7541_v33  ;;  %4599 = vmatpush1.bf16.msra.mxu1 %v7544_v34  ;;  %v8025_v33 = vrot.slane %v615_v28, %v631_v29 }
 0x239   :  { %4214 = vmatprep.subr.bf16.mxu0 %v7549_v35  ;;  %4600 = vmatprep.subr.bf16.mxu1 %v7552_v36 }
 0x23c   :  { %4215 = vmatpush1.bf16.msra.mxu0 %v7547_v40  ;;  %4601 = vmatpush1.bf16.msra.mxu1 %v7550_v41 }
 0x23d   :  { %4216 = vmatprep.subr.bf16.mxu0 %v7555_v42  ;;  %4602 = vmatprep.subr.bf16.mxu1 %v7558_v43 }
 0x23e   :  { %5994 = vmatmul.mubr.msk.bf16.gmra.mrb[24].mxu0 %vm1617_vm0, %v355_v44  ;;  %6010 = vmatmul.mubr.msk.bf16.gmra.mrb[24].mxu1 %vm1617_vm0, %v355_v44 }
 0x23f   :  { %2347 = vmatprep.mubr.bf16.mxu0 %v7833_v38  ;;  %3119 = vmatprep.mubr.bf16.mxu1 %v7833_v38 }
 0x240   :  { %4217 = vmatpush1.bf16.msra.mxu0 %v7553_v45  ;;  %4603 = vmatpush1.bf16.msra.mxu1 %v7556_v46 }
 0x241   :  { %4218 = vmatprep.subr.bf16.mxu0 %v7561_v47  ;;  %4604 = vmatprep.subr.bf16.mxu1 %v7564_v48 }
 0x244   :  { %4219 = vmatpush1.bf16.msra.mxu0 %v7559_v51  ;;  %4605 = vmatpush1.bf16.msra.mxu1 %v7562_v52 }
 0x245   :  { %4220 = vmatprep.subr.bf16.mxu0 %v7567_v53  ;;  %4606 = vmatprep.subr.bf16.mxu1 %v7570_v54 }
 0x246   :  { %5995 = vmatmul.mubr.msk.bf16.gmra.mrb[28].mxu0 %vm1617_vm0, %v362_v55  ;;  %6011 = vmatmul.mubr.msk.bf16.gmra.mrb[28].mxu1 %vm1617_vm0, %v362_v55 }
 0x247   :  { %2357 = vmatprep.mubr.bf16.mxu0 %v7833_v38  ;;  %3129 = vmatprep.mubr.bf16.mxu1 %v7833_v38 }
 0x248   :  { %4221 = vmatpush1.bf16.msra.mxu0 %v7565_v56  ;;  %4607 = vmatpush1.bf16.msra.mxu1 %v7568_v57 }
 0x249   :  { %4222 = vmatprep.subr.bf16.mxu0 %v7573_v7  ;;  %4608 = vmatprep.subr.bf16.mxu1 %v7576_v8  ;;  %v7585_v7 = vld [vmem:[#allocation7 + $0x224] ss:$16 sps:$4 sm:$0xff]   ;;  %v7588_v8 = vld [vmem:[#allocation7 + $0x22c] ss:$16 sps:$4 sm:$0xff]  }
 0x24c   :  { %4223 = vmatpush1.bf16.msra.mxu0 %v7571_v10  ;;  %4609 = vmatpush1.bf16.msra.mxu1 %v7574_v11 }
 0x24d   :  { %4385 = vmatprep.subr.bf16.mxu0 %v7579_v15  ;;  %4771 = vmatprep.subr.bf16.mxu1 %v7582_v17 }
 0x24e   :  { %5996 = vmatmul.mubr.msk.bf16.gmra.mrb[32].mxu0 %vm1617_vm0, %v369_v60  ;;  %6012 = vmatmul.mubr.msk.bf16.gmra.mrb[32].mxu1 %vm1617_vm0, %v369_v60 }
 0x24f   :  { %2367 = vmatprep.mubr.bf16.mxu0 %v7833_v38  ;;  %3139 = vmatprep.mubr.bf16.mxu1 %v7833_v38 }
 0x256   :  { %5997 = vmatmul.mubr.msk.bf16.gmra.mrb[36].mxu0 %vm1617_vm0, %v376_v63  ;;  %6013 = vmatmul.mubr.msk.bf16.gmra.mrb[36].mxu1 %vm1617_vm0, %v376_v63 }
 0x257   :  { %2377 = vmatprep.mubr.bf16.mxu0 %v7833_v38  ;;  %3149 = vmatprep.mubr.bf16.mxu1 %v7833_v38 }
 0x25e   :  { %5998 = vmatmul.mubr.msk.bf16.gmra.mrb[40].mxu0 %vm1617_vm0, %v383_v2  ;;  %6014 = vmatmul.mubr.msk.bf16.gmra.mrb[40].mxu1 %vm1617_vm0, %v383_v2  ;;  %v7580_v2 = vld [vmem:[#allocation7 + $0x208] ss:$16 sps:$4 sm:$0xff]  }
 0x25f   :  { %2387 = vmatprep.mubr.bf16.mxu0 %v7833_v38  ;;  %3159 = vmatprep.mubr.bf16.mxu1 %v7833_v38 }
 0x266   :  { %5999 = vmatmul.mubr.msk.bf16.gmra.mrb[44].mxu0 %vm1617_vm0, %v390_v5  ;;  %6015 = vmatmul.mubr.msk.bf16.gmra.mrb[44].mxu1 %vm1617_vm0, %v390_v5 }
 0x267   :  { %2397 = vmatprep.mubr.bf16.mxu0 %v7833_v38  ;;  %3169 = vmatprep.mubr.bf16.mxu1 %v7833_v38 }
 0x26e   :  { %6000 = vmatmul.mubr.msk.bf16.gmra.mrb[48].mxu0 %vm1617_vm0, %v397_v12  ;;  %6016 = vmatmul.mubr.msk.bf16.gmra.mrb[48].mxu1 %vm1617_vm0, %v397_v12 }
 0x26f   :  { %2407 = vmatprep.mubr.bf16.mxu0 %v7833_v38  ;;  %3179 = vmatprep.mubr.bf16.mxu1 %v7833_v38 }
 0x276   :  { %6001 = vmatmul.mubr.msk.bf16.gmra.mrb[52].mxu0 %vm1617_vm0, %v404_v16  ;;  %6017 = vmatmul.mubr.msk.bf16.gmra.mrb[52].mxu1 %vm1617_vm0, %v404_v16 }
 0x277   :  { %2417 = vmatprep.mubr.bf16.mxu0 %v7833_v38  ;;  %3189 = vmatprep.mubr.bf16.mxu1 %v7833_v38 }
 0x27e   :  { %6002 = vmatmul.mubr.msk.bf16.gmra.mrb[56].mxu0 %vm1617_vm0, %v411_v20  ;;  %6018 = vmatmul.mubr.msk.bf16.gmra.mrb[56].mxu1 %vm1617_vm0, %v411_v20  ;;  %v7586_v20 = vld [vmem:[#allocation7 + $0x228] ss:$16 sps:$4 sm:$0xff]  }
 0x27f   :  { %2427 = vmatprep.mubr.bf16.mxu0 %v7833_v38  ;;  %3199 = vmatprep.mubr.bf16.mxu1 %v7833_v38  ;;  %v623_v38 = vsub.s32 1, %v8002_v25 }
 0x281   :  { %v8021_v32 = vrot.slane %v615_v28, %v623_v38 }
 0x286   :  { %6003 = vmatmul.mubr.msk.bf16.gmra.mrb[60].mxu0 %vm1617_vm0, %v418_v23  ;;  %6019 = vmatmul.mubr.msk.bf16.gmra.mrb[60].mxu1 %vm1617_vm0, %v418_v23 }
 0x2e1   :  { %v2279_v34 = vpop.f32.mrb[0].mxu0  ;;  %v3051_v35 = vpop.f32.mrb[0].mxu1 }
 0x2e2   :  { %v6405_v36 = vadd.f32 %v2279_v34, %v8013_v30  ;;  %v6469_v37 = vadd.f32 %v3051_v35, %v8017_v31  ;;  %v2281_v39 = vpop.f32.mrb[1].mxu0  ;;  %v3053_v40 = vpop.f32.mrb[1].mxu1  ;;  %v7594_v34 = vld [vmem:[#allocation7 + $0x24c] ss:$16 sps:$4 sm:$0xff]  }
 0x2e3   :  { %v6406_v41 = vadd.f32 %v2281_v39, %v8021_v32  ;;  %v6470_v42 = vadd.f32 %v3053_v40, %v8025_v33  ;;  %v2283_v43 = vpop.f32.mrb[2].mxu0  ;;  %v3055_v44 = vpop.f32.mrb[2].mxu1 }
 0x2e4   :  { %v6407_v45 = vadd.f32 %v2283_v43, %v8013_v30  ;;  %v6471_v46 = vadd.f32 %v3055_v44, %v8017_v31  ;;  %v2285_v47 = vpop.f32.mrb[3].mxu0  ;;  %v3057_v48 = vpop.f32.mrb[3].mxu1  ;;  %v3210_v51 = vmax.f32 %v6405_v36, 0.0  ;;  %v3212_v52 = vmax.f32 %v6469_v37, 0.0 }
 0x2e5   :  { %v6408_v49 = vadd.f32 %v2285_v47, %v8021_v32  ;;  %v6472_v50 = vadd.f32 %v3057_v48, %v8025_v33  ;;  %v3211_v55 = vmax.f32 %v6406_v41, 0.0  ;;  %v3213_v56 = vmax.f32 %v6470_v42, 0.0  ;;  %v7592_v47 = vld [vmem:[#allocation7 + $0x248] ss:$16 sps:$4 sm:$0xff]  }
 0x2e6   :  { %v3214_v53 = vmax.f32 %v6407_v45, 0.0  ;;  %v3216_v54 = vmax.f32 %v6471_v46, 0.0  ;;  %v7589_v46 = vld [vmem:[#allocation7 + $0x240] ss:$16 sps:$4 sm:$0xff]  }
 0x2e7   :  { %v3215_v57 = vmax.f32 %v6408_v49, 0.0  ;;  %v3217_v58 = vmax.f32 %v6472_v50, 0.0 }
 0x2e8   :  { %v3338_v59 = vpack.c.bf16 %v3214_v53, %v3210_v51  ;;  %v8035_v60 = vpack.c.bf16 %v3216_v54, %v3212_v52  ;;  %v7597_v52 = vld [vmem:[#allocation7 + $0x264] ss:$16 sps:$4 sm:$0xff]   ;;  %v7600_v53 = vld [vmem:[#allocation7 + $0x26c] ss:$16 sps:$4 sm:$0xff]  }
 0x2e9   :  { %v3339_v61 = vpack.c.bf16 %v3215_v57, %v3211_v55  ;;  %v8037_v62 = vpack.c.bf16 %v3217_v58, %v3213_v56  ;;  %v2289_v63 = vpop.f32.mrb[4].mxu0  ;;  %v3061_v0 = vpop.f32.mrb[4].mxu1 }
 0x2ea   :  { %v6409_v3 = vadd.f32 %v2289_v63, %v8013_v30  ;;  %v6473_v4 = vadd.f32 %v3061_v0, %v8017_v31  ;;  %v2291_v5 = vpop.f32.mrb[5].mxu0  ;;  %v3063_v6 = vpop.f32.mrb[5].mxu1 }
 0x2eb   :  { %v6410_v9 = vadd.f32 %v2291_v5, %v8021_v32  ;;  %v6474_v10 = vadd.f32 %v3063_v6, %v8025_v33  ;;  %v2293_v11 = vpop.f32.mrb[6].mxu0  ;;  %v3065_v12 = vpop.f32.mrb[6].mxu1  ;;  %4224 = vmatprep.mubr.bf16.mxu0 %v3339_v61  ;;  %4610 = vmatprep.mubr.bf16.mxu1 %v3339_v61 }
 0x2ec   :  { %v6411_v13 = vadd.f32 %v2293_v11, %v8013_v30  ;;  %v6475_v14 = vadd.f32 %v3065_v12, %v8017_v31  ;;  %v2295_v15 = vpop.f32.mrb[7].mxu0  ;;  %v3067_v16 = vpop.f32.mrb[7].mxu1  ;;  %4225 = vmatmul.mubr.bf16.vlgmr.msra.gmra.mrb[64].mxu0 %v3338_v59  ;;  %4611 = vmatmul.mubr.bf16.vlgmr.msra.gmra.mrb[64].mxu1 %v3338_v59  ;;  %v3218_v22 = vmax.f32 %v6409_v3, 0.0  ;;  %v3220_v23 = vmax.f32 %v6473_v4, 0.0  ;;  %v7598_v3 = vld [vmem:[#allocation7 + $0x268] ss:$16 sps:$4 sm:$0xff]  }
 0x2ed   :  { %v6412_v17 = vadd.f32 %v2295_v15, %v8021_v32  ;;  %v6476_v18 = vadd.f32 %v3067_v16, %v8025_v33  ;;  %4386 = vmatpush1.bf16.msra.mxu0 %v7577_v1  ;;  %4772 = vmatpush1.bf16.msra.mxu1 %v7580_v2  ;;  %v3219_v35 = vmax.f32 %v6410_v9, 0.0  ;;  %v3221_v36 = vmax.f32 %v6474_v10, 0.0  ;;  %v7595_v2 = vld [vmem:[#allocation7 + $0x260] ss:$16 sps:$4 sm:$0xff]   ;;  %v7603_v4 = vld [vmem:[#allocation7 + $0x284] ss:$16 sps:$4 sm:$0xff]  }
 0x2ee   :  { %v3222_v24 = vmax.f32 %v6411_v13, 0.0  ;;  %v3224_v28 = vmax.f32 %v6475_v14, 0.0  ;;  %4387 = vmatprep.subr.bf16.mxu0 %v7585_v7  ;;  %4773 = vmatprep.subr.bf16.mxu1 %v7588_v8  ;;  %v7606_v9 = vld [vmem:[#allocation7 + $0x28c] ss:$16 sps:$4 sm:$0xff]  }
 0x2ef   :  { %v3223_v37 = vmax.f32 %v6412_v17, 0.0  ;;  %v3225_v39 = vmax.f32 %v6476_v18, 0.0 }
 0x2f0   :  { %v3342_v40 = vpack.c.bf16 %v3222_v24, %v3218_v22  ;;  %v8047_v41 = vpack.c.bf16 %v3224_v28, %v3220_v23 }
 0x2f1   :  { %v3343_v42 = vpack.c.bf16 %v3223_v37, %v3219_v35  ;;  %v8049_v43 = vpack.c.bf16 %v3225_v39, %v3221_v36  ;;  %v2299_v44 = vpop.f32.mrb[8].mxu0  ;;  %v3071_v45 = vpop.f32.mrb[8].mxu1  ;;  %4388 = vmatpush1.bf16.msra.mxu0 %v7583_v19  ;;  %4774 = vmatpush1.bf16.msra.mxu1 %v7586_v20  ;;  %v7601_v20 = vld [vmem:[#allocation7 + $0x280] ss:$16 sps:$4 sm:$0xff]   ;;  %v7612_v35 = vld [vmem:[#allocation7 + $0x2ac] ss:$16 sps:$4 sm:$0xff]  }
 0x2f2   :  { %v6413_v48 = vadd.f32 %v2299_v44, %v8013_v30  ;;  %v6477_v49 = vadd.f32 %v3071_v45, %v8017_v31  ;;  %v2301_v50 = vpop.f32.mrb[9].mxu0  ;;  %v3073_v51 = vpop.f32.mrb[9].mxu1  ;;  %4389 = vmatprep.subr.bf16.mxu0 %v7591_v21  ;;  %4775 = vmatprep.subr.bf16.mxu1 %v7594_v34  ;;  %v7604_v21 = vld [vmem:[#allocation7 + $0x288] ss:$16 sps:$4 sm:$0xff]   ;;  %v7609_v34 = vld [vmem:[#allocation7 + $0x2a4] ss:$16 sps:$4 sm:$0xff]  }
 0x2f3   :  { %v6414_v54 = vadd.f32 %v2301_v50, %v8021_v32  ;;  %v6478_v55 = vadd.f32 %v3073_v51, %v8025_v33  ;;  %v2303_v56 = vpop.f32.mrb[10].mxu0  ;;  %v3075_v57 = vpop.f32.mrb[10].mxu1  ;;  %4234 = vmatprep.mubr.bf16.mxu0 %v3343_v42  ;;  %4620 = vmatprep.mubr.bf16.mxu1 %v3343_v42  ;;  %v7610_v50 = vld [vmem:[#allocation7 + $0x2a8] ss:$16 sps:$4 sm:$0xff]   ;;  %v7615_v51 = vld [vmem:[#allocation7 + $0x2c4] ss:$16 sps:$4 sm:$0xff]  }
 0x2f4   :  { %v6415_v58 = vadd.f32 %v2303_v56, %v8013_v30  ;;  %v6479_v59 = vadd.f32 %v3075_v57, %v8017_v31  ;;  %v2305_v61 = vpop.f32.mrb[11].mxu0  ;;  %v3077_v63 = vpop.f32.mrb[11].mxu1  ;;  %4235 = vmatmul.mubr.bf16.gmra.mrb[68].mxu0 %v3342_v40  ;;  %4621 = vmatmul.mubr.bf16.gmra.mrb[68].mxu1 %v3342_v40  ;;  %v3226_v5 = vmax.f32 %v6413_v48, 0.0  ;;  %v3228_v6 = vmax.f32 %v6477_v49, 0.0  ;;  %v7607_v49 = vld [vmem:[#allocation7 + $0x2a0] ss:$16 sps:$4 sm:$0xff]  }
 0x2f5   :  { %v6416_v0 = vadd.f32 %v2305_v61, %v8021_v32  ;;  %v6480_v1 = vadd.f32 %v3077_v63, %v8025_v33  ;;  %4390 = vmatpush1.bf16.msra.mxu0 %v7589_v46  ;;  %4776 = vmatpush1.bf16.msra.mxu1 %v7592_v47  ;;  %v3227_v10 = vmax.f32 %v6414_v54, 0.0  ;;  %v3229_v11 = vmax.f32 %v6478_v55, 0.0  ;;  %v7618_v56 = vld [vmem:[#allocation7 + $0x2cc] ss:$16 sps:$4 sm:$0xff]  }
 0x2f6   :  { %v3230_v7 = vmax.f32 %v6415_v58, 0.0  ;;  %v3232_v8 = vmax.f32 %v6479_v59, 0.0  ;;  %4391 = vmatprep.subr.bf16.mxu0 %v7597_v52  ;;  %4777 = vmatprep.subr.bf16.mxu1 %v7600_v53 }
 0x2f7   :  { %v3231_v12 = vmax.f32 %v6416_v0, 0.0  ;;  %v3233_v13 = vmax.f32 %v6480_v1, 0.0 }
 0x2f8   :  { %v3346_v14 = vpack.c.bf16 %v3230_v7, %v3226_v5  ;;  %v8059_v15 = vpack.c.bf16 %v3232_v8, %v3228_v6  ;;  %v7613_v5 = vld [vmem:[#allocation7 + $0x2c0] ss:$16 sps:$4 sm:$0xff]   ;;  %v7616_v6 = vld [vmem:[#allocation7 + $0x2c8] ss:$16 sps:$4 sm:$0xff]  }
 0x2f9   :  { %v3347_v16 = vpack.c.bf16 %v3231_v12, %v3227_v10  ;;  %v8061_v17 = vpack.c.bf16 %v3233_v13, %v3229_v11  ;;  %v2309_v18 = vpop.f32.mrb[12].mxu0  ;;  %v3081_v19 = vpop.f32.mrb[12].mxu1  ;;  %4392 = vmatpush1.bf16.msra.mxu0 %v7595_v2  ;;  %4778 = vmatpush1.bf16.msra.mxu1 %v7598_v3  ;;  %v7621_v11 = vld [vmem:[#allocation7 + $0x2e4] ss:$16 sps:$4 sm:$0xff]   ;;  %v7624_v12 = vld [vmem:[#allocation7 + $0x2ec] ss:$16 sps:$4 sm:$0xff]  }
 0x2fa   :  { %v6417_v22 = vadd.f32 %v2309_v18, %v8013_v30  ;;  %v6481_v23 = vadd.f32 %v3081_v19, %v8017_v31  ;;  %v2311_v24 = vpop.f32.mrb[13].mxu0  ;;  %v3083_v28 = vpop.f32.mrb[13].mxu1  ;;  %4393 = vmatprep.subr.bf16.mxu0 %v7603_v4  ;;  %4779 = vmatprep.subr.bf16.mxu1 %v7606_v9 }
 0x2fb   :  { %v6418_v36 = vadd.f32 %v2311_v24, %v8021_v32  ;;  %v6482_v37 = vadd.f32 %v3083_v28, %v8025_v33  ;;  %v2313_v39 = vpop.f32.mrb[14].mxu0  ;;  %v3085_v40 = vpop.f32.mrb[14].mxu1  ;;  %4244 = vmatprep.mubr.bf16.mxu0 %v3347_v16  ;;  %4630 = vmatprep.mubr.bf16.mxu1 %v3347_v16  ;;  %v7619_v28 = vld [vmem:[#allocation7 + $0x2e0] ss:$16 sps:$4 sm:$0xff]  }
 0x2fc   :  { %v6419_v42 = vadd.f32 %v2313_v39, %v8013_v30  ;;  %v6483_v44 = vadd.f32 %v3085_v40, %v8017_v31  ;;  %v2315_v45 = vpop.f32.mrb[15].mxu0  ;;  %v3087_v46 = vpop.f32.mrb[15].mxu1  ;;  %4245 = vmatmul.mubr.bf16.gmra.mrb[72].mxu0 %v3346_v14  ;;  %4631 = vmatmul.mubr.bf16.gmra.mrb[72].mxu1 %v3346_v14  ;;  %v3234_v52 = vmax.f32 %v6417_v22, 0.0  ;;  %v3236_v53 = vmax.f32 %v6481_v23, 0.0 }
 0x2fd   :  { %v6420_v47 = vadd.f32 %v2315_v45, %v8021_v32  ;;  %v6484_v48 = vadd.f32 %v3087_v46, %v8025_v33  ;;  %4394 = vmatpush1.bf16.msra.mxu0 %v7601_v20  ;;  %4780 = vmatpush1.bf16.msra.mxu1 %v7604_v21  ;;  %v3235_v57 = vmax.f32 %v6418_v36, 0.0  ;;  %v3237_v58 = vmax.f32 %v6482_v37, 0.0 }
 0x2fe   :  { %v3238_v54 = vmax.f32 %v6419_v42, 0.0  ;;  %v3240_v55 = vmax.f32 %v6483_v44, 0.0  ;;  %4395 = vmatprep.subr.bf16.mxu0 %v7609_v34  ;;  %4781 = vmatprep.subr.bf16.mxu1 %v7612_v35  ;;  %v7622_v34 = vld [vmem:[#allocation7 + $0x2e8] ss:$16 sps:$4 sm:$0xff]   ;;  %v7627_v35 = vld [vmem:[#allocation7 + $0x304] ss:$16 sps:$4 sm:$0xff]  }
 0x2ff   :  { %v3239_v59 = vmax.f32 %v6420_v47, 0.0  ;;  %v3241_v61 = vmax.f32 %v6484_v48, 0.0  ;;  %v7630_v42 = vld [vmem:[#allocation7 + $0x30c] ss:$16 sps:$4 sm:$0xff]  }
 0x300   :  { %v3350_v63 = vpack.c.bf16 %v3238_v54, %v3234_v52  ;;  %v8071_v0 = vpack.c.bf16 %v3240_v55, %v3236_v53  ;;  %v7625_v54 = vld [vmem:[#allocation7 + $0x300] ss:$16 sps:$4 sm:$0xff]   ;;  %v7628_v55 = vld [vmem:[#allocation7 + $0x308] ss:$16 sps:$4 sm:$0xff]  }
 0x301   :  { %v3351_v1 = vpack.c.bf16 %v3239_v59, %v3235_v57  ;;  %v8073_v2 = vpack.c.bf16 %v3241_v61, %v3237_v58  ;;  %v2319_v3 = vpop.f32.mrb[16].mxu0  ;;  %v3091_v4 = vpop.f32.mrb[16].mxu1  ;;  %4396 = vmatpush1.bf16.msra.mxu0 %v7607_v49  ;;  %4782 = vmatpush1.bf16.msra.mxu1 %v7610_v50  ;;  %v7633_v61 = vld [vmem:[#allocation7 + $0x324] ss:$16 sps:$4 sm:$0xff]  }
 0x302   :  { %v6421_v7 = vadd.f32 %v2319_v3, %v8013_v30  ;;  %v6485_v8 = vadd.f32 %v3091_v4, %v8017_v31  ;;  %v2321_v9 = vpop.f32.mrb[17].mxu0  ;;  %v3093_v10 = vpop.f32.mrb[17].mxu1  ;;  %4397 = vmatprep.subr.bf16.mxu0 %v7615_v51  ;;  %4783 = vmatprep.subr.bf16.mxu1 %v7618_v56 }
 0x303   :  { %v6422_v13 = vadd.f32 %v2321_v9, %v8021_v32  ;;  %v6486_v14 = vadd.f32 %v3093_v10, %v8025_v33  ;;  %v2323_v16 = vpop.f32.mrb[18].mxu0  ;;  %v3095_v18 = vpop.f32.mrb[18].mxu1  ;;  %4254 = vmatprep.mubr.bf16.mxu0 %v3351_v1  ;;  %4640 = vmatprep.mubr.bf16.mxu1 %v3351_v1 }
 0x304   :  { %v6423_v19 = vadd.f32 %v2323_v16, %v8013_v30  ;;  %v6487_v20 = vadd.f32 %v3095_v18, %v8017_v31  ;;  %v2325_v21 = vpop.f32.mrb[19].mxu0  ;;  %v3097_v22 = vpop.f32.mrb[19].mxu1  ;;  %4255 = vmatmul.mubr.bf16.gmra.mrb[76].mxu0 %v3350_v63  ;;  %4641 = vmatmul.mubr.bf16.gmra.mrb[76].mxu1 %v3350_v63  ;;  %v3242_v36 = vmax.f32 %v6421_v7, 0.0  ;;  %v3244_v37 = vmax.f32 %v6485_v8, 0.0  ;;  %v7636_v63 = vld [vmem:[#allocation7 + $0x32c] ss:$16 sps:$4 sm:$0xff]  }
 0x305   :  { %v6424_v23 = vadd.f32 %v2325_v21, %v8021_v32  ;;  %v6488_v24 = vadd.f32 %v3097_v22, %v8025_v33  ;;  %4398 = vmatpush1.bf16.msra.mxu0 %v7613_v5  ;;  %4784 = vmatpush1.bf16.msra.mxu1 %v7616_v6  ;;  %v3243_v44 = vmax.f32 %v6422_v13, 0.0  ;;  %v3245_v45 = vmax.f32 %v6486_v14, 0.0  ;;  %v7634_v13 = vld [vmem:[#allocation7 + $0x328] ss:$16 sps:$4 sm:$0xff]   ;;  %v7639_v14 = vld [vmem:[#allocation7 + $0x344] ss:$16 sps:$4 sm:$0xff]  }
 0x306   :  { %v3246_v39 = vmax.f32 %v6423_v19, 0.0  ;;  %v3248_v40 = vmax.f32 %v6487_v20, 0.0  ;;  %4399 = vmatprep.subr.bf16.mxu0 %v7621_v11  ;;  %4785 = vmatprep.subr.bf16.mxu1 %v7624_v12  ;;  %v7631_v12 = vld [vmem:[#allocation7 + $0x320] ss:$16 sps:$4 sm:$0xff]   ;;  %v7642_v21 = vld [vmem:[#allocation7 + $0x34c] ss:$16 sps:$4 sm:$0xff]  }
 0x307   :  { %v3247_v46 = vmax.f32 %v6424_v23, 0.0  ;;  %v3249_v47 = vmax.f32 %v6488_v24, 0.0 }
 0x308   :  { %v3354_v48 = vpack.c.bf16 %v3246_v39, %v3242_v36  ;;  %v8083_v49 = vpack.c.bf16 %v3248_v40, %v3244_v37 }
 0x309   :  { %v3355_v50 = vpack.c.bf16 %v3247_v46, %v3243_v44  ;;  %v8085_v51 = vpack.c.bf16 %v3249_v47, %v3245_v45  ;;  %v2329_v52 = vpop.f32.mrb[20].mxu0  ;;  %v3101_v53 = vpop.f32.mrb[20].mxu1  ;;  %4400 = vmatpush1.bf16.msra.mxu0 %v7619_v28  ;;  %4786 = vmatpush1.bf16.msra.mxu1 %v7622_v34  ;;  %v7640_v44 = vld [vmem:[#allocation7 + $0x348] ss:$16 sps:$4 sm:$0xff]  }
 0x30a   :  { %v6425_v56 = vadd.f32 %v2329_v52, %v8013_v30  ;;  %v6489_v57 = vadd.f32 %v3101_v53, %v8017_v31  ;;  %v2331_v58 = vpop.f32.mrb[21].mxu0  ;;  %v3103_v59 = vpop.f32.mrb[21].mxu1  ;;  %4401 = vmatprep.subr.bf16.mxu0 %v7627_v35  ;;  %4787 = vmatprep.subr.bf16.mxu1 %v7630_v42  ;;  %v7637_v42 = vld [vmem:[#allocation7 + $0x340] ss:$16 sps:$4 sm:$0xff]   ;;  %v7648_v52 = vld [vmem:[#allocation7 + $0x36c] ss:$16 sps:$4 sm:$0xff]  }
 0x30b   :  { %v6426_v1 = vadd.f32 %v2331_v58, %v8021_v32  ;;  %v6490_v3 = vadd.f32 %v3103_v59, %v8025_v33  ;;  %v2333_v4 = vpop.f32.mrb[22].mxu0  ;;  %v3105_v5 = vpop.f32.mrb[22].mxu1  ;;  %4264 = vmatprep.mubr.bf16.mxu0 %v3355_v50  ;;  %4650 = vmatprep.mubr.bf16.mxu1 %v3355_v50  ;;  %v7645_v50 = vld [vmem:[#allocation7 + $0x364] ss:$16 sps:$4 sm:$0xff]  }
 0x30c   :  { %v6427_v6 = vadd.f32 %v2333_v4, %v8013_v30  ;;  %v6491_v7 = vadd.f32 %v3105_v5, %v8017_v31  ;;  %v2335_v8 = vpop.f32.mrb[23].mxu0  ;;  %v3107_v9 = vpop.f32.mrb[23].mxu1  ;;  %4265 = vmatmul.mubr.bf16.gmra.mrb[80].mxu0 %v3354_v48  ;;  %4651 = vmatmul.mubr.bf16.gmra.mrb[80].mxu1 %v3354_v48  ;;  %v3250_v16 = vmax.f32 %v6425_v56, 0.0  ;;  %v3252_v18 = vmax.f32 %v6489_v57, 0.0  ;;  %v7646_v4 = vld [vmem:[#allocation7 + $0x368] ss:$16 sps:$4 sm:$0xff]  }
 0x30d   :  { %v6428_v10 = vadd.f32 %v2335_v8, %v8021_v32  ;;  %v6492_v11 = vadd.f32 %v3107_v9, %v8025_v33  ;;  %4402 = vmatpush1.bf16.msra.mxu0 %v7625_v54  ;;  %4788 = vmatpush1.bf16.msra.mxu1 %v7628_v55  ;;  %v3251_v22 = vmax.f32 %v6426_v1, 0.0  ;;  %v3253_v23 = vmax.f32 %v6490_v3, 0.0  ;;  %v7643_v3 = vld [vmem:[#allocation7 + $0x360] ss:$16 sps:$4 sm:$0xff]   ;;  %v7651_v5 = vld [vmem:[#allocation7 + $0x384] ss:$16 sps:$4 sm:$0xff]  }
 0x30e   :  { %v3254_v19 = vmax.f32 %v6427_v6, 0.0  ;;  %v3256_v20 = vmax.f32 %v6491_v7, 0.0  ;;  %4403 = vmatprep.subr.bf16.mxu0 %v7633_v61  ;;  %4789 = vmatprep.subr.bf16.mxu1 %v7636_v63 }
 0x30f   :  { %v3255_v24 = vmax.f32 %v6428_v10, 0.0  ;;  %v3257_v28 = vmax.f32 %v6492_v11, 0.0  ;;  %v7654_v10 = vld [vmem:[#allocation7 + $0x38c] ss:$16 sps:$4 sm:$0xff]  }
 0x310   :  { %v3358_v34 = vpack.c.bf16 %v3254_v19, %v3250_v16  ;;  %v8095_v35 = vpack.c.bf16 %v3256_v20, %v3252_v18 }
 0x311   :  { %v3359_v36 = vpack.c.bf16 %v3255_v24, %v3251_v22  ;;  %v8097_v37 = vpack.c.bf16 %v3257_v28, %v3253_v23  ;;  %v2339_v39 = vpop.f32.mrb[24].mxu0  ;;  %v3111_v40 = vpop.f32.mrb[24].mxu1  ;;  %4404 = vmatpush1.bf16.msra.mxu0 %v7631_v12  ;;  %4790 = vmatpush1.bf16.msra.mxu1 %v7634_v13  ;;  %v7649_v23 = vld [vmem:[#allocation7 + $0x380] ss:$16 sps:$4 sm:$0xff]   ;;  %v7652_v24 = vld [vmem:[#allocation7 + $0x388] ss:$16 sps:$4 sm:$0xff]  }
 0x312   :  { %v6429_v45 = vadd.f32 %v2339_v39, %v8013_v30  ;;  %v6493_v46 = vadd.f32 %v3111_v40, %v8017_v31  ;;  %v2341_v47 = vpop.f32.mrb[25].mxu0  ;;  %v3113_v48 = vpop.f32.mrb[25].mxu1  ;;  %4405 = vmatprep.subr.bf16.mxu0 %v7639_v14  ;;  %4791 = vmatprep.subr.bf16.mxu1 %v7642_v21  ;;  %v7657_v40 = vld [vmem:[#allocation7 + $0x3a4] ss:$16 sps:$4 sm:$0xff]  }
 0x313   :  { %v6430_v53 = vadd.f32 %v2341_v47, %v8021_v32  ;;  %v6494_v54 = vadd.f32 %v3113_v48, %v8025_v33  ;;  %v2343_v55 = vpop.f32.mrb[26].mxu0  ;;  %v3115_v56 = vpop.f32.mrb[26].mxu1  ;;  %4274 = vmatprep.mubr.bf16.mxu0 %v3359_v36  ;;  %4660 = vmatprep.mubr.bf16.mxu1 %v3359_v36 }
 0x314   :  { %v6431_v57 = vadd.f32 %v2343_v55, %v8013_v30  ;;  %v6495_v58 = vadd.f32 %v3115_v56, %v8017_v31  ;;  %v2345_v59 = vpop.f32.mrb[27].mxu0  ;;  %v3117_v61 = vpop.f32.mrb[27].mxu1  ;;  %4275 = vmatmul.mubr.bf16.gmra.mrb[84].mxu0 %v3358_v34  ;;  %4661 = vmatmul.mubr.bf16.gmra.mrb[84].mxu1 %v3358_v34  ;;  %v3258_v6 = vmax.f32 %v6429_v45, 0.0  ;;  %v3260_v7 = vmax.f32 %v6493_v46, 0.0  ;;  %v7655_v56 = vld [vmem:[#allocation7 + $0x3a0] ss:$16 sps:$4 sm:$0xff]  }
 0x315   :  { %v6432_v63 = vadd.f32 %v2345_v59, %v8021_v32  ;;  %v6496_v1 = vadd.f32 %v3117_v61, %v8025_v33  ;;  %4406 = vmatpush1.bf16.msra.mxu0 %v7637_v42  ;;  %4792 = vmatpush1.bf16.msra.mxu1 %v7640_v44  ;;  %v3259_v11 = vmax.f32 %v6430_v53, 0.0  ;;  %v3261_v12 = vmax.f32 %v6494_v54, 0.0  ;;  %v7660_v42 = vld [vmem:[#allocation7 + $0x3ac] ss:$16 sps:$4 sm:$0xff]  }
 0x316   :  { %v3262_v8 = vmax.f32 %v6431_v57, 0.0  ;;  %v3264_v9 = vmax.f32 %v6495_v58, 0.0  ;;  %4407 = vmatprep.subr.bf16.mxu0 %v7645_v50  ;;  %4793 = vmatprep.subr.bf16.mxu1 %v7648_v52  ;;  %v7658_v57 = vld [vmem:[#allocation7 + $0x3a8] ss:$16 sps:$4 sm:$0xff]   ;;  %v7663_v58 = vld [vmem:[#allocation7 + $0x3c4] ss:$16 sps:$4 sm:$0xff]  }
 0x317   :  { %v3263_v13 = vmax.f32 %v6432_v63, 0.0  ;;  %v3265_v14 = vmax.f32 %v6496_v1, 0.0 }
 0x318   :  { %v3362_v16 = vpack.c.bf16 %v3262_v8, %v3258_v6  ;;  %v8107_v18 = vpack.c.bf16 %v3264_v9, %v3260_v7 }
 0x319   :  { %v3363_v19 = vpack.c.bf16 %v3263_v13, %v3259_v11  ;;  %v8109_v20 = vpack.c.bf16 %v3265_v14, %v3261_v12  ;;  %v2349_v21 = vpop.f32.mrb[28].mxu0  ;;  %v3121_v22 = vpop.f32.mrb[28].mxu1  ;;  %4408 = vmatpush1.bf16.msra.mxu0 %v7643_v3  ;;  %4794 = vmatpush1.bf16.msra.mxu1 %v7646_v4  ;;  %v7666_v3 = vld [vmem:[#allocation7 + $0x3cc] ss:$16 sps:$4 sm:$0xff]   ;;  %v7661_v14 = vld [vmem:[#allocation7 + $0x3c0] ss:$16 sps:$4 sm:$0xff]  }
 0x31a   :  { %v6433_v28 = vadd.f32 %v2349_v21, %v8013_v30  ;;  %v6497_v34 = vadd.f32 %v3121_v22, %v8017_v31  ;;  %v2351_v36 = vpop.f32.mrb[29].mxu0  ;;  %v3123_v39 = vpop.f32.mrb[29].mxu1  ;;  %4409 = vmatprep.subr.bf16.mxu0 %v7651_v5  ;;  %4795 = vmatprep.subr.bf16.mxu1 %v7654_v10 }
 0x31b   :  { %v6434_v44 = vadd.f32 %v2351_v36, %v8021_v32  ;;  %v6498_v45 = vadd.f32 %v3123_v39, %v8025_v33  ;;  %v2353_v46 = vpop.f32.mrb[30].mxu0  ;;  %v3125_v47 = vpop.f32.mrb[30].mxu1  ;;  %4284 = vmatprep.mubr.bf16.mxu0 %v3363_v19  ;;  %4670 = vmatprep.mubr.bf16.mxu1 %v3363_v19 }
 0x31c   :  { %v6435_v48 = vadd.f32 %v2353_v46, %v8013_v30  ;;  %v6499_v50 = vadd.f32 %v3125_v47, %v8017_v31  ;;  %v2355_v52 = vpop.f32.mrb[31].mxu0  ;;  %v3127_v53 = vpop.f32.mrb[31].mxu1  ;;  %4285 = vmatmul.mubr.bf16.gmra.mrb[88].mxu0 %v3362_v16  ;;  %4671 = vmatmul.mubr.bf16.gmra.mrb[88].mxu1 %v3362_v16  ;;  %v3266_v59 = vmax.f32 %v6433_v28, 0.0  ;;  %v3268_v61 = vmax.f32 %v6497_v34, 0.0  ;;  %v7664_v16 = vld [vmem:[#allocation7 + $0x3c8] ss:$16 sps:$4 sm:$0xff]  }
 0x31d   :  { %v6436_v54 = vadd.f32 %v2355_v52, %v8021_v32  ;;  %v6500_v55 = vadd.f32 %v3127_v53, %v8025_v33  ;;  %4410 = vmatpush1.bf16.msra.mxu0 %v7649_v23  ;;  %4796 = vmatpush1.bf16.msra.mxu1 %v7652_v24  ;;  %v3267_v4 = vmax.f32 %v6434_v44, 0.0  ;;  %v3269_v5 = vmax.f32 %v6498_v45, 0.0  ;;  %v7669_v24 = vld [vmem:[#allocation7 + $0x3e4] ss:$16 sps:$4 sm:$0xff]   ;;  %v7672_v28 = vld [vmem:[#allocation7 + $0x3ec] ss:$16 sps:$4 sm:$0xff]  }
 0x31e   :  { %v3270_v63 = vmax.f32 %v6435_v48, 0.0  ;;  %v3272_v1 = vmax.f32 %v6499_v50, 0.0  ;;  %4411 = vmatprep.subr.bf16.mxu0 %v7657_v40  ;;  %4797 = vmatprep.subr.bf16.mxu1 %v7660_v42  ;;  %v7667_v50 = vld [vmem:[#allocation7 + $0x3e0] ss:$16 sps:$4 sm:$0xff]   ;;  %v7670_v52 = vld [vmem:[#allocation7 + $0x3e8] ss:$16 sps:$4 sm:$0xff]  }
 0x31f   :  { %v3271_v6 = vmax.f32 %v6436_v54, 0.0  ;;  %v3273_v7 = vmax.f32 %v6500_v55, 0.0 }
 0x320   :  { %v3366_v8 = vpack.c.bf16 %v3270_v63, %v3266_v59  ;;  %v8119_v9 = vpack.c.bf16 %v3272_v1, %v3268_v61 }
 0x321   :  { %v3367_v10 = vpack.c.bf16 %v3271_v6, %v3267_v4  ;;  %v8121_v11 = vpack.c.bf16 %v3273_v7, %v3269_v5  ;;  %v2359_v12 = vpop.f32.mrb[32].mxu0  ;;  %v3131_v13 = vpop.f32.mrb[32].mxu1  ;;  %4412 = vmatpush1.bf16.msra.mxu0 %v7655_v56  ;;  %4798 = vmatpush1.bf16.msra.mxu1 %v7658_v57 }
 0x322   :  { %v6437_v19 = vadd.f32 %v2359_v12, %v8013_v30  ;;  %v6501_v21 = vadd.f32 %v3131_v13, %v8017_v31  ;;  %v2361_v22 = vpop.f32.mrb[33].mxu0  ;;  %v3133_v23 = vpop.f32.mrb[33].mxu1  ;;  %4413 = vmatprep.subr.bf16.mxu0 %v7663_v58  ;;  %4799 = vmatprep.subr.bf16.mxu1 %v7666_v3 }
 0x323   :  { %v6438_v34 = vadd.f32 %v2361_v22, %v8021_v32  ;;  %v6502_v36 = vadd.f32 %v3133_v23, %v8025_v33  ;;  %v2363_v39 = vpop.f32.mrb[34].mxu0  ;;  %v3135_v40 = vpop.f32.mrb[34].mxu1  ;;  %4294 = vmatprep.mubr.bf16.mxu0 %v3367_v10  ;;  %4680 = vmatprep.mubr.bf16.mxu1 %v3367_v10 }
 0x324   :  { %v6439_v42 = vadd.f32 %v2363_v39, %v8013_v30  ;;  %v6503_v44 = vadd.f32 %v3135_v40, %v8017_v31  ;;  %v2365_v45 = vpop.f32.mrb[35].mxu0  ;;  %v3137_v46 = vpop.f32.mrb[35].mxu1  ;;  %4295 = vmatmul.mubr.bf16.gmra.mrb[92].mxu0 %v3366_v8  ;;  %4681 = vmatmul.mubr.bf16.gmra.mrb[92].mxu1 %v3366_v8  ;;  %v3274_v53 = vmax.f32 %v6437_v19, 0.0  ;;  %v3276_v54 = vmax.f32 %v6501_v21, 0.0 }
 0x325   :  { %v6440_v47 = vadd.f32 %v2365_v45, %v8021_v32  ;;  %v6504_v48 = vadd.f32 %v3137_v46, %v8025_v33  ;;  %4414 = vmatpush1.bf16.msra.mxu0 %v7661_v14  ;;  %4800 = vmatpush1.bf16.msra.mxu1 %v7664_v16  ;;  %v3275_v57 = vmax.f32 %v6438_v34, 0.0  ;;  %v3277_v58 = vmax.f32 %v6502_v36, 0.0 }
 0x326   :  { %v3278_v55 = vmax.f32 %v6439_v42, 0.0  ;;  %v3280_v56 = vmax.f32 %v6503_v44, 0.0  ;;  %4415 = vmatprep.subr.bf16.mxu0 %v7669_v24  ;;  %4801 = vmatprep.subr.bf16.mxu1 %v7672_v28 }
 0x327   :  { %v3279_v59 = vmax.f32 %v6440_v47, 0.0  ;;  %v3281_v61 = vmax.f32 %v6504_v48, 0.0 }
 0x328   :  { %v3370_v63 = vpack.c.bf16 %v3278_v55, %v3274_v53  ;;  %v8131_v1 = vpack.c.bf16 %v3280_v56, %v3276_v54 }
 0x329   :  { %v3371_v3 = vpack.c.bf16 %v3279_v59, %v3275_v57  ;;  %v8133_v4 = vpack.c.bf16 %v3281_v61, %v3277_v58  ;;  %v2369_v5 = vpop.f32.mrb[36].mxu0  ;;  %v3141_v6 = vpop.f32.mrb[36].mxu1  ;;  %4416 = vmatpush1.bf16.msra.mxu0 %v7667_v50  ;;  %4802 = vmatpush1.bf16.msra.mxu1 %v7670_v52 }
 0x32a   :  { %v6441_v7 = vadd.f32 %v2369_v5, %v8013_v30  ;;  %v6505_v8 = vadd.f32 %v3141_v6, %v8017_v31  ;;  %v2371_v10 = vpop.f32.mrb[37].mxu0  ;;  %v3143_v12 = vpop.f32.mrb[37].mxu1 }
 0x32b   :  { %v6442_v13 = vadd.f32 %v2371_v10, %v8021_v32  ;;  %v6506_v14 = vadd.f32 %v3143_v12, %v8025_v33  ;;  %v2373_v16 = vpop.f32.mrb[38].mxu0  ;;  %v3145_v19 = vpop.f32.mrb[38].mxu1  ;;  %4304 = vmatprep.mubr.bf16.mxu0 %v3371_v3  ;;  %4690 = vmatprep.mubr.bf16.mxu1 %v3371_v3 }
 0x32c   :  { %v6443_v21 = vadd.f32 %v2373_v16, %v8013_v30  ;;  %v6507_v22 = vadd.f32 %v3145_v19, %v8017_v31  ;;  %v2375_v23 = vpop.f32.mrb[39].mxu0  ;;  %v3147_v24 = vpop.f32.mrb[39].mxu1  ;;  %4305 = vmatmul.mubr.bf16.gmra.mrb[96].mxu0 %v3370_v63  ;;  %4691 = vmatmul.mubr.bf16.gmra.mrb[96].mxu1 %v3370_v63  ;;  %v3282_v36 = vmax.f32 %v6441_v7, 0.0  ;;  %v3284_v39 = vmax.f32 %v6505_v8, 0.0 }
 0x32d   :  { %v6444_v28 = vadd.f32 %v2375_v23, %v8021_v32  ;;  %v6508_v34 = vadd.f32 %v3147_v24, %v8025_v33  ;;  %v3283_v44 = vmax.f32 %v6442_v13, 0.0  ;;  %v3285_v45 = vmax.f32 %v6506_v14, 0.0 }
 0x32e   :  { %v3286_v40 = vmax.f32 %v6443_v21, 0.0  ;;  %v3288_v42 = vmax.f32 %v6507_v22, 0.0 }
 0x32f   :  { %v3287_v46 = vmax.f32 %v6444_v28, 0.0  ;;  %v3289_v47 = vmax.f32 %v6508_v34, 0.0 }
 0x330   :  { %v3374_v48 = vpack.c.bf16 %v3286_v40, %v3282_v36  ;;  %v8143_v50 = vpack.c.bf16 %v3288_v42, %v3284_v39 }
 0x331   :  { %v3375_v52 = vpack.c.bf16 %v3287_v46, %v3283_v44  ;;  %v8145_v53 = vpack.c.bf16 %v3289_v47, %v3285_v45  ;;  %v2379_v54 = vpop.f32.mrb[40].mxu0  ;;  %v3151_v55 = vpop.f32.mrb[40].mxu1 }
 0x332   :  { %v6445_v56 = vadd.f32 %v2379_v54, %v8013_v30  ;;  %v6509_v57 = vadd.f32 %v3151_v55, %v8017_v31  ;;  %v2381_v58 = vpop.f32.mrb[41].mxu0  ;;  %v3153_v59 = vpop.f32.mrb[41].mxu1 }
 0x333   :  { %v6446_v61 = vadd.f32 %v2381_v58, %v8021_v32  ;;  %v6510_v63 = vadd.f32 %v3153_v59, %v8025_v33  ;;  %v2383_v3 = vpop.f32.mrb[42].mxu0  ;;  %v3155_v5 = vpop.f32.mrb[42].mxu1  ;;  %4314 = vmatprep.mubr.bf16.mxu0 %v3375_v52  ;;  %4700 = vmatprep.mubr.bf16.mxu1 %v3375_v52 }
 0x334   :  { %v6447_v6 = vadd.f32 %v2383_v3, %v8013_v30  ;;  %v6511_v7 = vadd.f32 %v3155_v5, %v8017_v31  ;;  %v2385_v8 = vpop.f32.mrb[43].mxu0  ;;  %v3157_v10 = vpop.f32.mrb[43].mxu1  ;;  %4315 = vmatmul.mubr.bf16.gmra.mrb[100].mxu0 %v3374_v48  ;;  %4701 = vmatmul.mubr.bf16.gmra.mrb[100].mxu1 %v3374_v48  ;;  %v3290_v14 = vmax.f32 %v6445_v56, 0.0  ;;  %v3292_v16 = vmax.f32 %v6509_v57, 0.0 }
 0x335   :  { %v6448_v12 = vadd.f32 %v2385_v8, %v8021_v32  ;;  %v6512_v13 = vadd.f32 %v3157_v10, %v8025_v33  ;;  %v3291_v22 = vmax.f32 %v6446_v61, 0.0  ;;  %v3293_v23 = vmax.f32 %v6510_v63, 0.0 }
 0x336   :  { %v3294_v19 = vmax.f32 %v6447_v6, 0.0  ;;  %v3296_v21 = vmax.f32 %v6511_v7, 0.0 }
 0x337   :  { %v3295_v24 = vmax.f32 %v6448_v12, 0.0  ;;  %v3297_v28 = vmax.f32 %v6512_v13, 0.0 }
 0x338   :  { %v3378_v34 = vpack.c.bf16 %v3294_v19, %v3290_v14  ;;  %v8155_v36 = vpack.c.bf16 %v3296_v21, %v3292_v16 }
 0x339   :  { %v3379_v39 = vpack.c.bf16 %v3295_v24, %v3291_v22  ;;  %v8157_v40 = vpack.c.bf16 %v3297_v28, %v3293_v23  ;;  %v2389_v42 = vpop.f32.mrb[44].mxu0  ;;  %v3161_v44 = vpop.f32.mrb[44].mxu1 }
 0x33a   :  { %v6449_v45 = vadd.f32 %v2389_v42, %v8013_v30  ;;  %v6513_v46 = vadd.f32 %v3161_v44, %v8017_v31  ;;  %v2391_v47 = vpop.f32.mrb[45].mxu0  ;;  %v3163_v48 = vpop.f32.mrb[45].mxu1 }
 0x33b   :  { %v6450_v52 = vadd.f32 %v2391_v47, %v8021_v32  ;;  %v6514_v54 = vadd.f32 %v3163_v48, %v8025_v33  ;;  %v2393_v55 = vpop.f32.mrb[46].mxu0  ;;  %v3165_v56 = vpop.f32.mrb[46].mxu1  ;;  %4324 = vmatprep.mubr.bf16.mxu0 %v3379_v39  ;;  %4710 = vmatprep.mubr.bf16.mxu1 %v3379_v39 }
 0x33c   :  { %v6451_v57 = vadd.f32 %v2393_v55, %v8013_v30  ;;  %v6515_v58 = vadd.f32 %v3165_v56, %v8017_v31  ;;  %v2395_v59 = vpop.f32.mrb[47].mxu0  ;;  %v3167_v61 = vpop.f32.mrb[47].mxu1  ;;  %4325 = vmatmul.mubr.bf16.gmra.mrb[104].mxu0 %v3378_v34  ;;  %4711 = vmatmul.mubr.bf16.gmra.mrb[104].mxu1 %v3378_v34  ;;  %v3298_v5 = vmax.f32 %v6449_v45, 0.0  ;;  %v3300_v6 = vmax.f32 %v6513_v46, 0.0 }
 0x33d   :  { %v6452_v63 = vadd.f32 %v2395_v59, %v8021_v32  ;;  %v6516_v3 = vadd.f32 %v3167_v61, %v8025_v33  ;;  %v3299_v10 = vmax.f32 %v6450_v52, 0.0  ;;  %v3301_v12 = vmax.f32 %v6514_v54, 0.0 }
 0x33e   :  { %v3302_v7 = vmax.f32 %v6451_v57, 0.0  ;;  %v3304_v8 = vmax.f32 %v6515_v58, 0.0  ;;  %v7673_v58 = vld [vmem:[#allocation8 + $0x40] sm:$0xff]  }
 0x33f   :  { %v3303_v13 = vmax.f32 %v6452_v63, 0.0  ;;  %v3305_v14 = vmax.f32 %v6516_v3, 0.0  ;;  %6181 = vmatprep.subr.bf16.mxu0 %v7673_v58 }
 0x340   :  { %v3382_v16 = vpack.c.bf16 %v3302_v7, %v3298_v5  ;;  %v8167_v19 = vpack.c.bf16 %v3304_v8, %v3300_v6 }
 0x341   :  { %v3383_v21 = vpack.c.bf16 %v3303_v13, %v3299_v10  ;;  %v8169_v22 = vpack.c.bf16 %v3305_v14, %v3301_v12  ;;  %v2399_v23 = vpop.f32.mrb[48].mxu0  ;;  %v3171_v24 = vpop.f32.mrb[48].mxu1 }
 0x342   :  { %v6453_v28 = vadd.f32 %v2399_v23, %v8013_v30  ;;  %v6517_v34 = vadd.f32 %v3171_v24, %v8017_v31  ;;  %v2401_v39 = vpop.f32.mrb[49].mxu0  ;;  %v3173_v42 = vpop.f32.mrb[49].mxu1 }
 0x343   :  { %v6454_v44 = vadd.f32 %v2401_v39, %v8021_v32  ;;  %v6518_v45 = vadd.f32 %v3173_v42, %v8025_v33  ;;  %v2403_v46 = vpop.f32.mrb[50].mxu0  ;;  %v3175_v47 = vpop.f32.mrb[50].mxu1  ;;  %4334 = vmatprep.mubr.bf16.mxu0 %v3383_v21  ;;  %4720 = vmatprep.mubr.bf16.mxu1 %v3383_v21 }
 0x344   :  { %v6455_v48 = vadd.f32 %v2403_v46, %v8013_v30  ;;  %v6519_v52 = vadd.f32 %v3175_v47, %v8017_v31  ;;  %v2405_v54 = vpop.f32.mrb[51].mxu0  ;;  %v3177_v55 = vpop.f32.mrb[51].mxu1  ;;  %4335 = vmatmul.mubr.bf16.gmra.mrb[108].mxu0 %v3382_v16  ;;  %4721 = vmatmul.mubr.bf16.gmra.mrb[108].mxu1 %v3382_v16  ;;  %v3306_v59 = vmax.f32 %v6453_v28, 0.0  ;;  %v3308_v61 = vmax.f32 %v6517_v34, 0.0 }
 0x345   :  { %v6456_v56 = vadd.f32 %v2405_v54, %v8021_v32  ;;  %v6520_v57 = vadd.f32 %v3177_v55, %v8025_v33  ;;  %v3307_v5 = vmax.f32 %v6454_v44, 0.0  ;;  %v3309_v6 = vmax.f32 %v6518_v45, 0.0  ;;  %v7675_v54 = vld [vmem:[#allocation8 + $0xc0] sm:$0xff]  }
 0x346   :  { %v3310_v63 = vmax.f32 %v6455_v48, 0.0  ;;  %v3312_v3 = vmax.f32 %v6519_v52, 0.0  ;;  %6293 = vmatprep.subr.bf16.mxu1 %v7675_v54 }
 0x347   :  { %v3311_v7 = vmax.f32 %v6456_v56, 0.0  ;;  %v3313_v8 = vmax.f32 %v6520_v57, 0.0 }
 0x348   :  { %v3386_v10 = vpack.c.bf16 %v3310_v63, %v3306_v59  ;;  %v8179_v12 = vpack.c.bf16 %v3312_v3, %v3308_v61 }
 0x349   :  { %v3387_v13 = vpack.c.bf16 %v3311_v7, %v3307_v5  ;;  %v8181_v14 = vpack.c.bf16 %v3313_v8, %v3309_v6  ;;  %v2409_v16 = vpop.f32.mrb[52].mxu0  ;;  %v3181_v21 = vpop.f32.mrb[52].mxu1 }
 0x34a   :  { %v6457_v23 = vadd.f32 %v2409_v16, %v8013_v30  ;;  %v6521_v24 = vadd.f32 %v3181_v21, %v8017_v31  ;;  %v2411_v28 = vpop.f32.mrb[53].mxu0  ;;  %v3183_v34 = vpop.f32.mrb[53].mxu1 }
 0x34b   :  { %v6458_v39 = vadd.f32 %v2411_v28, %v8021_v32  ;;  %v6522_v42 = vadd.f32 %v3183_v34, %v8025_v33  ;;  %v2413_v44 = vpop.f32.mrb[54].mxu0  ;;  %v3185_v45 = vpop.f32.mrb[54].mxu1  ;;  %4344 = vmatprep.mubr.bf16.mxu0 %v3387_v13  ;;  %4730 = vmatprep.mubr.bf16.mxu1 %v3387_v13 }
 0x34c   :  { %v6459_v46 = vadd.f32 %v2413_v44, %v8013_v30  ;;  %v6523_v47 = vadd.f32 %v3185_v45, %v8017_v31  ;;  %v2415_v48 = vpop.f32.mrb[55].mxu0  ;;  %v3187_v52 = vpop.f32.mrb[55].mxu1  ;;  %4345 = vmatmul.mubr.bf16.gmra.mrb[112].mxu0 %v3386_v10  ;;  %4731 = vmatmul.mubr.bf16.gmra.mrb[112].mxu1 %v3386_v10  ;;  %v3314_v57 = vmax.f32 %v6457_v23, 0.0  ;;  %v3316_v58 = vmax.f32 %v6521_v24, 0.0 }
 0x34d   :  { %v6460_v55 = vadd.f32 %v2415_v48, %v8021_v32  ;;  %v6524_v56 = vadd.f32 %v3187_v52, %v8025_v33  ;;  %v3315_v63 = vmax.f32 %v6458_v39, 0.0  ;;  %v3317_v3 = vmax.f32 %v6522_v42, 0.0 }
 0x34e   :  { %v3318_v59 = vmax.f32 %v6459_v46, 0.0  ;;  %v3320_v61 = vmax.f32 %v6523_v47, 0.0 }
 0x34f   :  { %v3319_v5 = vmax.f32 %v6460_v55, 0.0  ;;  %v3321_v6 = vmax.f32 %v6524_v56, 0.0 }
 0x350   :  { %v3390_v7 = vpack.c.bf16 %v3318_v59, %v3314_v57  ;;  %v8191_v8 = vpack.c.bf16 %v3320_v61, %v3316_v58 }
 0x351   :  { %v3391_v13 = vpack.c.bf16 %v3319_v5, %v3315_v63  ;;  %v8193_v16 = vpack.c.bf16 %v3321_v6, %v3317_v3  ;;  %v2419_v10 = vpop.f32.mrb[56].mxu0  ;;  %v3191_v21 = vpop.f32.mrb[56].mxu1 }
 0x352   :  { %v6461_v28 = vadd.f32 %v2419_v10, %v8013_v30  ;;  %v6525_v23 = vadd.f32 %v3191_v21, %v8017_v31  ;;  %v2421_v24 = vpop.f32.mrb[57].mxu0  ;;  %v3193_v34 = vpop.f32.mrb[57].mxu1 }
 0x353   :  { %v6462_v44 = vadd.f32 %v2421_v24, %v8021_v32  ;;  %v6526_v39 = vadd.f32 %v3193_v34, %v8025_v33  ;;  %v2423_v42 = vpop.f32.mrb[58].mxu0  ;;  %v3195_v45 = vpop.f32.mrb[58].mxu1  ;;  %4354 = vmatprep.mubr.bf16.mxu0 %v3391_v13  ;;  %4740 = vmatprep.mubr.bf16.mxu1 %v3391_v13 }
 0x354   :  { %v6463_v46 = vadd.f32 %v2423_v42, %v8013_v30  ;;  %v6527_v47 = vadd.f32 %v3195_v45, %v8017_v31  ;;  %v2425_v48 = vpop.f32.mrb[59].mxu0  ;;  %v3197_v52 = vpop.f32.mrb[59].mxu1  ;;  %4355 = vmatmul.mubr.bf16.gmra.mrb[116].mxu0 %v3390_v7  ;;  %4741 = vmatmul.mubr.bf16.gmra.mrb[116].mxu1 %v3390_v7  ;;  %v3322_v56 = vmax.f32 %v6461_v28, 0.0  ;;  %v3324_v57 = vmax.f32 %v6525_v23, 0.0 }
 0x355   :  { %v6464_v54 = vadd.f32 %v2425_v48, %v8021_v32  ;;  %v6528_v55 = vadd.f32 %v3197_v52, %v8025_v33  ;;  %v3323_v61 = vmax.f32 %v6462_v44, 0.0  ;;  %v3325_v63 = vmax.f32 %v6526_v39, 0.0 }
 0x356   :  { %v3326_v58 = vmax.f32 %v6463_v46, 0.0  ;;  %v3328_v59 = vmax.f32 %v6527_v47, 0.0 }
 0x357   :  { %v3327_v3 = vmax.f32 %v6464_v54, 0.0  ;;  %v3329_v5 = vmax.f32 %v6528_v55, 0.0 }
 0x358   :  { %v3394_v6 = vpack.c.bf16 %v3326_v58, %v3322_v56  ;;  %v8203_v13 = vpack.c.bf16 %v3328_v59, %v3324_v57 }
 0x359   :  { %v3395_v10 = vpack.c.bf16 %v3327_v3, %v3323_v61  ;;  %v8205_v21 = vpack.c.bf16 %v3329_v5, %v3325_v63  ;;  %v2429_v24 = vpop.f32.mrb[60].mxu0  ;;  %v3201_v7 = vpop.f32.mrb[60].mxu1 }
 0x35a   :  { %v6465_v34 = vadd.f32 %v2429_v24, %v8013_v30  ;;  %v6529_v42 = vadd.f32 %v3201_v7, %v8017_v31  ;;  %v2431_v28 = vpop.f32.mrb[61].mxu0  ;;  %v3203_v23 = vpop.f32.mrb[61].mxu1 }
 0x35b   :  { %v6466_v45 = vadd.f32 %v2431_v28, %v8021_v32  ;;  %v6530_v44 = vadd.f32 %v3203_v23, %v8025_v33  ;;  %v2433_v39 = vpop.f32.mrb[62].mxu0  ;;  %v3205_v46 = vpop.f32.mrb[62].mxu1  ;;  %4364 = vmatprep.mubr.bf16.mxu0 %v3395_v10  ;;  %4750 = vmatprep.mubr.bf16.mxu1 %v3395_v10  ;;  %v7680_v28 = vld [vmem:[#allocation8 + $0x88] sm:$0xff]   ;;  %v7681_v23 = vld [vmem:[#allocation8 + $0x50] sm:$0xff]  }
 0x35c   :  { %v6467_v47 = vadd.f32 %v2433_v39, %v8013_v30  ;;  %v6531_v48 = vadd.f32 %v3205_v46, %v8017_v31  ;;  %v2435_v52 = vpop.f32.mrb[63].mxu0  ;;  %v3207_v54 = vpop.f32.mrb[63].mxu1  ;;  %4365 = vmatmul.mubr.bf16.gmra.mrb[120].mxu0 %v3394_v6  ;;  %4751 = vmatmul.mubr.bf16.gmra.mrb[120].mxu1 %v3394_v6  ;;  %v3330_v57 = vmax.f32 %v6465_v34, 0.0  ;;  %v3332_v58 = vmax.f32 %v6529_v42, 0.0  ;;  %v7677_v6 = vld [vmem:[#allocation8 + $0x48] sm:$0xff]   ;;  %v7685_v39 = vld [vmem:[#allocation8 + $0x58] sm:$0xff]  }
 0x35d   :  { %v6468_v55 = vadd.f32 %v2435_v52, %v8021_v32  ;;  %v6532_v56 = vadd.f32 %v3207_v54, %v8025_v33  ;;  %v3331_v63 = vmax.f32 %v6466_v45, 0.0  ;;  %v3333_v3 = vmax.f32 %v6530_v44, 0.0  ;;  %v7674_v32 = vld [vmem:[#allocation8] sm:$0xff]   ;;  %v7679_v34 = vld [vmem:[#allocation8 + $0xc8] sm:$0xff]   ;;  %v7682_v45 = vld [vmem:[#allocation8 + $0x10] sm:$0xff]  }
 0x35e   :  { %v3334_v59 = vmax.f32 %v6467_v47, 0.0  ;;  %v3336_v61 = vmax.f32 %v6531_v48, 0.0  ;;  %v7676_v33 = vld [vmem:[#allocation8 + $0x80] sm:$0xff]   ;;  %v7678_v42 = vld [vmem:[#allocation8 + $0x8] sm:$0xff]   ;;  %v7684_v44 = vld [vmem:[#allocation8 + $0x90] sm:$0xff]  }
 0x35f   :  { %v3335_v5 = vmax.f32 %v6468_v55, 0.0  ;;  %v3337_v10 = vmax.f32 %v6532_v56, 0.0  ;;  %v7688_v46 = vld [vmem:[#allocation8 + $0x98] sm:$0xff]   ;;  %v7689_v47 = vld [vmem:[#allocation8 + $0x60] sm:$0xff]   ;;  %v7693_v55 = vld [vmem:[#allocation8 + $0x68] sm:$0xff]  }
 0x360   :  { %v3398_v24 = vpack.c.bf16 %v3334_v59, %v3330_v57  ;;  %v8215_v30 = vpack.c.bf16 %v3336_v61, %v3332_v58  ;;  %v7691_v48 = vld [vmem:[#allocation8 + $0xe0] sm:$0xff]   ;;  %v7696_v56 = vld [vmem:[#allocation8 + $0xa8] sm:$0xff]   ;;  %v7697_v57 = vld [vmem:[#allocation8 + $0x70] sm:$0xff]  }
 0x361   :  { %v3399_v31 = vpack.c.bf16 %v3335_v5, %v3331_v63  ;;  %v8217_v7 = vpack.c.bf16 %v3337_v10, %v3333_v3  ;;  %v7690_v52 = vld [vmem:[#allocation8 + $0x20] sm:$0xff]   ;;  %v7699_v58 = vld [vmem:[#allocation8 + $0xf0] sm:$0xff]   ;;  %v7701_v63 = vld [vmem:[#allocation8 + $0x78] sm:$0xff]  }
 0x362   :  { %v7692_v54 = vld [vmem:[#allocation8 + $0xa0] sm:$0xff]   ;;  %v7698_v59 = vld [vmem:[#allocation8 + $0x30] sm:$0xff]   ;;  %v7704_v3 = vld [vmem:[#allocation8 + $0xb8] sm:$0xff]  }
 0x363   :  { %4374 = vmatprep.mubr.bf16.mxu0 %v3399_v31  ;;  %4760 = vmatprep.mubr.bf16.mxu1 %v3399_v31  ;;  %v7700_v61 = vld [vmem:[#allocation8 + $0xb0] sm:$0xff]  }
 0x364   :  { %4375 = vmatmul.mubr.bf16.gmra.mrb[124].mxu0 %v3398_v24  ;;  %4761 = vmatmul.mubr.bf16.gmra.mrb[124].mxu1 %v3398_v24 }
 0x365   :  { %4417 = vmatprep.mubr.bf16.mxu0 %v8037_v62  ;;  %4803 = vmatprep.mubr.bf16.mxu1 %v8037_v62  ;;  %v7683_v62 = vld [vmem:[#allocation8 + $0xd0] sm:$0xff]  }
 0x36c   :  { %4418 = vmatmul.mubr.bf16.vlgmr.msra.gmra.mrb[64].mxu0 %v8035_v60  ;;  %4804 = vmatmul.mubr.bf16.vlgmr.msra.gmra.mrb[64].mxu1 %v8035_v60  ;;  %v7687_v60 = vld [vmem:[#allocation8 + $0xd8] sm:$0xff]  }
 0x36d   :  { %4427 = vmatprep.mubr.bf16.mxu0 %v8049_v43  ;;  %4813 = vmatprep.mubr.bf16.mxu1 %v8049_v43  ;;  %v7686_v43 = vld [vmem:[#allocation8 + $0x18] sm:$0xff]  }
 0x36e   :  { %6182 = vmatpush3.bf16.msra.mxu0 %v7674_v32  ;;  %6294 = vmatpush3.bf16.msra.mxu1 %v7676_v33 }
 0x36f   :  { %6183 = vmatprep.subr.bf16.mxu0 %v7677_v6  ;;  %6295 = vmatprep.subr.bf16.mxu1 %v7679_v34 }
 0x372   :  { %6184 = vmatpush3.bf16.msra.mxu0 %v7678_v42  ;;  %6296 = vmatpush3.bf16.msra.mxu1 %v7680_v28 }
 0x373   :  { %6185 = vmatprep.subr.bf16.mxu0 %v7681_v23  ;;  %6297 = vmatprep.subr.bf16.mxu1 %v7683_v62 }
 0x374   :  { %4428 = vmatmul.mubr.bf16.gmra.mrb[68].mxu0 %v8047_v41  ;;  %4814 = vmatmul.mubr.bf16.gmra.mrb[68].mxu1 %v8047_v41  ;;  %v7695_v41 = vld [vmem:[#allocation8 + $0xe8] sm:$0xff]  }
 0x375   :  { %4437 = vmatprep.mubr.bf16.mxu0 %v8061_v17  ;;  %4823 = vmatprep.mubr.bf16.mxu1 %v8061_v17  ;;  %v7694_v17 = vld [vmem:[#allocation8 + $0x28] sm:$0xff]  }
 0x376   :  { %6186 = vmatpush3.bf16.msra.mxu0 %v7682_v45  ;;  %6298 = vmatpush3.bf16.msra.mxu1 %v7684_v44 }
 0x377   :  { %6187 = vmatprep.subr.bf16.mxu0 %v7685_v39  ;;  %6299 = vmatprep.subr.bf16.mxu1 %v7687_v60 }
 0x37a   :  { %6188 = vmatpush3.bf16.msra.mxu0 %v7686_v43  ;;  %6300 = vmatpush3.bf16.msra.mxu1 %v7688_v46 }
 0x37b   :  { %6189 = vmatprep.subr.bf16.mxu0 %v7689_v47  ;;  %6301 = vmatprep.subr.bf16.mxu1 %v7691_v48 }
 0x37c   :  { %4438 = vmatmul.mubr.bf16.gmra.mrb[72].mxu0 %v8059_v15  ;;  %4824 = vmatmul.mubr.bf16.gmra.mrb[72].mxu1 %v8059_v15  ;;  %v7703_v15 = vld [vmem:[#allocation8 + $0xf8] sm:$0xff]  }
 0x37d   :  { %4447 = vmatprep.mubr.bf16.mxu0 %v8073_v2  ;;  %4833 = vmatprep.mubr.bf16.mxu1 %v8073_v2  ;;  %v7702_v2 = vld [vmem:[#allocation8 + $0x38] sm:$0xff]  }
 0x37e   :  { %6190 = vmatpush3.bf16.msra.mxu0 %v7690_v52  ;;  %6302 = vmatpush3.bf16.msra.mxu1 %v7692_v54 }
 0x37f   :  { %6191 = vmatprep.subr.bf16.mxu0 %v7693_v55  ;;  %6303 = vmatprep.subr.bf16.mxu1 %v7695_v41 }
 0x382   :  { %6192 = vmatpush3.bf16.msra.mxu0 %v7694_v17  ;;  %6304 = vmatpush3.bf16.msra.mxu1 %v7696_v56 }
 0x383   :  { %6193 = vmatprep.subr.bf16.mxu0 %v7697_v57  ;;  %6305 = vmatprep.subr.bf16.mxu1 %v7699_v58 }
 0x384   :  { %4448 = vmatmul.mubr.bf16.gmra.mrb[76].mxu0 %v8071_v0  ;;  %4834 = vmatmul.mubr.bf16.gmra.mrb[76].mxu1 %v8071_v0  ;;  %v3530_v0 = vld [vmem:[%s8483_s4] sm:$0xf] }
 0x385   :  { %4457 = vmatprep.mubr.bf16.mxu0 %v8085_v51  ;;  %4843 = vmatprep.mubr.bf16.mxu1 %v8085_v51  ;;  %v8292_v51 = vrot.slane %v3530_v0, %v627_v27 }
 0x386   :  { %6194 = vmatpush3.bf16.msra.mxu0 %v7698_v59  ;;  %6306 = vmatpush3.bf16.msra.mxu1 %v7700_v61 }
 0x387   :  { %6195 = vmatprep.subr.bf16.mxu0 %v7701_v63  ;;  %6307 = vmatprep.subr.bf16.mxu1 %v7703_v15 }
 0x38a   :  { %6196 = vmatpush3.bf16.msra.mxu0 %v7702_v2  ;;  %6308 = vmatpush3.bf16.msra.mxu1 %v7704_v3 }
 0x38c   :  { %4458 = vmatmul.mubr.bf16.gmra.mrb[80].mxu0 %v8083_v49  ;;  %4844 = vmatmul.mubr.bf16.gmra.mrb[80].mxu1 %v8083_v49  ;;  %v8288_v49 = vrot.slane %v3530_v0, %v619_v26 }
 0x38d   :  { %4467 = vmatprep.mubr.bf16.mxu0 %v8097_v37  ;;  %4853 = vmatprep.mubr.bf16.mxu1 %v8097_v37  ;;  %v8300_v37 = vrot.slane %v3530_v0, %v631_v29 }
 0x394   :  { %4468 = vmatmul.mubr.bf16.gmra.mrb[84].mxu0 %v8095_v35  ;;  %4854 = vmatmul.mubr.bf16.gmra.mrb[84].mxu1 %v8095_v35  ;;  %v8296_v35 = vrot.slane %v3530_v0, %v623_v38 }
 0x395   :  { %4477 = vmatprep.mubr.bf16.mxu0 %v8109_v20  ;;  %4863 = vmatprep.mubr.bf16.mxu1 %v8109_v20 }
 0x39c   :  { %4478 = vmatmul.mubr.bf16.gmra.mrb[88].mxu0 %v8107_v18  ;;  %4864 = vmatmul.mubr.bf16.gmra.mrb[88].mxu1 %v8107_v18 }
 0x39d   :  { %4487 = vmatprep.mubr.bf16.mxu0 %v8121_v11  ;;  %4873 = vmatprep.mubr.bf16.mxu1 %v8121_v11 }
 0x3a4   :  { %4488 = vmatmul.mubr.bf16.gmra.mrb[92].mxu0 %v8119_v9  ;;  %4874 = vmatmul.mubr.bf16.gmra.mrb[92].mxu1 %v8119_v9 }
 0x3a5   :  { %4497 = vmatprep.mubr.bf16.mxu0 %v8133_v4  ;;  %4883 = vmatprep.mubr.bf16.mxu1 %v8133_v4 }
 0x3ac   :  { %4498 = vmatmul.mubr.bf16.gmra.mrb[96].mxu0 %v8131_v1  ;;  %4884 = vmatmul.mubr.bf16.gmra.mrb[96].mxu1 %v8131_v1 }
 0x3ad   :  { %4507 = vmatprep.mubr.bf16.mxu0 %v8145_v53  ;;  %4893 = vmatprep.mubr.bf16.mxu1 %v8145_v53 }
 0x3b4   :  { %4508 = vmatmul.mubr.bf16.gmra.mrb[100].mxu0 %v8143_v50  ;;  %4894 = vmatmul.mubr.bf16.gmra.mrb[100].mxu1 %v8143_v50 }
 0x3b5   :  { %4517 = vmatprep.mubr.bf16.mxu0 %v8157_v40  ;;  %4903 = vmatprep.mubr.bf16.mxu1 %v8157_v40 }
 0x3bc   :  { %4518 = vmatmul.mubr.bf16.gmra.mrb[104].mxu0 %v8155_v36  ;;  %4904 = vmatmul.mubr.bf16.gmra.mrb[104].mxu1 %v8155_v36 }
 0x3bd   :  { %4527 = vmatprep.mubr.bf16.mxu0 %v8169_v22  ;;  %4913 = vmatprep.mubr.bf16.mxu1 %v8169_v22 }
 0x3c4   :  { %4528 = vmatmul.mubr.bf16.gmra.mrb[108].mxu0 %v8167_v19  ;;  %4914 = vmatmul.mubr.bf16.gmra.mrb[108].mxu1 %v8167_v19 }
 0x3c5   :  { %4537 = vmatprep.mubr.bf16.mxu0 %v8181_v14  ;;  %4923 = vmatprep.mubr.bf16.mxu1 %v8181_v14 }
 0x3cc   :  { %4538 = vmatmul.mubr.bf16.gmra.mrb[112].mxu0 %v8179_v12  ;;  %4924 = vmatmul.mubr.bf16.gmra.mrb[112].mxu1 %v8179_v12 }
 0x3cd   :  { %4547 = vmatprep.mubr.bf16.mxu0 %v8193_v16  ;;  %4933 = vmatprep.mubr.bf16.mxu1 %v8193_v16 }
 0x3d4   :  { %4548 = vmatmul.mubr.bf16.gmra.mrb[116].mxu0 %v8191_v8  ;;  %4934 = vmatmul.mubr.bf16.gmra.mrb[116].mxu1 %v8191_v8 }
 0x3d5   :  { %4557 = vmatprep.mubr.bf16.mxu0 %v8205_v21  ;;  %4943 = vmatprep.mubr.bf16.mxu1 %v8205_v21 }
 0x3dc   :  { %4558 = vmatmul.mubr.bf16.gmra.mrb[120].mxu0 %v8203_v13  ;;  %4944 = vmatmul.mubr.bf16.gmra.mrb[120].mxu1 %v8203_v13 }
 0x3dd   :  { %4567 = vmatprep.mubr.bf16.mxu0 %v8217_v7  ;;  %4953 = vmatprep.mubr.bf16.mxu1 %v8217_v7 }
 0x3e4   :  { %4568 = vmatmul.mubr.bf16.gmra.mrb[124].mxu0 %v8215_v30  ;;  %4954 = vmatmul.mubr.bf16.gmra.mrb[124].mxu1 %v8215_v30 }
 0x43f   :  { %v4419_v18 = vpop.f32.mrb[64].mxu0  ;;  %v4805_v20 = vpop.f32.mrb[64].mxu1 }
 0x440   :  { %v6533_v9 = vadd.f32 %v4419_v18, %v8288_v49  ;;  %v6597_v11 = vadd.f32 %v4805_v20, %v8292_v51  ;;  %v4421_v26 = vpop.f32.mrb[65].mxu0  ;;  %v4807_v1 = vpop.f32.mrb[65].mxu1 }
 0x441   :  { %v6534_v4 = vadd.f32 %v4421_v26, %v8296_v35  ;;  %v6598_v27 = vadd.f32 %v4807_v1, %v8300_v37  ;;  %v4423_v50 = vpop.f32.mrb[66].mxu0  ;;  %v4809_v53 = vpop.f32.mrb[66].mxu1 }
 0x442   :  { %v6535_v38 = vadd.f32 %v4423_v50, %v8288_v49  ;;  %v6599_v25 = vadd.f32 %v4809_v53, %v8292_v51  ;;  %v4425_v29 = vpop.f32.mrb[67].mxu0  ;;  %v4811_v36 = vpop.f32.mrb[67].mxu1  ;;  %v4964_v22 = vmax.f32 %v6533_v9, 0.0  ;;  %v4966_v12 = vmax.f32 %v6597_v11, 0.0 }
 0x443   :  { %v6536_v40 = vadd.f32 %v4425_v29, %v8296_v35  ;;  %v6600_v19 = vadd.f32 %v4811_v36, %v8300_v37  ;;  %v4965_v16 = vmax.f32 %v6534_v4, 0.0  ;;  %v4967_v13 = vmax.f32 %v6598_v27, 0.0 }
 0x444   :  { %v4968_v14 = vmax.f32 %v6535_v38, 0.0  ;;  %v4970_v8 = vmax.f32 %v6599_v25, 0.0 }
 0x445   :  { %v4969_v21 = vmax.f32 %v6536_v40, 0.0  ;;  %v4971_v5 = vmax.f32 %v6600_v19, 0.0 }
 0x446   :  { %v5092_v10 = vpack.c.bf16 %v4968_v14, %v4964_v22  ;;  %v5094_v24 = vpack.c.bf16 %v4970_v8, %v4966_v12 }
 0x447   :  { %v5093_v30 = vpack.c.bf16 %v4969_v21, %v4965_v16  ;;  %v5095_v31 = vpack.c.bf16 %v4971_v5, %v4967_v13  ;;  %v4429_v7 = vpop.f32.mrb[68].mxu0  ;;  %v4815_v32 = vpop.f32.mrb[68].mxu1 }
 0x448   :  { %v6537_v33 = vadd.f32 %v4429_v7, %v8288_v49  ;;  %v6601_v6 = vadd.f32 %v4815_v32, %v8292_v51  ;;  %v4431_v34 = vpop.f32.mrb[69].mxu0  ;;  %v4817_v42 = vpop.f32.mrb[69].mxu1 }
 0x449   :  { %v6538_v28 = vadd.f32 %v4431_v34, %v8296_v35  ;;  %v6602_v23 = vadd.f32 %v4817_v42, %v8300_v37  ;;  %v4433_v62 = vpop.f32.mrb[70].mxu0  ;;  %v4819_v45 = vpop.f32.mrb[70].mxu1  ;;  %5451 = vmatprep.mubr.bf16.mxu0 %v5093_v30  ;;  %5612 = vmatprep.mubr.bf16.mxu1 %v5095_v31 }
 0x44a   :  { %v6539_v44 = vadd.f32 %v4433_v62, %v8288_v49  ;;  %v6603_v39 = vadd.f32 %v4819_v45, %v8292_v51  ;;  %v4435_v60 = vpop.f32.mrb[71].mxu0  ;;  %v4821_v43 = vpop.f32.mrb[71].mxu1  ;;  %5452 = vmatmul.mubr.bf16.vlgmr.msra.gmra.mrb[128].mxu0 %v5092_v10  ;;  %5613 = vmatmul.mubr.bf16.vlgmr.msra.gmra.mrb[128].mxu1 %v5094_v24  ;;  %v4972_v48 = vmax.f32 %v6537_v33, 0.0  ;;  %v4974_v52 = vmax.f32 %v6601_v6, 0.0 }
 0x44b   :  { %v6540_v46 = vadd.f32 %v4435_v60, %v8296_v35  ;;  %v6604_v47 = vadd.f32 %v4821_v43, %v8300_v37  ;;  %v4973_v41 = vmax.f32 %v6538_v28, 0.0  ;;  %v4975_v17 = vmax.f32 %v6602_v23, 0.0 }
 0x44c   :  { %v4976_v54 = vmax.f32 %v6539_v44, 0.0  ;;  %v4978_v55 = vmax.f32 %v6603_v39, 0.0 }
 0x44d   :  { %v4977_v56 = vmax.f32 %v6540_v46, 0.0  ;;  %v4979_v57 = vmax.f32 %v6604_v47, 0.0 }
 0x44e   :  { %v5096_v58 = vpack.c.bf16 %v4976_v54, %v4972_v48  ;;  %v5098_v59 = vpack.c.bf16 %v4978_v55, %v4974_v52 }
 0x44f   :  { %v5097_v61 = vpack.c.bf16 %v4977_v56, %v4973_v41  ;;  %v5099_v63 = vpack.c.bf16 %v4979_v57, %v4975_v17  ;;  %v4439_v15 = vpop.f32.mrb[72].mxu0  ;;  %v4825_v2 = vpop.f32.mrb[72].mxu1 }
 0x450   :  { %v6541_v3 = vadd.f32 %v4439_v15, %v8288_v49  ;;  %v6605_v0 = vadd.f32 %v4825_v2, %v8292_v51  ;;  %v4441_v18 = vpop.f32.mrb[73].mxu0  ;;  %v4827_v20 = vpop.f32.mrb[73].mxu1 }
 0x451   :  { %v6542_v9 = vadd.f32 %v4441_v18, %v8296_v35  ;;  %v6606_v11 = vadd.f32 %v4827_v20, %v8300_v37  ;;  %v4443_v26 = vpop.f32.mrb[74].mxu0  ;;  %v4829_v1 = vpop.f32.mrb[74].mxu1  ;;  %5459 = vmatprep.mubr.bf16.mxu0 %v5097_v61  ;;  %5620 = vmatprep.mubr.bf16.mxu1 %v5099_v63 }
 0x452   :  { %v6543_v4 = vadd.f32 %v4443_v26, %v8288_v49  ;;  %v6607_v27 = vadd.f32 %v4829_v1, %v8292_v51  ;;  %v4445_v50 = vpop.f32.mrb[75].mxu0  ;;  %v4831_v53 = vpop.f32.mrb[75].mxu1  ;;  %5460 = vmatmul.mubr.bf16.gmra.mrb[132].mxu0 %v5096_v58  ;;  %5621 = vmatmul.mubr.bf16.gmra.mrb[132].mxu1 %v5098_v59  ;;  %v4980_v29 = vmax.f32 %v6541_v3, 0.0  ;;  %v4982_v36 = vmax.f32 %v6605_v0, 0.0 }
 0x453   :  { %v6544_v38 = vadd.f32 %v4445_v50, %v8296_v35  ;;  %v6608_v25 = vadd.f32 %v4831_v53, %v8300_v37  ;;  %v4981_v22 = vmax.f32 %v6542_v9, 0.0  ;;  %v4983_v12 = vmax.f32 %v6606_v11, 0.0 }
 0x454   :  { %v4984_v40 = vmax.f32 %v6543_v4, 0.0  ;;  %v4986_v19 = vmax.f32 %v6607_v27, 0.0 }
 0x455   :  { %v4985_v14 = vmax.f32 %v6544_v38, 0.0  ;;  %v4987_v8 = vmax.f32 %v6608_v25, 0.0 }
 0x456   :  { %v5100_v16 = vpack.c.bf16 %v4984_v40, %v4980_v29  ;;  %v5102_v13 = vpack.c.bf16 %v4986_v19, %v4982_v36 }
 0x457   :  { %v5101_v21 = vpack.c.bf16 %v4985_v14, %v4981_v22  ;;  %v5103_v5 = vpack.c.bf16 %v4987_v8, %v4983_v12  ;;  %v4449_v10 = vpop.f32.mrb[76].mxu0  ;;  %v4835_v24 = vpop.f32.mrb[76].mxu1 }
 0x458   :  { %v6545_v30 = vadd.f32 %v4449_v10, %v8288_v49  ;;  %v6609_v31 = vadd.f32 %v4835_v24, %v8292_v51  ;;  %v4451_v7 = vpop.f32.mrb[77].mxu0  ;;  %v4837_v32 = vpop.f32.mrb[77].mxu1 }
 0x459   :  { %v6546_v33 = vadd.f32 %v4451_v7, %v8296_v35  ;;  %v6610_v6 = vadd.f32 %v4837_v32, %v8300_v37  ;;  %v4453_v34 = vpop.f32.mrb[78].mxu0  ;;  %v4839_v42 = vpop.f32.mrb[78].mxu1  ;;  %5467 = vmatprep.mubr.bf16.mxu0 %v5101_v21  ;;  %5628 = vmatprep.mubr.bf16.mxu1 %v5103_v5 }
 0x45a   :  { %v6547_v28 = vadd.f32 %v4453_v34, %v8288_v49  ;;  %v6611_v23 = vadd.f32 %v4839_v42, %v8292_v51  ;;  %v4455_v62 = vpop.f32.mrb[79].mxu0  ;;  %v4841_v45 = vpop.f32.mrb[79].mxu1  ;;  %5468 = vmatmul.mubr.bf16.gmra.mrb[136].mxu0 %v5100_v16  ;;  %5629 = vmatmul.mubr.bf16.gmra.mrb[136].mxu1 %v5102_v13  ;;  %v4988_v60 = vmax.f32 %v6545_v30, 0.0  ;;  %v4990_v43 = vmax.f32 %v6609_v31, 0.0 }
 0x45b   :  { %v6548_v44 = vadd.f32 %v4455_v62, %v8296_v35  ;;  %v6612_v39 = vadd.f32 %v4841_v45, %v8300_v37  ;;  %v4989_v48 = vmax.f32 %v6546_v33, 0.0  ;;  %v4991_v52 = vmax.f32 %v6610_v6, 0.0 }
 0x45c   :  { %v4992_v46 = vmax.f32 %v6547_v28, 0.0  ;;  %v4994_v47 = vmax.f32 %v6611_v23, 0.0 }
 0x45d   :  { %v4993_v54 = vmax.f32 %v6548_v44, 0.0  ;;  %v4995_v55 = vmax.f32 %v6612_v39, 0.0 }
 0x45e   :  { %v5104_v41 = vpack.c.bf16 %v4992_v46, %v4988_v60  ;;  %v5106_v17 = vpack.c.bf16 %v4994_v47, %v4990_v43 }
 0x45f   :  { %v5105_v56 = vpack.c.bf16 %v4993_v54, %v4989_v48  ;;  %v5107_v57 = vpack.c.bf16 %v4995_v55, %v4991_v52  ;;  %v4459_v58 = vpop.f32.mrb[80].mxu0  ;;  %v4845_v59 = vpop.f32.mrb[80].mxu1 }
 0x460   :  { %v6549_v61 = vadd.f32 %v4459_v58, %v8288_v49  ;;  %v6613_v63 = vadd.f32 %v4845_v59, %v8292_v51  ;;  %v4461_v15 = vpop.f32.mrb[81].mxu0  ;;  %v4847_v2 = vpop.f32.mrb[81].mxu1 }
 0x461   :  { %v6550_v3 = vadd.f32 %v4461_v15, %v8296_v35  ;;  %v6614_v0 = vadd.f32 %v4847_v2, %v8300_v37  ;;  %v4463_v18 = vpop.f32.mrb[82].mxu0  ;;  %v4849_v20 = vpop.f32.mrb[82].mxu1  ;;  %5475 = vmatprep.mubr.bf16.mxu0 %v5105_v56  ;;  %5636 = vmatprep.mubr.bf16.mxu1 %v5107_v57 }
 0x462   :  { %v6551_v9 = vadd.f32 %v4463_v18, %v8288_v49  ;;  %v6615_v11 = vadd.f32 %v4849_v20, %v8292_v51  ;;  %v4465_v26 = vpop.f32.mrb[83].mxu0  ;;  %v4851_v1 = vpop.f32.mrb[83].mxu1  ;;  %5476 = vmatmul.mubr.bf16.gmra.mrb[140].mxu0 %v5104_v41  ;;  %5637 = vmatmul.mubr.bf16.gmra.mrb[140].mxu1 %v5106_v17  ;;  %v4996_v50 = vmax.f32 %v6549_v61, 0.0  ;;  %v4998_v53 = vmax.f32 %v6613_v63, 0.0 }
 0x463   :  { %v6552_v4 = vadd.f32 %v4465_v26, %v8296_v35  ;;  %v6616_v27 = vadd.f32 %v4851_v1, %v8300_v37  ;;  %v4997_v29 = vmax.f32 %v6550_v3, 0.0  ;;  %v4999_v36 = vmax.f32 %v6614_v0, 0.0 }
 0x464   :  { %v5000_v38 = vmax.f32 %v6551_v9, 0.0  ;;  %v5002_v25 = vmax.f32 %v6615_v11, 0.0 }
 0x465   :  { %v5001_v40 = vmax.f32 %v6552_v4, 0.0  ;;  %v5003_v19 = vmax.f32 %v6616_v27, 0.0 }
 0x466   :  { %v5108_v22 = vpack.c.bf16 %v5000_v38, %v4996_v50  ;;  %v5110_v12 = vpack.c.bf16 %v5002_v25, %v4998_v53 }
 0x467   :  { %v5109_v14 = vpack.c.bf16 %v5001_v40, %v4997_v29  ;;  %v5111_v8 = vpack.c.bf16 %v5003_v19, %v4999_v36  ;;  %v4469_v16 = vpop.f32.mrb[84].mxu0  ;;  %v4855_v13 = vpop.f32.mrb[84].mxu1 }
 0x468   :  { %v6553_v21 = vadd.f32 %v4469_v16, %v8288_v49  ;;  %v6617_v5 = vadd.f32 %v4855_v13, %v8292_v51  ;;  %v4471_v10 = vpop.f32.mrb[85].mxu0  ;;  %v4857_v24 = vpop.f32.mrb[85].mxu1 }
 0x469   :  { %v6554_v30 = vadd.f32 %v4471_v10, %v8296_v35  ;;  %v6618_v31 = vadd.f32 %v4857_v24, %v8300_v37  ;;  %v4473_v7 = vpop.f32.mrb[86].mxu0  ;;  %v4859_v32 = vpop.f32.mrb[86].mxu1  ;;  %5483 = vmatprep.mubr.bf16.mxu0 %v5109_v14  ;;  %5644 = vmatprep.mubr.bf16.mxu1 %v5111_v8 }
 0x46a   :  { %v6555_v33 = vadd.f32 %v4473_v7, %v8288_v49  ;;  %v6619_v6 = vadd.f32 %v4859_v32, %v8292_v51  ;;  %v4475_v34 = vpop.f32.mrb[87].mxu0  ;;  %v4861_v42 = vpop.f32.mrb[87].mxu1  ;;  %5484 = vmatmul.mubr.bf16.gmra.mrb[144].mxu0 %v5108_v22  ;;  %5645 = vmatmul.mubr.bf16.gmra.mrb[144].mxu1 %v5110_v12  ;;  %v5004_v62 = vmax.f32 %v6553_v21, 0.0  ;;  %v5006_v45 = vmax.f32 %v6617_v5, 0.0 }
 0x46b   :  { %v6556_v28 = vadd.f32 %v4475_v34, %v8296_v35  ;;  %v6620_v23 = vadd.f32 %v4861_v42, %v8300_v37  ;;  %v5005_v60 = vmax.f32 %v6554_v30, 0.0  ;;  %v5007_v43 = vmax.f32 %v6618_v31, 0.0 }
 0x46c   :  { %v5008_v44 = vmax.f32 %v6555_v33, 0.0  ;;  %v5010_v39 = vmax.f32 %v6619_v6, 0.0 }
 0x46d   :  { %v5009_v46 = vmax.f32 %v6556_v28, 0.0  ;;  %v5011_v47 = vmax.f32 %v6620_v23, 0.0 }
 0x46e   :  { %v5112_v48 = vpack.c.bf16 %v5008_v44, %v5004_v62  ;;  %v5114_v52 = vpack.c.bf16 %v5010_v39, %v5006_v45 }
 0x46f   :  { %v5113_v54 = vpack.c.bf16 %v5009_v46, %v5005_v60  ;;  %v5115_v55 = vpack.c.bf16 %v5011_v47, %v5007_v43  ;;  %v4479_v41 = vpop.f32.mrb[88].mxu0  ;;  %v4865_v17 = vpop.f32.mrb[88].mxu1 }
 0x470   :  { %v6557_v56 = vadd.f32 %v4479_v41, %v8288_v49  ;;  %v6621_v57 = vadd.f32 %v4865_v17, %v8292_v51  ;;  %v4481_v58 = vpop.f32.mrb[89].mxu0  ;;  %v4867_v59 = vpop.f32.mrb[89].mxu1 }
 0x471   :  { %v6558_v61 = vadd.f32 %v4481_v58, %v8296_v35  ;;  %v6622_v63 = vadd.f32 %v4867_v59, %v8300_v37  ;;  %v4483_v15 = vpop.f32.mrb[90].mxu0  ;;  %v4869_v2 = vpop.f32.mrb[90].mxu1  ;;  %5491 = vmatprep.mubr.bf16.mxu0 %v5113_v54  ;;  %5652 = vmatprep.mubr.bf16.mxu1 %v5115_v55 }
 0x472   :  { %v6559_v3 = vadd.f32 %v4483_v15, %v8288_v49  ;;  %v6623_v0 = vadd.f32 %v4869_v2, %v8292_v51  ;;  %v4485_v18 = vpop.f32.mrb[91].mxu0  ;;  %v4871_v20 = vpop.f32.mrb[91].mxu1  ;;  %5492 = vmatmul.mubr.bf16.gmra.mrb[148].mxu0 %v5112_v48  ;;  %5653 = vmatmul.mubr.bf16.gmra.mrb[148].mxu1 %v5114_v52  ;;  %v5012_v26 = vmax.f32 %v6557_v56, 0.0  ;;  %v5014_v1 = vmax.f32 %v6621_v57, 0.0 }
 0x473   :  { %v6560_v9 = vadd.f32 %v4485_v18, %v8296_v35  ;;  %v6624_v11 = vadd.f32 %v4871_v20, %v8300_v37  ;;  %v5013_v50 = vmax.f32 %v6558_v61, 0.0  ;;  %v5015_v53 = vmax.f32 %v6622_v63, 0.0 }
 0x474   :  { %v5016_v4 = vmax.f32 %v6559_v3, 0.0  ;;  %v5018_v27 = vmax.f32 %v6623_v0, 0.0 }
 0x475   :  { %v5017_v38 = vmax.f32 %v6560_v9, 0.0  ;;  %v5019_v25 = vmax.f32 %v6624_v11, 0.0 }
 0x476   :  { %v5116_v29 = vpack.c.bf16 %v5016_v4, %v5012_v26  ;;  %v5118_v36 = vpack.c.bf16 %v5018_v27, %v5014_v1 }
 0x477   :  { %v5117_v40 = vpack.c.bf16 %v5017_v38, %v5013_v50  ;;  %v5119_v19 = vpack.c.bf16 %v5019_v25, %v5015_v53  ;;  %v4489_v22 = vpop.f32.mrb[92].mxu0  ;;  %v4875_v12 = vpop.f32.mrb[92].mxu1 }
 0x478   :  { %v6561_v14 = vadd.f32 %v4489_v22, %v8288_v49  ;;  %v6625_v8 = vadd.f32 %v4875_v12, %v8292_v51  ;;  %v4491_v16 = vpop.f32.mrb[93].mxu0  ;;  %v4877_v13 = vpop.f32.mrb[93].mxu1 }
 0x479   :  { %v6562_v21 = vadd.f32 %v4491_v16, %v8296_v35  ;;  %v6626_v5 = vadd.f32 %v4877_v13, %v8300_v37  ;;  %v4493_v10 = vpop.f32.mrb[94].mxu0  ;;  %v4879_v24 = vpop.f32.mrb[94].mxu1  ;;  %5499 = vmatprep.mubr.bf16.mxu0 %v5117_v40  ;;  %5660 = vmatprep.mubr.bf16.mxu1 %v5119_v19 }
 0x47a   :  { %v6563_v30 = vadd.f32 %v4493_v10, %v8288_v49  ;;  %v6627_v31 = vadd.f32 %v4879_v24, %v8292_v51  ;;  %v4495_v7 = vpop.f32.mrb[95].mxu0  ;;  %v4881_v32 = vpop.f32.mrb[95].mxu1  ;;  %5500 = vmatmul.mubr.bf16.gmra.mrb[152].mxu0 %v5116_v29  ;;  %5661 = vmatmul.mubr.bf16.gmra.mrb[152].mxu1 %v5118_v36  ;;  %v5020_v34 = vmax.f32 %v6561_v14, 0.0  ;;  %v5022_v42 = vmax.f32 %v6625_v8, 0.0 }
 0x47b   :  { %v6564_v33 = vadd.f32 %v4495_v7, %v8296_v35  ;;  %v6628_v6 = vadd.f32 %v4881_v32, %v8300_v37  ;;  %v5021_v62 = vmax.f32 %v6562_v21, 0.0  ;;  %v5023_v45 = vmax.f32 %v6626_v5, 0.0 }
 0x47c   :  { %v5024_v28 = vmax.f32 %v6563_v30, 0.0  ;;  %v5026_v23 = vmax.f32 %v6627_v31, 0.0 }
 0x47d   :  { %v5025_v44 = vmax.f32 %v6564_v33, 0.0  ;;  %v5027_v39 = vmax.f32 %v6628_v6, 0.0 }
 0x47e   :  { %v5120_v60 = vpack.c.bf16 %v5024_v28, %v5020_v34  ;;  %v5122_v43 = vpack.c.bf16 %v5026_v23, %v5022_v42 }
 0x47f   :  { %v5121_v46 = vpack.c.bf16 %v5025_v44, %v5021_v62  ;;  %v5123_v47 = vpack.c.bf16 %v5027_v39, %v5023_v45  ;;  %v4499_v48 = vpop.f32.mrb[96].mxu0  ;;  %v4885_v52 = vpop.f32.mrb[96].mxu1 }
 0x480   :  { %v6565_v54 = vadd.f32 %v4499_v48, %v8288_v49  ;;  %v6629_v55 = vadd.f32 %v4885_v52, %v8292_v51  ;;  %v4501_v41 = vpop.f32.mrb[97].mxu0  ;;  %v4887_v17 = vpop.f32.mrb[97].mxu1 }
 0x481   :  { %v6566_v56 = vadd.f32 %v4501_v41, %v8296_v35  ;;  %v6630_v57 = vadd.f32 %v4887_v17, %v8300_v37  ;;  %v4503_v58 = vpop.f32.mrb[98].mxu0  ;;  %v4889_v59 = vpop.f32.mrb[98].mxu1  ;;  %5507 = vmatprep.mubr.bf16.mxu0 %v5121_v46  ;;  %5668 = vmatprep.mubr.bf16.mxu1 %v5123_v47 }
 0x482   :  { %v6567_v61 = vadd.f32 %v4503_v58, %v8288_v49  ;;  %v6631_v63 = vadd.f32 %v4889_v59, %v8292_v51  ;;  %v4505_v15 = vpop.f32.mrb[99].mxu0  ;;  %v4891_v2 = vpop.f32.mrb[99].mxu1  ;;  %5508 = vmatmul.mubr.bf16.gmra.mrb[156].mxu0 %v5120_v60  ;;  %5669 = vmatmul.mubr.bf16.gmra.mrb[156].mxu1 %v5122_v43  ;;  %v5028_v18 = vmax.f32 %v6565_v54, 0.0  ;;  %v5030_v20 = vmax.f32 %v6629_v55, 0.0 }
 0x483   :  { %v6568_v3 = vadd.f32 %v4505_v15, %v8296_v35  ;;  %v6632_v0 = vadd.f32 %v4891_v2, %v8300_v37  ;;  %v5029_v26 = vmax.f32 %v6566_v56, 0.0  ;;  %v5031_v1 = vmax.f32 %v6630_v57, 0.0 }
 0x484   :  { %v5032_v9 = vmax.f32 %v6567_v61, 0.0  ;;  %v5034_v11 = vmax.f32 %v6631_v63, 0.0 }
 0x485   :  { %v5033_v4 = vmax.f32 %v6568_v3, 0.0  ;;  %v5035_v27 = vmax.f32 %v6632_v0, 0.0 }
 0x486   :  { %v5124_v50 = vpack.c.bf16 %v5032_v9, %v5028_v18  ;;  %v5126_v53 = vpack.c.bf16 %v5034_v11, %v5030_v20 }
 0x487   :  { %v5125_v38 = vpack.c.bf16 %v5033_v4, %v5029_v26  ;;  %v5127_v25 = vpack.c.bf16 %v5035_v27, %v5031_v1  ;;  %v4509_v29 = vpop.f32.mrb[100].mxu0  ;;  %v4895_v36 = vpop.f32.mrb[100].mxu1 }
 0x488   :  { %v6569_v40 = vadd.f32 %v4509_v29, %v8288_v49  ;;  %v6633_v19 = vadd.f32 %v4895_v36, %v8292_v51  ;;  %v4511_v22 = vpop.f32.mrb[101].mxu0  ;;  %v4897_v12 = vpop.f32.mrb[101].mxu1 }
 0x489   :  { %v6570_v14 = vadd.f32 %v4511_v22, %v8296_v35  ;;  %v6634_v8 = vadd.f32 %v4897_v12, %v8300_v37  ;;  %v4513_v16 = vpop.f32.mrb[102].mxu0  ;;  %v4899_v13 = vpop.f32.mrb[102].mxu1  ;;  %5515 = vmatprep.mubr.bf16.mxu0 %v5125_v38  ;;  %5676 = vmatprep.mubr.bf16.mxu1 %v5127_v25 }
 0x48a   :  { %v6571_v21 = vadd.f32 %v4513_v16, %v8288_v49  ;;  %v6635_v5 = vadd.f32 %v4899_v13, %v8292_v51  ;;  %v4515_v10 = vpop.f32.mrb[103].mxu0  ;;  %v4901_v24 = vpop.f32.mrb[103].mxu1  ;;  %5516 = vmatmul.mubr.bf16.gmra.mrb[160].mxu0 %v5124_v50  ;;  %5677 = vmatmul.mubr.bf16.gmra.mrb[160].mxu1 %v5126_v53  ;;  %v5036_v7 = vmax.f32 %v6569_v40, 0.0  ;;  %v5038_v32 = vmax.f32 %v6633_v19, 0.0 }
 0x48b   :  { %v6572_v30 = vadd.f32 %v4515_v10, %v8296_v35  ;;  %v6636_v31 = vadd.f32 %v4901_v24, %v8300_v37  ;;  %v5037_v34 = vmax.f32 %v6570_v14, 0.0  ;;  %v5039_v42 = vmax.f32 %v6634_v8, 0.0 }
 0x48c   :  { %v5040_v33 = vmax.f32 %v6571_v21, 0.0  ;;  %v5042_v6 = vmax.f32 %v6635_v5, 0.0 }
 0x48d   :  { %v5041_v28 = vmax.f32 %v6572_v30, 0.0  ;;  %v5043_v23 = vmax.f32 %v6636_v31, 0.0 }
 0x48e   :  { %v5128_v62 = vpack.c.bf16 %v5040_v33, %v5036_v7  ;;  %v5130_v45 = vpack.c.bf16 %v5042_v6, %v5038_v32 }
 0x48f   :  { %v5129_v44 = vpack.c.bf16 %v5041_v28, %v5037_v34  ;;  %v5131_v39 = vpack.c.bf16 %v5043_v23, %v5039_v42  ;;  %v4519_v60 = vpop.f32.mrb[104].mxu0  ;;  %v4905_v43 = vpop.f32.mrb[104].mxu1 }
 0x490   :  { %v6573_v46 = vadd.f32 %v4519_v60, %v8288_v49  ;;  %v6637_v47 = vadd.f32 %v4905_v43, %v8292_v51  ;;  %v4521_v48 = vpop.f32.mrb[105].mxu0  ;;  %v4907_v52 = vpop.f32.mrb[105].mxu1 }
 0x491   :  { %v6574_v54 = vadd.f32 %v4521_v48, %v8296_v35  ;;  %v6638_v55 = vadd.f32 %v4907_v52, %v8300_v37  ;;  %v4523_v41 = vpop.f32.mrb[106].mxu0  ;;  %v4909_v17 = vpop.f32.mrb[106].mxu1  ;;  %5523 = vmatprep.mubr.bf16.mxu0 %v5129_v44  ;;  %5684 = vmatprep.mubr.bf16.mxu1 %v5131_v39 }
 0x492   :  { %v6575_v56 = vadd.f32 %v4523_v41, %v8288_v49  ;;  %v6639_v57 = vadd.f32 %v4909_v17, %v8292_v51  ;;  %v4525_v58 = vpop.f32.mrb[107].mxu0  ;;  %v4911_v59 = vpop.f32.mrb[107].mxu1  ;;  %5524 = vmatmul.mubr.bf16.gmra.mrb[164].mxu0 %v5128_v62  ;;  %5685 = vmatmul.mubr.bf16.gmra.mrb[164].mxu1 %v5130_v45  ;;  %v5044_v15 = vmax.f32 %v6573_v46, 0.0  ;;  %v5046_v2 = vmax.f32 %v6637_v47, 0.0 }
 0x493   :  { %v6576_v61 = vadd.f32 %v4525_v58, %v8296_v35  ;;  %v6640_v63 = vadd.f32 %v4911_v59, %v8300_v37  ;;  %v5045_v18 = vmax.f32 %v6574_v54, 0.0  ;;  %v5047_v20 = vmax.f32 %v6638_v55, 0.0 }
 0x494   :  { %v5048_v3 = vmax.f32 %v6575_v56, 0.0  ;;  %v5050_v0 = vmax.f32 %v6639_v57, 0.0 }
 0x495   :  { %v5049_v9 = vmax.f32 %v6576_v61, 0.0  ;;  %v5051_v11 = vmax.f32 %v6640_v63, 0.0 }
 0x496   :  { %v5132_v26 = vpack.c.bf16 %v5048_v3, %v5044_v15  ;;  %v5134_v1 = vpack.c.bf16 %v5050_v0, %v5046_v2 }
 0x497   :  { %v5133_v4 = vpack.c.bf16 %v5049_v9, %v5045_v18  ;;  %v5135_v27 = vpack.c.bf16 %v5051_v11, %v5047_v20  ;;  %v4529_v50 = vpop.f32.mrb[108].mxu0  ;;  %v4915_v53 = vpop.f32.mrb[108].mxu1 }
 0x498   :  { %v6577_v38 = vadd.f32 %v4529_v50, %v8288_v49  ;;  %v6641_v25 = vadd.f32 %v4915_v53, %v8292_v51  ;;  %v4531_v29 = vpop.f32.mrb[109].mxu0  ;;  %v4917_v36 = vpop.f32.mrb[109].mxu1 }
 0x499   :  { %v6578_v40 = vadd.f32 %v4531_v29, %v8296_v35  ;;  %v6642_v19 = vadd.f32 %v4917_v36, %v8300_v37  ;;  %v4533_v22 = vpop.f32.mrb[110].mxu0  ;;  %v4919_v12 = vpop.f32.mrb[110].mxu1  ;;  %5531 = vmatprep.mubr.bf16.mxu0 %v5133_v4  ;;  %5692 = vmatprep.mubr.bf16.mxu1 %v5135_v27 }
 0x49a   :  { %v6579_v14 = vadd.f32 %v4533_v22, %v8288_v49  ;;  %v6643_v8 = vadd.f32 %v4919_v12, %v8292_v51  ;;  %v4535_v16 = vpop.f32.mrb[111].mxu0  ;;  %v4921_v13 = vpop.f32.mrb[111].mxu1  ;;  %5532 = vmatmul.mubr.bf16.gmra.mrb[168].mxu0 %v5132_v26  ;;  %5693 = vmatmul.mubr.bf16.gmra.mrb[168].mxu1 %v5134_v1  ;;  %v5052_v10 = vmax.f32 %v6577_v38, 0.0  ;;  %v5054_v24 = vmax.f32 %v6641_v25, 0.0 }
 0x49b   :  { %v6580_v21 = vadd.f32 %v4535_v16, %v8296_v35  ;;  %v6644_v5 = vadd.f32 %v4921_v13, %v8300_v37  ;;  %v5053_v7 = vmax.f32 %v6578_v40, 0.0  ;;  %v5055_v32 = vmax.f32 %v6642_v19, 0.0 }
 0x49c   :  { %v5056_v30 = vmax.f32 %v6579_v14, 0.0  ;;  %v5058_v31 = vmax.f32 %v6643_v8, 0.0 }
 0x49d   :  { %v5057_v33 = vmax.f32 %v6580_v21, 0.0  ;;  %v5059_v6 = vmax.f32 %v6644_v5, 0.0 }
 0x49e   :  { %v5136_v34 = vpack.c.bf16 %v5056_v30, %v5052_v10  ;;  %v5138_v42 = vpack.c.bf16 %v5058_v31, %v5054_v24 }
 0x49f   :  { %v5137_v28 = vpack.c.bf16 %v5057_v33, %v5053_v7  ;;  %v5139_v23 = vpack.c.bf16 %v5059_v6, %v5055_v32  ;;  %v4539_v62 = vpop.f32.mrb[112].mxu0  ;;  %v4925_v45 = vpop.f32.mrb[112].mxu1 }
 0x4a0   :  { %v6581_v44 = vadd.f32 %v4539_v62, %v8288_v49  ;;  %v6645_v39 = vadd.f32 %v4925_v45, %v8292_v51  ;;  %v4541_v60 = vpop.f32.mrb[113].mxu0  ;;  %v4927_v43 = vpop.f32.mrb[113].mxu1 }
 0x4a1   :  { %v6582_v46 = vadd.f32 %v4541_v60, %v8296_v35  ;;  %v6646_v47 = vadd.f32 %v4927_v43, %v8300_v37  ;;  %v4543_v48 = vpop.f32.mrb[114].mxu0  ;;  %v4929_v52 = vpop.f32.mrb[114].mxu1  ;;  %5539 = vmatprep.mubr.bf16.mxu0 %v5137_v28  ;;  %5700 = vmatprep.mubr.bf16.mxu1 %v5139_v23 }
 0x4a2   :  { %v6583_v54 = vadd.f32 %v4543_v48, %v8288_v49  ;;  %v6647_v55 = vadd.f32 %v4929_v52, %v8292_v51  ;;  %v4545_v41 = vpop.f32.mrb[115].mxu0  ;;  %v4931_v17 = vpop.f32.mrb[115].mxu1  ;;  %5540 = vmatmul.mubr.bf16.gmra.mrb[172].mxu0 %v5136_v34  ;;  %5701 = vmatmul.mubr.bf16.gmra.mrb[172].mxu1 %v5138_v42  ;;  %v5060_v58 = vmax.f32 %v6581_v44, 0.0  ;;  %v5062_v59 = vmax.f32 %v6645_v39, 0.0 }
 0x4a3   :  { %v6584_v56 = vadd.f32 %v4545_v41, %v8296_v35  ;;  %v6648_v57 = vadd.f32 %v4931_v17, %v8300_v37  ;;  %v5061_v15 = vmax.f32 %v6582_v46, 0.0  ;;  %v5063_v2 = vmax.f32 %v6646_v47, 0.0 }
 0x4a4   :  { %v5064_v61 = vmax.f32 %v6583_v54, 0.0  ;;  %v5066_v63 = vmax.f32 %v6647_v55, 0.0 }
 0x4a5   :  { %v5065_v3 = vmax.f32 %v6584_v56, 0.0  ;;  %v5067_v0 = vmax.f32 %v6648_v57, 0.0 }
 0x4a6   :  { %v5140_v18 = vpack.c.bf16 %v5064_v61, %v5060_v58  ;;  %v5142_v20 = vpack.c.bf16 %v5066_v63, %v5062_v59 }
 0x4a7   :  { %v5141_v9 = vpack.c.bf16 %v5065_v3, %v5061_v15  ;;  %v5143_v11 = vpack.c.bf16 %v5067_v0, %v5063_v2  ;;  %v4549_v26 = vpop.f32.mrb[116].mxu0  ;;  %v4935_v1 = vpop.f32.mrb[116].mxu1 }
 0x4a8   :  { %v6585_v4 = vadd.f32 %v4549_v26, %v8288_v49  ;;  %v6649_v27 = vadd.f32 %v4935_v1, %v8292_v51  ;;  %v4551_v50 = vpop.f32.mrb[117].mxu0  ;;  %v4937_v53 = vpop.f32.mrb[117].mxu1 }
 0x4a9   :  { %v6586_v38 = vadd.f32 %v4551_v50, %v8296_v35  ;;  %v6650_v25 = vadd.f32 %v4937_v53, %v8300_v37  ;;  %v4553_v29 = vpop.f32.mrb[118].mxu0  ;;  %v4939_v36 = vpop.f32.mrb[118].mxu1  ;;  %5547 = vmatprep.mubr.bf16.mxu0 %v5141_v9  ;;  %5708 = vmatprep.mubr.bf16.mxu1 %v5143_v11 }
 0x4aa   :  { %v6587_v40 = vadd.f32 %v4553_v29, %v8288_v49  ;;  %v6651_v19 = vadd.f32 %v4939_v36, %v8292_v51  ;;  %v4555_v22 = vpop.f32.mrb[119].mxu0  ;;  %v4941_v12 = vpop.f32.mrb[119].mxu1  ;;  %5548 = vmatmul.mubr.bf16.gmra.mrb[176].mxu0 %v5140_v18  ;;  %5709 = vmatmul.mubr.bf16.gmra.mrb[176].mxu1 %v5142_v20  ;;  %v5068_v16 = vmax.f32 %v6585_v4, 0.0  ;;  %v5070_v13 = vmax.f32 %v6649_v27, 0.0 }
 0x4ab   :  { %v6588_v14 = vadd.f32 %v4555_v22, %v8296_v35  ;;  %v6652_v8 = vadd.f32 %v4941_v12, %v8300_v37  ;;  %v5069_v10 = vmax.f32 %v6586_v38, 0.0  ;;  %v5071_v24 = vmax.f32 %v6650_v25, 0.0 }
 0x4ac   :  { %v5072_v21 = vmax.f32 %v6587_v40, 0.0  ;;  %v5074_v5 = vmax.f32 %v6651_v19, 0.0 }
 0x4ad   :  { %v5073_v30 = vmax.f32 %v6588_v14, 0.0  ;;  %v5075_v31 = vmax.f32 %v6652_v8, 0.0 }
 0x4ae   :  { %v5144_v7 = vpack.c.bf16 %v5072_v21, %v5068_v16  ;;  %v5146_v32 = vpack.c.bf16 %v5074_v5, %v5070_v13 }
 0x4af   :  { %v5145_v33 = vpack.c.bf16 %v5073_v30, %v5069_v10  ;;  %v5147_v6 = vpack.c.bf16 %v5075_v31, %v5071_v24  ;;  %v4559_v34 = vpop.f32.mrb[120].mxu0  ;;  %v4945_v42 = vpop.f32.mrb[120].mxu1 }
 0x4b0   :  { %v6589_v28 = vadd.f32 %v4559_v34, %v8288_v49  ;;  %v6653_v23 = vadd.f32 %v4945_v42, %v8292_v51  ;;  %v4561_v62 = vpop.f32.mrb[121].mxu0  ;;  %v4947_v45 = vpop.f32.mrb[121].mxu1 }
 0x4b1   :  { %v6590_v44 = vadd.f32 %v4561_v62, %v8296_v35  ;;  %v6654_v39 = vadd.f32 %v4947_v45, %v8300_v37  ;;  %v4563_v60 = vpop.f32.mrb[122].mxu0  ;;  %v4949_v43 = vpop.f32.mrb[122].mxu1  ;;  %5555 = vmatprep.mubr.bf16.mxu0 %v5145_v33  ;;  %5716 = vmatprep.mubr.bf16.mxu1 %v5147_v6 }
 0x4b2   :  { %v6591_v46 = vadd.f32 %v4563_v60, %v8288_v49  ;;  %v6655_v47 = vadd.f32 %v4949_v43, %v8292_v51  ;;  %v4565_v48 = vpop.f32.mrb[123].mxu0  ;;  %v4951_v52 = vpop.f32.mrb[123].mxu1  ;;  %5556 = vmatmul.mubr.bf16.gmra.mrb[180].mxu0 %v5144_v7  ;;  %5717 = vmatmul.mubr.bf16.gmra.mrb[180].mxu1 %v5146_v32  ;;  %v5076_v41 = vmax.f32 %v6589_v28, 0.0  ;;  %v5078_v17 = vmax.f32 %v6653_v23, 0.0 }
 0x4b3   :  { %v6592_v54 = vadd.f32 %v4565_v48, %v8296_v35  ;;  %v6656_v55 = vadd.f32 %v4951_v52, %v8300_v37  ;;  %v5077_v58 = vmax.f32 %v6590_v44, 0.0  ;;  %v5079_v59 = vmax.f32 %v6654_v39, 0.0 }
 0x4b4   :  { %v5080_v56 = vmax.f32 %v6591_v46, 0.0  ;;  %v5082_v57 = vmax.f32 %v6655_v47, 0.0 }
 0x4b5   :  { %v5081_v61 = vmax.f32 %v6592_v54, 0.0  ;;  %v5083_v63 = vmax.f32 %v6656_v55, 0.0 }
 0x4b6   :  { %v5148_v15 = vpack.c.bf16 %v5080_v56, %v5076_v41  ;;  %v5150_v2 = vpack.c.bf16 %v5082_v57, %v5078_v17 }
 0x4b7   :  { %v5149_v3 = vpack.c.bf16 %v5081_v61, %v5077_v58  ;;  %v5151_v0 = vpack.c.bf16 %v5083_v63, %v5079_v59  ;;  %v4569_v18 = vpop.f32.mrb[124].mxu0  ;;  %v4955_v20 = vpop.f32.mrb[124].mxu1 }
 0x4b8   :  { %v6593_v9 = vadd.f32 %v4569_v18, %v8288_v49  ;;  %v6657_v11 = vadd.f32 %v4955_v20, %v8292_v51  ;;  %v4571_v26 = vpop.f32.mrb[125].mxu0  ;;  %v4957_v1 = vpop.f32.mrb[125].mxu1 }
 0x4b9   :  { %v6594_v4 = vadd.f32 %v4571_v26, %v8296_v35  ;;  %v6658_v27 = vadd.f32 %v4957_v1, %v8300_v37  ;;  %v4573_v50 = vpop.f32.mrb[126].mxu0  ;;  %v4959_v53 = vpop.f32.mrb[126].mxu1  ;;  %5563 = vmatprep.mubr.bf16.mxu0 %v5149_v3  ;;  %5724 = vmatprep.mubr.bf16.mxu1 %v5151_v0 }
 0x4ba   :  { %v6595_v38 = vadd.f32 %v4573_v50, %v8288_v49  ;;  %v6659_v25 = vadd.f32 %v4959_v53, %v8292_v51  ;;  %v4575_v29 = vpop.f32.mrb[127].mxu0  ;;  %v4961_v36 = vpop.f32.mrb[127].mxu1  ;;  %5564 = vmatmul.mubr.bf16.gmra.mrb[184].mxu0 %v5148_v15  ;;  %5725 = vmatmul.mubr.bf16.gmra.mrb[184].mxu1 %v5150_v2  ;;  %v5084_v22 = vmax.f32 %v6593_v9, 0.0  ;;  %v5086_v12 = vmax.f32 %v6657_v11, 0.0 }
 0x4bb   :  { %v6596_v40 = vadd.f32 %v4575_v29, %v8296_v35  ;;  %v6660_v19 = vadd.f32 %v4961_v36, %v8300_v37  ;;  %v5085_v16 = vmax.f32 %v6594_v4, 0.0  ;;  %v5087_v13 = vmax.f32 %v6658_v27, 0.0  ;;  %v8433_v37 = vld [vmem:[%s8485_s6] ss:$0 sm:$0xff] }
 0x4bc   :  { %v5088_v14 = vmax.f32 %v6595_v38, 0.0  ;;  %v5090_v8 = vmax.f32 %v6659_v25, 0.0 }
 0x4bd   :  { %v5089_v21 = vmax.f32 %v6596_v40, 0.0  ;;  %v5091_v5 = vmax.f32 %v6660_v19, 0.0 }
 0x4be   :  { %v5152_v10 = vpack.c.bf16 %v5088_v14, %v5084_v22  ;;  %v5154_v49 = vpack.c.bf16 %v5090_v8, %v5086_v12 }
 0x4bf   :  { %v5153_v24 = vpack.c.bf16 %v5089_v21, %v5085_v16  ;;  %v5155_v51 = vpack.c.bf16 %v5091_v5, %v5087_v13 }
 0x4c1   :  { %5571 = vmatprep.mubr.bf16.mxu0 %v5153_v24  ;;  %5732 = vmatprep.mubr.bf16.mxu1 %v5155_v51 }
 0x4c2   :  { %5572 = vmatmul.mubr.bf16.gmra.mrb[188].mxu0 %v5152_v10  ;;  %5733 = vmatmul.mubr.bf16.gmra.mrb[188].mxu1 %v5154_v49 }
 0x51d   :  { %v6197_v30 = vpop.f32.mrb[128].mxu0  ;;  %v6309_v35 = vpop.f32.mrb[128].mxu1 }
 0x51e   :  { %v6198_v31 = vpop.f32.mrb[129].mxu0  ;;  %v6310_v7 = vpop.f32.mrb[129].mxu1 }
 0x51f   :  { %v6199_v32 = vadd.f32 %v6198_v31, %v6197_v30  ;;  %v6311_v33 = vadd.f32 %v6310_v7, %v6309_v35  ;;  %v6200_v6 = vpop.f32.mrb[130].mxu0  ;;  %v6312_v34 = vpop.f32.mrb[130].mxu1 }
 0x520   :  { %v6201_v42 = vpop.f32.mrb[131].mxu0  ;;  %v6313_v28 = vpop.f32.mrb[131].mxu1 }
 0x521   :  { %v5454_v23 = vadd.f32 %v6199_v32, %v8433_v37  ;;  %v6202_v62 = vadd.f32 %v6201_v42, %v6200_v6  ;;  %v6314_v45 = vadd.f32 %v6313_v28, %v6312_v34 }
 0x523   :  { %v5615_v44 = vadd.f32 %v6311_v33, %v5454_v23  ;;  %v5457_v39 = vadd.f32 %v6202_v62, %v8433_v37 }
 0x525   :  { %5741 = vst [vmem:[#allocation10] sm:$0xff] %v5615_v44  ;;  %v5618_v60 = vadd.f32 %v6314_v45, %v5457_v39  ;;  %v6203_v43 = vpop.f32.mrb[132].mxu0  ;;  %v6315_v46 = vpop.f32.mrb[132].mxu1 }
 0x526   :  { %v6204_v47 = vpop.f32.mrb[133].mxu0  ;;  %v6316_v48 = vpop.f32.mrb[133].mxu1 }
 0x527   :  { %5742 = vst [vmem:[#allocation10 + $0x8] sm:$0xff] %v5618_v60  ;;  %v6205_v52 = vadd.f32 %v6204_v47, %v6203_v43  ;;  %v6317_v54 = vadd.f32 %v6316_v48, %v6315_v46  ;;  %v6206_v55 = vpop.f32.mrb[134].mxu0  ;;  %v6318_v41 = vpop.f32.mrb[134].mxu1 }
 0x528   :  { %v6207_v17 = vpop.f32.mrb[135].mxu0  ;;  %v6319_v56 = vpop.f32.mrb[135].mxu1 }
 0x529   :  { %v5462_v57 = vadd.f32 %v6205_v52, %v8433_v37  ;;  %v6208_v58 = vadd.f32 %v6207_v17, %v6206_v55  ;;  %v6320_v59 = vadd.f32 %v6319_v56, %v6318_v41 }
 0x52b   :  { %v5623_v61 = vadd.f32 %v6317_v54, %v5462_v57  ;;  %v5465_v63 = vadd.f32 %v6208_v58, %v8433_v37 }
 0x52d   :  { %5743 = vst [vmem:[#allocation10 + $0x10] sm:$0xff] %v5623_v61  ;;  %v5626_v15 = vadd.f32 %v6320_v59, %v5465_v63  ;;  %v6209_v2 = vpop.f32.mrb[136].mxu0  ;;  %v6321_v3 = vpop.f32.mrb[136].mxu1 }
 0x52e   :  { %v6210_v0 = vpop.f32.mrb[137].mxu0  ;;  %v6322_v18 = vpop.f32.mrb[137].mxu1 }
 0x52f   :  { %5744 = vst [vmem:[#allocation10 + $0x18] sm:$0xff] %v5626_v15  ;;  %v6211_v20 = vadd.f32 %v6210_v0, %v6209_v2  ;;  %v6323_v9 = vadd.f32 %v6322_v18, %v6321_v3  ;;  %v6212_v11 = vpop.f32.mrb[138].mxu0  ;;  %v6324_v26 = vpop.f32.mrb[138].mxu1 }
 0x530   :  { %v6213_v1 = vpop.f32.mrb[139].mxu0  ;;  %v6325_v4 = vpop.f32.mrb[139].mxu1 }
 0x531   :  { %v5470_v27 = vadd.f32 %v6211_v20, %v8433_v37  ;;  %v6214_v50 = vadd.f32 %v6213_v1, %v6212_v11  ;;  %v6326_v53 = vadd.f32 %v6325_v4, %v6324_v26 }
 0x533   :  { %v5631_v38 = vadd.f32 %v6323_v9, %v5470_v27  ;;  %v5473_v25 = vadd.f32 %v6214_v50, %v8433_v37 }
 0x535   :  { %5745 = vst [vmem:[#allocation10 + $0x20] sm:$0xff] %v5631_v38  ;;  %v5634_v29 = vadd.f32 %v6326_v53, %v5473_v25  ;;  %v6215_v36 = vpop.f32.mrb[140].mxu0  ;;  %v6327_v40 = vpop.f32.mrb[140].mxu1 }
 0x536   :  { %v6216_v19 = vpop.f32.mrb[141].mxu0  ;;  %v6328_v22 = vpop.f32.mrb[141].mxu1 }
 0x537   :  { %5746 = vst [vmem:[#allocation10 + $0x28] sm:$0xff] %v5634_v29  ;;  %v6217_v12 = vadd.f32 %v6216_v19, %v6215_v36  ;;  %v6329_v14 = vadd.f32 %v6328_v22, %v6327_v40  ;;  %v6218_v8 = vpop.f32.mrb[142].mxu0  ;;  %v6330_v16 = vpop.f32.mrb[142].mxu1 }
 0x538   :  { %v6219_v13 = vpop.f32.mrb[143].mxu0  ;;  %v6331_v21 = vpop.f32.mrb[143].mxu1 }
 0x539   :  { %v5478_v5 = vadd.f32 %v6217_v12, %v8433_v37  ;;  %v6220_v10 = vadd.f32 %v6219_v13, %v6218_v8  ;;  %v6332_v49 = vadd.f32 %v6331_v21, %v6330_v16 }
 0x53b   :  { %v5639_v24 = vadd.f32 %v6329_v14, %v5478_v5  ;;  %v5481_v51 = vadd.f32 %v6220_v10, %v8433_v37 }
 0x53d   :  { %5747 = vst [vmem:[#allocation10 + $0x30] sm:$0xff] %v5639_v24  ;;  %v5642_v30 = vadd.f32 %v6332_v49, %v5481_v51  ;;  %v6221_v35 = vpop.f32.mrb[144].mxu0  ;;  %v6333_v31 = vpop.f32.mrb[144].mxu1 }
 0x53e   :  { %v6222_v7 = vpop.f32.mrb[145].mxu0  ;;  %v6334_v32 = vpop.f32.mrb[145].mxu1 }
 0x53f   :  { %5748 = vst [vmem:[#allocation10 + $0x38] sm:$0xff] %v5642_v30  ;;  %v6223_v33 = vadd.f32 %v6222_v7, %v6221_v35  ;;  %v6335_v6 = vadd.f32 %v6334_v32, %v6333_v31  ;;  %v6224_v34 = vpop.f32.mrb[146].mxu0  ;;  %v6336_v42 = vpop.f32.mrb[146].mxu1 }
 0x540   :  { %v6225_v28 = vpop.f32.mrb[147].mxu0  ;;  %v6337_v23 = vpop.f32.mrb[147].mxu1 }
 0x541   :  { %v5486_v62 = vadd.f32 %v6223_v33, %v8433_v37  ;;  %v6226_v45 = vadd.f32 %v6225_v28, %v6224_v34  ;;  %v6338_v44 = vadd.f32 %v6337_v23, %v6336_v42 }
 0x543   :  { %v5647_v39 = vadd.f32 %v6335_v6, %v5486_v62  ;;  %v5489_v60 = vadd.f32 %v6226_v45, %v8433_v37 }
 0x545   :  { %5749 = vst [vmem:[#allocation10 + $0x40] sm:$0xff] %v5647_v39  ;;  %v5650_v43 = vadd.f32 %v6338_v44, %v5489_v60  ;;  %v6227_v46 = vpop.f32.mrb[148].mxu0  ;;  %v6339_v47 = vpop.f32.mrb[148].mxu1 }
 0x546   :  { %v6228_v48 = vpop.f32.mrb[149].mxu0  ;;  %v6340_v52 = vpop.f32.mrb[149].mxu1 }
 0x547   :  { %5750 = vst [vmem:[#allocation10 + $0x48] sm:$0xff] %v5650_v43  ;;  %v6229_v54 = vadd.f32 %v6228_v48, %v6227_v46  ;;  %v6341_v55 = vadd.f32 %v6340_v52, %v6339_v47  ;;  %v6230_v41 = vpop.f32.mrb[150].mxu0  ;;  %v6342_v17 = vpop.f32.mrb[150].mxu1 }
 0x548   :  { %v6231_v56 = vpop.f32.mrb[151].mxu0  ;;  %v6343_v57 = vpop.f32.mrb[151].mxu1 }
 0x549   :  { %v5494_v58 = vadd.f32 %v6229_v54, %v8433_v37  ;;  %v6232_v59 = vadd.f32 %v6231_v56, %v6230_v41  ;;  %v6344_v61 = vadd.f32 %v6343_v57, %v6342_v17 }
 0x54b   :  { %v5655_v63 = vadd.f32 %v6341_v55, %v5494_v58  ;;  %v5497_v15 = vadd.f32 %v6232_v59, %v8433_v37 }
 0x54d   :  { %5751 = vst [vmem:[#allocation10 + $0x50] sm:$0xff] %v5655_v63  ;;  %v5658_v2 = vadd.f32 %v6344_v61, %v5497_v15  ;;  %v6233_v3 = vpop.f32.mrb[152].mxu0  ;;  %v6345_v0 = vpop.f32.mrb[152].mxu1 }
 0x54e   :  { %v6234_v18 = vpop.f32.mrb[153].mxu0  ;;  %v6346_v20 = vpop.f32.mrb[153].mxu1 }
 0x54f   :  { %5752 = vst [vmem:[#allocation10 + $0x58] sm:$0xff] %v5658_v2  ;;  %v6235_v9 = vadd.f32 %v6234_v18, %v6233_v3  ;;  %v6347_v11 = vadd.f32 %v6346_v20, %v6345_v0  ;;  %v6236_v26 = vpop.f32.mrb[154].mxu0  ;;  %v6348_v1 = vpop.f32.mrb[154].mxu1 }
 0x550   :  { %v6237_v4 = vpop.f32.mrb[155].mxu0  ;;  %v6349_v27 = vpop.f32.mrb[155].mxu1 }
 0x551   :  { %v5502_v50 = vadd.f32 %v6235_v9, %v8433_v37  ;;  %v6238_v53 = vadd.f32 %v6237_v4, %v6236_v26  ;;  %v6350_v38 = vadd.f32 %v6349_v27, %v6348_v1 }
 0x553   :  { %v5663_v25 = vadd.f32 %v6347_v11, %v5502_v50  ;;  %v5505_v29 = vadd.f32 %v6238_v53, %v8433_v37 }
 0x555   :  { %5753 = vst [vmem:[#allocation10 + $0x60] sm:$0xff] %v5663_v25  ;;  %v5666_v36 = vadd.f32 %v6350_v38, %v5505_v29  ;;  %v6239_v40 = vpop.f32.mrb[156].mxu0  ;;  %v6351_v19 = vpop.f32.mrb[156].mxu1 }
 0x556   :  { %v6240_v22 = vpop.f32.mrb[157].mxu0  ;;  %v6352_v12 = vpop.f32.mrb[157].mxu1 }
 0x557   :  { %5754 = vst [vmem:[#allocation10 + $0x68] sm:$0xff] %v5666_v36  ;;  %v6241_v14 = vadd.f32 %v6240_v22, %v6239_v40  ;;  %v6353_v8 = vadd.f32 %v6352_v12, %v6351_v19  ;;  %v6242_v16 = vpop.f32.mrb[158].mxu0  ;;  %v6354_v13 = vpop.f32.mrb[158].mxu1 }
 0x558   :  { %v6243_v21 = vpop.f32.mrb[159].mxu0  ;;  %v6355_v5 = vpop.f32.mrb[159].mxu1 }
 0x559   :  { %v5510_v10 = vadd.f32 %v6241_v14, %v8433_v37  ;;  %v6244_v49 = vadd.f32 %v6243_v21, %v6242_v16  ;;  %v6356_v24 = vadd.f32 %v6355_v5, %v6354_v13 }
 0x55b   :  { %v5671_v51 = vadd.f32 %v6353_v8, %v5510_v10  ;;  %v5513_v30 = vadd.f32 %v6244_v49, %v8433_v37 }
 0x55d   :  { %5755 = vst [vmem:[#allocation10 + $0x70] sm:$0xff] %v5671_v51  ;;  %v5674_v35 = vadd.f32 %v6356_v24, %v5513_v30  ;;  %v6245_v31 = vpop.f32.mrb[160].mxu0  ;;  %v6357_v7 = vpop.f32.mrb[160].mxu1 }
 0x55e   :  { %v6246_v32 = vpop.f32.mrb[161].mxu0  ;;  %v6358_v33 = vpop.f32.mrb[161].mxu1 }
 0x55f   :  { %5756 = vst [vmem:[#allocation10 + $0x78] sm:$0xff] %v5674_v35  ;;  %v6247_v6 = vadd.f32 %v6246_v32, %v6245_v31  ;;  %v6359_v34 = vadd.f32 %v6358_v33, %v6357_v7  ;;  %v6248_v42 = vpop.f32.mrb[162].mxu0  ;;  %v6360_v28 = vpop.f32.mrb[162].mxu1 }
 0x560   :  { %v6249_v23 = vpop.f32.mrb[163].mxu0  ;;  %v6361_v62 = vpop.f32.mrb[163].mxu1 }
 0x561   :  { %v5518_v45 = vadd.f32 %v6247_v6, %v8433_v37  ;;  %v6250_v44 = vadd.f32 %v6249_v23, %v6248_v42  ;;  %v6362_v39 = vadd.f32 %v6361_v62, %v6360_v28 }
 0x563   :  { %v5679_v60 = vadd.f32 %v6359_v34, %v5518_v45  ;;  %v5521_v43 = vadd.f32 %v6250_v44, %v8433_v37 }
 0x565   :  { %5757 = vst [vmem:[#allocation10 + $0x80] sm:$0xff] %v5679_v60  ;;  %v5682_v46 = vadd.f32 %v6362_v39, %v5521_v43  ;;  %v6251_v47 = vpop.f32.mrb[164].mxu0  ;;  %v6363_v48 = vpop.f32.mrb[164].mxu1 }
 0x566   :  { %v6252_v52 = vpop.f32.mrb[165].mxu0  ;;  %v6364_v54 = vpop.f32.mrb[165].mxu1 }
 0x567   :  { %5758 = vst [vmem:[#allocation10 + $0x88] sm:$0xff] %v5682_v46  ;;  %v6253_v55 = vadd.f32 %v6252_v52, %v6251_v47  ;;  %v6365_v41 = vadd.f32 %v6364_v54, %v6363_v48  ;;  %v6254_v17 = vpop.f32.mrb[166].mxu0  ;;  %v6366_v56 = vpop.f32.mrb[166].mxu1 }
 0x568   :  { %v6255_v57 = vpop.f32.mrb[167].mxu0  ;;  %v6367_v58 = vpop.f32.mrb[167].mxu1 }
 0x569   :  { %v5526_v59 = vadd.f32 %v6253_v55, %v8433_v37  ;;  %v6256_v61 = vadd.f32 %v6255_v57, %v6254_v17  ;;  %v6368_v63 = vadd.f32 %v6367_v58, %v6366_v56 }
 0x56b   :  { %v5687_v15 = vadd.f32 %v6365_v41, %v5526_v59  ;;  %v5529_v2 = vadd.f32 %v6256_v61, %v8433_v37 }
 0x56d   :  { %5759 = vst [vmem:[#allocation10 + $0x90] sm:$0xff] %v5687_v15  ;;  %v5690_v3 = vadd.f32 %v6368_v63, %v5529_v2  ;;  %v6257_v0 = vpop.f32.mrb[168].mxu0  ;;  %v6369_v18 = vpop.f32.mrb[168].mxu1 }
 0x56e   :  { %v6258_v20 = vpop.f32.mrb[169].mxu0  ;;  %v6370_v9 = vpop.f32.mrb[169].mxu1 }
 0x56f   :  { %5760 = vst [vmem:[#allocation10 + $0x98] sm:$0xff] %v5690_v3  ;;  %v6259_v11 = vadd.f32 %v6258_v20, %v6257_v0  ;;  %v6371_v26 = vadd.f32 %v6370_v9, %v6369_v18  ;;  %v6260_v1 = vpop.f32.mrb[170].mxu0  ;;  %v6372_v4 = vpop.f32.mrb[170].mxu1 }
 0x570   :  { %v6261_v27 = vpop.f32.mrb[171].mxu0  ;;  %v6373_v50 = vpop.f32.mrb[171].mxu1 }
 0x571   :  { %v5534_v53 = vadd.f32 %v6259_v11, %v8433_v37  ;;  %v6262_v38 = vadd.f32 %v6261_v27, %v6260_v1  ;;  %v6374_v25 = vadd.f32 %v6373_v50, %v6372_v4 }
 0x573   :  { %v5695_v29 = vadd.f32 %v6371_v26, %v5534_v53  ;;  %v5537_v36 = vadd.f32 %v6262_v38, %v8433_v37 }
 0x575   :  { %5761 = vst [vmem:[#allocation10 + $0xa0] sm:$0xff] %v5695_v29  ;;  %v5698_v40 = vadd.f32 %v6374_v25, %v5537_v36  ;;  %v6263_v19 = vpop.f32.mrb[172].mxu0  ;;  %v6375_v22 = vpop.f32.mrb[172].mxu1 }
 0x576   :  { %v6264_v12 = vpop.f32.mrb[173].mxu0  ;;  %v6376_v14 = vpop.f32.mrb[173].mxu1 }
 0x577   :  { %5762 = vst [vmem:[#allocation10 + $0xa8] sm:$0xff] %v5698_v40  ;;  %v6265_v8 = vadd.f32 %v6264_v12, %v6263_v19  ;;  %v6377_v16 = vadd.f32 %v6376_v14, %v6375_v22  ;;  %v6266_v13 = vpop.f32.mrb[174].mxu0  ;;  %v6378_v21 = vpop.f32.mrb[174].mxu1 }
 0x578   :  { %v6267_v5 = vpop.f32.mrb[175].mxu0  ;;  %v6379_v10 = vpop.f32.mrb[175].mxu1 }
 0x579   :  { %v5542_v49 = vadd.f32 %v6265_v8, %v8433_v37  ;;  %v6268_v24 = vadd.f32 %v6267_v5, %v6266_v13  ;;  %v6380_v51 = vadd.f32 %v6379_v10, %v6378_v21 }
 0x57b   :  { %v5703_v30 = vadd.f32 %v6377_v16, %v5542_v49  ;;  %v5545_v35 = vadd.f32 %v6268_v24, %v8433_v37 }
 0x57d   :  { %5763 = vst [vmem:[#allocation10 + $0xb0] sm:$0xff] %v5703_v30  ;;  %v5706_v31 = vadd.f32 %v6380_v51, %v5545_v35  ;;  %v6269_v7 = vpop.f32.mrb[176].mxu0  ;;  %v6381_v32 = vpop.f32.mrb[176].mxu1 }
 0x57e   :  { %v6270_v33 = vpop.f32.mrb[177].mxu0  ;;  %v6382_v6 = vpop.f32.mrb[177].mxu1 }
 0x57f   :  { %5764 = vst [vmem:[#allocation10 + $0xb8] sm:$0xff] %v5706_v31  ;;  %v6271_v34 = vadd.f32 %v6270_v33, %v6269_v7  ;;  %v6383_v42 = vadd.f32 %v6382_v6, %v6381_v32  ;;  %v6272_v28 = vpop.f32.mrb[178].mxu0  ;;  %v6384_v23 = vpop.f32.mrb[178].mxu1 }
 0x580   :  { %v6273_v62 = vpop.f32.mrb[179].mxu0  ;;  %v6385_v45 = vpop.f32.mrb[179].mxu1 }
 0x581   :  { %v5550_v44 = vadd.f32 %v6271_v34, %v8433_v37  ;;  %v6274_v39 = vadd.f32 %v6273_v62, %v6272_v28  ;;  %v6386_v60 = vadd.f32 %v6385_v45, %v6384_v23 }
 0x583   :  { %v5711_v43 = vadd.f32 %v6383_v42, %v5550_v44  ;;  %v5553_v46 = vadd.f32 %v6274_v39, %v8433_v37 }
 0x585   :  { %5765 = vst [vmem:[#allocation10 + $0xc0] sm:$0xff] %v5711_v43  ;;  %v5714_v47 = vadd.f32 %v6386_v60, %v5553_v46  ;;  %v6275_v48 = vpop.f32.mrb[180].mxu0  ;;  %v6387_v52 = vpop.f32.mrb[180].mxu1 }
 0x586   :  { %v6276_v54 = vpop.f32.mrb[181].mxu0  ;;  %v6388_v55 = vpop.f32.mrb[181].mxu1 }
 0x587   :  { %5766 = vst [vmem:[#allocation10 + $0xc8] sm:$0xff] %v5714_v47  ;;  %v6277_v41 = vadd.f32 %v6276_v54, %v6275_v48  ;;  %v6389_v17 = vadd.f32 %v6388_v55, %v6387_v52  ;;  %v6278_v56 = vpop.f32.mrb[182].mxu0  ;;  %v6390_v57 = vpop.f32.mrb[182].mxu1 }
 0x588   :  { %v6279_v58 = vpop.f32.mrb[183].mxu0  ;;  %v6391_v59 = vpop.f32.mrb[183].mxu1 }
 0x589   :  { %v5558_v61 = vadd.f32 %v6277_v41, %v8433_v37  ;;  %v6280_v63 = vadd.f32 %v6279_v58, %v6278_v56  ;;  %v6392_v15 = vadd.f32 %v6391_v59, %v6390_v57 }
 0x58b   :  { %v5719_v2 = vadd.f32 %v6389_v17, %v5558_v61  ;;  %v5561_v3 = vadd.f32 %v6280_v63, %v8433_v37 }
 0x58d   :  { %5767 = vst [vmem:[#allocation10 + $0xd0] sm:$0xff] %v5719_v2  ;;  %v5722_v0 = vadd.f32 %v6392_v15, %v5561_v3  ;;  %v6281_v18 = vpop.f32.mrb[184].mxu0  ;;  %v6393_v20 = vpop.f32.mrb[184].mxu1 }
 0x58e   :  { %v6282_v9 = vpop.f32.mrb[185].mxu0  ;;  %v6394_v11 = vpop.f32.mrb[185].mxu1 }
 0x58f   :  { %5768 = vst [vmem:[#allocation10 + $0xd8] sm:$0xff] %v5722_v0  ;;  %v6283_v26 = vadd.f32 %v6282_v9, %v6281_v18  ;;  %v6395_v1 = vadd.f32 %v6394_v11, %v6393_v20  ;;  %v6284_v4 = vpop.f32.mrb[186].mxu0  ;;  %v6396_v27 = vpop.f32.mrb[186].mxu1 }
 0x590   :  { %v6285_v50 = vpop.f32.mrb[187].mxu0  ;;  %v6397_v53 = vpop.f32.mrb[187].mxu1 }
 0x591   :  { %v5566_v38 = vadd.f32 %v6283_v26, %v8433_v37  ;;  %v6286_v25 = vadd.f32 %v6285_v50, %v6284_v4  ;;  %v6398_v29 = vadd.f32 %v6397_v53, %v6396_v27 }
 0x593   :  { %v5727_v36 = vadd.f32 %v6395_v1, %v5566_v38  ;;  %v5569_v40 = vadd.f32 %v6286_v25, %v8433_v37 }
 0x595   :  { %5769 = vst [vmem:[#allocation10 + $0xe0] sm:$0xff] %v5727_v36  ;;  %v5730_v19 = vadd.f32 %v6398_v29, %v5569_v40  ;;  %v6287_v22 = vpop.f32.mrb[188].mxu0  ;;  %v6399_v12 = vpop.f32.mrb[188].mxu1 }
 0x596   :  { %v6288_v14 = vpop.f32.mrb[189].mxu0  ;;  %v6400_v8 = vpop.f32.mrb[189].mxu1 }
 0x597   :  { %5770 = vst [vmem:[#allocation10 + $0xe8] sm:$0xff] %v5730_v19  ;;  %v6289_v16 = vadd.f32 %v6288_v14, %v6287_v22  ;;  %v6401_v13 = vadd.f32 %v6400_v8, %v6399_v12  ;;  %v6290_v21 = vpop.f32.mrb[190].mxu0  ;;  %v6402_v5 = vpop.f32.mrb[190].mxu1 }
 0x598   :  { %v6291_v10 = vpop.f32.mrb[191].mxu0  ;;  %v6403_v49 = vpop.f32.mrb[191].mxu1 }
 0x599   :  { %v5574_v24 = vadd.f32 %v6289_v16, %v8433_v37  ;;  %v6292_v51 = vadd.f32 %v6291_v10, %v6290_v21  ;;  %v6404_v30 = vadd.f32 %v6403_v49, %v6402_v5 }
 0x59b   :  { %v5735_v35 = vadd.f32 %v6401_v13, %v5574_v24  ;;  %v5577_v31 = vadd.f32 %v6292_v51, %v8433_v37 }
 0x59d   :  { %5771 = vst [vmem:[#allocation10 + $0xf0] sm:$0xff] %v5735_v35  ;;  %v5738_v7 = vadd.f32 %v6404_v30, %v5577_v31 }
 0x59f   :  { %5772 = vst [vmem:[#allocation10 + $0xf8] sm:$0xff] %v5738_v7 }
 0x5a0   :  { %5777 = vsyncadd [#allocation4], 3968  ;;  %s7834_s6 = smov [#allocation10]  }
 0x5a1   :  { %s5778_s9 = sshll.u32 %s7834_s6, 4  ;;  %s5779_s9 = int_to_ptr.vmem [resolvable:$true] %s5778_s9 }
 0x5a2   :  { %s7793_s10 = scalar_lea.vmem %s5779_s9, 128  ;;  %s7797_s13 = scalar_lea.vmem %s5779_s9, 4096 }
 0x5a3   :  { %p7794_p4 = scmp.ne.s32.totalorder %s5779_s9, %s7793_s10  ;;  %p7798_p5 = scmp.lt.s32.totalorder %s5779_s9, %s5779_s9 }
 0x5a4   :  { %p7799_p6 = scmp.lt.s32.totalorder %s7797_s13, %s7793_s10 }
 0x5a6   :  { %p7800_p7 = por %p7799_p6, %p7798_p5 }
 0x5a8   :  { %p7801_p8 = pnand %p7800_p7, %p7794_p4 }
 0x5aa   :  { %7804 = shalt.err (!%p7801_p8)
}
 0x5ab   :  { %s7805_s17 = scalar_lea.hbm %s8486_s7, 128 }
 0x5ac   :  { %p7806_p9 = scmp.ne.s32.totalorder %s8486_s7, %s7805_s17  ;;  %p7809_p10 = scmp.lt.u32.totalorder %s7805_s17, %s8486_s7 }
 0x5ae   :  { %p7811_p11 = pnand %p7809_p10, %p7806_p9 }
 0x5b0   :  { %7814 = shalt.err (!%p7811_p11)
}
 0x5b1   :  { %s7835_s20 = smov 128   ;;  %s7836_s21 = smov 8  }
 0x5b2   :  { %5784 = dma.vmem_to_hbm [thread:$0]  %s5779_s9, 128, %s8486_s7, [#allocation4], %s7835_s20, %s7835_s20, %s7836_s21  }
 0x5b3   :  { %7821 = dma.done.wait [#allocation4], 4096  }
 0x5b4   :  { %7822 = vsyncadd [#allocation4], 4294963200 }
 0x5b5   :  { %5788 = vsyncpa [#allocation3], 1 }
 0x5b6   :  { %5789 = vsyncpa [#allocation6], 1 }
 0x5b7   :  { %5790 = vsyncpa [#allocation9], 1 }
 0x5b8   :  { %5791 = vsyncpa [#allocation4], 1 }

</bundles_post_ra>
